<compile_context>
chip_gen: v7x
topology: tpu7x:2x2x1
jax: 0.10.0
libtpu: 0.0.40
codegen_flags: <defaults>
</compile_context>

<pallas_src>
import functools

import jax
import jax.numpy as jnp
from jax import lax
from jax.experimental import pallas as pl
from jax.experimental.pallas import tpu as pltpu

EPS = 1e-5  # nn.BatchNorm2d default eps


# ----------------------------------------------------------------------------
# In-kernel helpers
# ----------------------------------------------------------------------------
def _pad_hw(x):
    """Zero-pad a (H, W, C) tile by 1 on each spatial side (in-register)."""
    h, w, c = x.shape
    zrow = jnp.zeros((1, w, c), x.dtype)
    x = jnp.concatenate([zrow, x, zrow], axis=0)            # (H+2, W,   C)
    zcol = jnp.zeros((h + 2, 1, c), x.dtype)
    return jnp.concatenate([zcol, x, zcol], axis=1)         # (H+2, W+2, C)


def _im2col3x3(xpad, h, w):
    """(H+2, W+2, C) -> (H*W, 9*C) patch matrix (tap order dy-major, dx)."""
    c = xpad.shape[-1]
    cols = [xpad[dy:dy + h, dx:dx + w, :] for dy in range(3) for dx in range(3)]
    return jnp.concatenate(cols, axis=-1).reshape(h * w, 9 * c)


def _partial_stats(a_f32):
    """Per-tile [sum; sum of squares] over rows -> (2, C), f32."""
    return jnp.concatenate(
        [jnp.sum(a_f32, axis=0, keepdims=True),
         jnp.sum(a_f32 * a_f32, axis=0, keepdims=True)], axis=0)


# ----------------------------------------------------------------------------
# Kernels (grid = (N,), one sample per step)
# ----------------------------------------------------------------------------
def _k1_proj(x_ref, w1_ref, b1_ref, wsc_ref, bsc_ref,
             a1_ref, res_ref, st_ref, *, compute_dtype):
    """conv1 (3x3 im2col matmul), separate 1x1 shortcut matmul, BN1 partials."""
    _, h, w, cin = x_ref.shape
    x = x_ref[0].astype(compute_dtype)                      # cast BEFORE im2col
    patches = _im2col3x3(_pad_hw(x), h, w)                  # (HW, 9*Cin) bf16
    a1 = jnp.dot(patches, w1_ref[...],
                 preferred_element_type=jnp.float32) + b1_ref[...]
    res = jnp.dot(x.reshape(h * w, cin), wsc_ref[...],
                  preferred_element_type=jnp.float32) + bsc_ref[...]
    a1_ref[0] = a1.astype(a1_ref.dtype)
    res_ref[0] = res.astype(res_ref.dtype)
    st_ref[0] = _partial_stats(a1)                          # stats from f32


def _k1_identity(x_ref, w1_ref, b1_ref,
                 a1_ref, res_ref, st_ref, *, compute_dtype):
    """conv1 (3x3 im2col matmul) + identity shortcut copy + BN1 partials."""
    _, h, w, cin = x_ref.shape
    x = x_ref[0].astype(compute_dtype)
    patches = _im2col3x3(_pad_hw(x), h, w)
    a1 = jnp.dot(patches, w1_ref[...],
                 preferred_element_type=jnp.float32) + b1_ref[...]
    a1_ref[0] = a1.astype(a1_ref.dtype)
    res_ref[0] = x_ref[0].reshape(h * w, cin).astype(res_ref.dtype)
    st_ref[0] = _partial_stats(a1)


def _k2_bn1_temb_conv2(a1_ref, t_ref, bn1_ref, w2_ref, b2_ref,
                       a2_ref, st_ref, *, h, w, compute_dtype):
    """BN1 (folded affine) + ReLU + time-embed add + conv2 + BN2 partials."""
    cout = a1_ref.shape[-1]
    a1 = a1_ref[0].astype(jnp.float32)                      # (HW, Cout)
    h1 = jnp.maximum(a1 * bn1_ref[0:1, :] + bn1_ref[1:2, :], 0.0) + t_ref[0]
    h1 = h1.astype(compute_dtype).reshape(h, w, cout)       # cast BEFORE im2col
    patches = _im2col3x3(_pad_hw(h1), h, w)                 # (HW, 9*Cout) bf16
    a2 = jnp.dot(patches, w2_ref[...],
                 preferred_element_type=jnp.float32) + b2_ref[...]
    a2_ref[0] = a2.astype(a2_ref.dtype)
    st_ref[0] = _partial_stats(a2)


# ----------------------------------------------------------------------------
# Wrapper
# ----------------------------------------------------------------------------
def _bn_affine(stats, gamma, beta, count):
    """Reduce per-tile partials and fold BN into y = x*scale + shift (f32)."""
    s = jnp.sum(stats[:, 0, :], axis=0)
    ss = jnp.sum(stats[:, 1, :], axis=0)
    mean = s / count
    var = jnp.maximum(ss / count - mean * mean, 0.0)
    scale = gamma.reshape(-1) * lax.rsqrt(var + EPS)
    shift = beta.reshape(-1) - mean * scale
    return jnp.stack([scale, shift], axis=0)                # (2, Cout)


def residual_block_nhwc(x_nhwc, t_emb, params, *, compute_dtype=jnp.bfloat16):
    """NHWC in / NHWC out forward pass (preferred entry point)."""
    n, h, w, cin = x_nhwc.shape
    cout = params["w1"].shape[-1]
    hw = h * w
    count = n * hw
    store_dtype = compute_dtype                             # bf16 intermediates

    has_projection = "wsc" in params
    if not has_projection:
        assert cin == cout, "identity shortcut requires in_channels == out_channels"

    # Pre-cast weights to compute_dtype once in the wrapper (no per-step cast).
    w1f = params["w1"].reshape(9 * cin, cout).astype(compute_dtype)
    w2f = params["w2"].reshape(9 * cout, cout).astype(compute_dtype)
    b1 = params["b1"].astype(jnp.float32)
    b2 = params["b2"].astype(jnp.float32)

    # Time-embedding projection once in XLA (avoids a per-step M=1 MXU matmul).
    t_proj = (t_emb.astype(jnp.float32) @ params["wt"].astype(jnp.float32)
              + params["bt"].astype(jnp.float32)).reshape(n, 1, cout)

    cparams = pltpu.CompilerParams(
        dimension_semantics=("parallel",),                  # batch axis -> 2 TCs on v7x
        vmem_limit_bytes=32 * 1024 * 1024)                  # safe on v5e/v6e/v7x

    samp3 = lambda i: (i, 0, 0)
    rep2 = lambda i: (0, 0)

    # --- K1: conv1 + shortcut + BN1 partial stats ----------------------------
    if has_projection:
        wsc = params["wsc"].astype(compute_dtype)
        bsc = params["bsc"].astype(jnp.float32)
        k1_kernel = functools.partial(_k1_proj, compute_dtype=compute_dtype)
        k1_in_specs = [
            pl.BlockSpec((1, h, w, cin), lambda i: (i, 0, 0, 0)),
            pl.BlockSpec((9 * cin, cout), rep2),
            pl.BlockSpec((1, cout), rep2),
            pl.BlockSpec((cin, cout), rep2),
            pl.BlockSpec((1, cout), rep2)]
        k1_args = (x_nhwc, w1f, b1, wsc, bsc)
    else:
        k1_kernel = functools.partial(_k1_identity, compute_dtype=compute_dtype)
        k1_in_specs = [
            pl.BlockSpec((1, h, w, cin), lambda i: (i, 0, 0, 0)),
            pl.BlockSpec((9 * cin, cout), rep2),
            pl.BlockSpec((1, cout), rep2)]
        k1_args = (x_nhwc, w1f, b1)

    a1, res, st1 = pl.pallas_call(
        k1_kernel,
        grid=(n,),
        in_specs=k1_in_specs,
        out_specs=(pl.BlockSpec((1, hw, cout), samp3),
                   pl.BlockSpec((1, hw, cout), samp3),
                   pl.BlockSpec((1, 2, cout), samp3)),
        out_shape=(jax.ShapeDtypeStruct((n, hw, cout), store_dtype),
                   jax.ShapeDtypeStruct((n, hw, cout), store_dtype),
                   jax.ShapeDtypeStruct((n, 2, cout), jnp.float32)),
        compiler_params=cparams,
    )(*k1_args)

    bn1 = _bn_affine(st1, params["g1"], params["be1"], count)  # O(Cout) glue

    # --- K2: BN1 + ReLU + time-embed + conv2 + BN2 partial stats -------------
    a2, st2 = pl.pallas_call(
        functools.partial(_k2_bn1_temb_conv2, h=h, w=w,
                          compute_dtype=compute_dtype),
        grid=(n,),
        in_specs=[pl.BlockSpec((1, hw, cout), samp3),
                  pl.BlockSpec((1, 1, cout), samp3),
                  pl.BlockSpec((2, cout), rep2),
                  pl.BlockSpec((9 * cout, cout), rep2),
                  pl.BlockSpec((1, cout), rep2)],
        out_specs=(pl.BlockSpec((1, hw, cout), samp3),
                   pl.BlockSpec((1, 2, cout), samp3)),
        out_shape=(jax.ShapeDtypeStruct((n, hw, cout), store_dtype),
                   jax.ShapeDtypeStruct((n, 2, cout), jnp.float32)),
        compiler_params=cparams,
    )(a1, t_proj, bn1, w2f, b2)

    bn2 = _bn_affine(st2, params["g2"], params["be2"], count)

    # --- Epilogue in plain JAX: BN2 + ReLU + residual add ---------------------
    # Memory-bound elementwise pass; letting XLA fuse it with the surrounding
    # layout ops avoids an extra full-tensor HBM round trip.
    out = (jnp.maximum(a2.astype(jnp.float32) * bn2[0] + bn2[1], 0.0)
           + res.astype(jnp.float32))
    return out.reshape(n, h, w, cout)


def residual_block(x_nchw, t_emb, params, *, compute_dtype=jnp.bfloat16):
    """Thin NCHW adapter matching the PyTorch module API."""
    x_nhwc = jnp.transpose(x_nchw, (0, 2, 3, 1))
    out = residual_block_nhwc(x_nhwc, t_emb, params, compute_dtype=compute_dtype)
    return jnp.transpose(out, (0, 3, 1, 2))


# ----------------------------------------------------------------------------
# Pure-JAX reference (mirrors the PyTorch forward, training-mode BN)
# ----------------------------------------------------------------------------
def reference(x_nchw, t_emb, params):
    def conv3x3(x, w, b):
        w_oihw = jnp.transpose(w, (3, 2, 0, 1))
        y = lax.conv_general_dilated(x, w_oihw, (1, 1), ((1, 1), (1, 1)),
                                     dimension_numbers=("NCHW", "OIHW", "NCHW"))
        return y + b.reshape(1, -1, 1, 1)

    def bn_relu(x, g, be):
        m = jnp.mean(x, axis=(0, 2, 3), keepdims=True)
        v = jnp.mean((x - m) ** 2, axis=(0, 2, 3), keepdims=True)
        y = (x - m) * lax.rsqrt(v + EPS) * g.reshape(1, -1, 1, 1) \
            + be.reshape(1, -1, 1, 1)
        return jnp.maximum(y, 0.0)

    h1 = bn_relu(conv3x3(x_nchw, params["w1"], params["b1"]),
                 params["g1"], params["be1"])
    t = t_emb @ params["wt"] + params["bt"]
    h1 = h1 + t[:, :, None, None]
    h2 = bn_relu(conv3x3(h1, params["w2"], params["b2"]),
                 params["g2"], params["be2"])
    w_sc = jnp.transpose(params["wsc"], (1, 0))[:, :, None, None]
    res = lax.conv_general_dilated(x_nchw, w_sc, (1, 1), ((0, 0), (0, 0)),
                                   dimension_numbers=("NCHW", "OIHW", "NCHW")) \
        + params["bsc"].reshape(1, -1, 1, 1)
    return h2 + res


def make_params(key, cin, cout, tch):
    ks = jax.random.split(key, 8)
    s = 0.1
    return {
        "w1": s * jax.random.normal(ks[0], (3, 3, cin, cout), jnp.float32),
        "b1": s * jax.random.normal(ks[1], (1, cout), jnp.float32),
        "g1": jnp.ones((1, cout), jnp.float32),
        "be1": jnp.zeros((1, cout), jnp.float32),
        "wt": s * jax.random.normal(ks[2], (tch, cout), jnp.float32),
        "bt": s * jax.random.normal(ks[3], (1, cout), jnp.float32),
        "w2": s * jax.random.normal(ks[4], (3, 3, cout, cout), jnp.float32),
        "b2": s * jax.random.normal(ks[5], (1, cout), jnp.float32),
        "g2": jnp.ones((1, cout), jnp.float32),
        "be2": jnp.zeros((1, cout), jnp.float32),
        "wsc": s * jax.random.normal(ks[6], (cin, cout), jnp.float32),
        "bsc": s * jax.random.normal(ks[7], (1, cout), jnp.float32),
    }


if __name__ == "__main__":
    N, CIN, COUT, H, W, TCH = 2, 4, 8, 16, 16, 32

    key = jax.random.PRNGKey(0)
    kx, kt, kp = jax.random.split(key, 3)
    x = jax.random.normal(kx, (N, CIN, H, W), jnp.float32)
    t_emb = jax.random.normal(kt, (N, TCH), jnp.float32)
    params = make_params(kp, CIN, COUT, TCH)

    ref = jax.block_until_ready(reference(x, t_emb, params))

    # f32 compute/storage path: tight check against the PyTorch-style reference.
    out_f32 = jax.block_until_ready(
        jax.jit(functools.partial(residual_block, compute_dtype=jnp.float32))(
            x, t_emb, params))
    assert out_f32.shape == (N, COUT, H, W)
    assert jnp.allclose(out_f32, ref, rtol=1e-3, atol=1e-3), \
        f"max abs err {jnp.max(jnp.abs(out_f32 - ref))}"

    # Default bf16 path (recommended on v5e/v6e/v7x): loose sanity check.
    out_bf16 = jax.block_until_ready(
        jax.jit(residual_block)(x, t_emb, params))
    assert out_bf16.shape == (N, COUT, H, W)
    assert bool(jnp.isfinite(out_bf16).all())
    assert float(jnp.max(jnp.abs(out_bf16.astype(jnp.float32) - ref))) < 0.5

    print("KERNEL_OK")
</pallas_src>

<mosaic_0001>
module attributes {stable_mosaic.version = 11 : i64} {
  func.func @_k1_proj(%arg0: i32, %arg1: memref<1x16x16x4xf32, #tpu.memory_space<vmem>>, %arg2: memref<36x8xf32, #tpu.memory_space<vmem>>, %arg3: memref<1x8xf32, #tpu.memory_space<vmem>>, %arg4: memref<4x8xf32, #tpu.memory_space<vmem>>, %arg5: memref<1x8xf32, #tpu.memory_space<vmem>>, %arg6: memref<1x256x8xf32, #tpu.memory_space<vmem>>, %arg7: memref<1x256x8xf32, #tpu.memory_space<vmem>>, %arg8: memref<1x2x8xf32, #tpu.memory_space<vmem>>) attributes {dimension_semantics = [#tpu.dimension_semantics<parallel>], iteration_bounds = array<i64: 2>, scalar_prefetch = 0 : i64, scratch_operands = 0 : i64, tpu.core_type = #tpu.core_type<tc>, window_params = [{transform_indices = @transform_0, window_bounds = array<i64: 1, 16, 16, 4>}, {pipeline_mode = #tpu.pipeline_mode<synchronous>, transform_indices = @transform_1, window_bounds = array<i64: 36, 8>}, {pipeline_mode = #tpu.pipeline_mode<synchronous>, transform_indices = @transform_2, window_bounds = array<i64: 1, 8>}, {pipeline_mode = #tpu.pipeline_mode<synchronous>, transform_indices = @transform_3, window_bounds = array<i64: 4, 8>}, {pipeline_mode = #tpu.pipeline_mode<synchronous>, transform_indices = @transform_4, window_bounds = array<i64: 1, 8>}, {transform_indices = @transform_5, window_bounds = array<i64: 1, 256, 8>}, {transform_indices = @transform_6, window_bounds = array<i64: 1, 256, 8>}, {transform_indices = @transform_7, window_bounds = array<i64: 1, 2, 8>}]} {
    %c0 = arith.constant 0 : index
    %c0_0 = arith.constant 0 : index
    %c0_1 = arith.constant 0 : index
    %c0_2 = arith.constant 0 : index
    %0 = vector.load %arg1[%c0, %c0_0, %c0_1, %c0_2] : memref<1x16x16x4xf32, #tpu.memory_space<vmem>>, vector<1x16x16x4xf32>
    %1 = vector.shape_cast %0 : vector<1x16x16x4xf32> to vector<16x16x4xf32>
    %cst = arith.constant 0.000000e+00 : f32
    %2 = vector.broadcast %cst : f32 to vector<1x16x4xf32>
    %3 = tpu.concatenate %2, %1, %2 in 0 : vector<1x16x4xf32>, vector<16x16x4xf32>, vector<1x16x4xf32> -> vector<18x16x4xf32>
    %cst_3 = arith.constant 0.000000e+00 : f32
    %4 = vector.broadcast %cst_3 : f32 to vector<18x1x4xf32>
    %5 = tpu.concatenate %4, %3, %4 in 1 : vector<18x1x4xf32>, vector<18x16x4xf32>, vector<18x1x4xf32> -> vector<18x18x4xf32>
    %6 = vector.extract_strided_slice %5 {offsets = [0, 0, 0], sizes = [16, 16, 4], strides = [1, 1, 1]} : vector<18x18x4xf32> to vector<16x16x4xf32>
    %7 = vector.extract_strided_slice %5 {offsets = [0, 1, 0], sizes = [16, 16, 4], strides = [1, 1, 1]} : vector<18x18x4xf32> to vector<16x16x4xf32>
    %8 = vector.extract_strided_slice %5 {offsets = [0, 2, 0], sizes = [16, 16, 4], strides = [1, 1, 1]} : vector<18x18x4xf32> to vector<16x16x4xf32>
    %9 = vector.extract_strided_slice %5 {offsets = [1, 0, 0], sizes = [16, 16, 4], strides = [1, 1, 1]} : vector<18x18x4xf32> to vector<16x16x4xf32>
    %10 = vector.extract_strided_slice %5 {offsets = [1, 1, 0], sizes = [16, 16, 4], strides = [1, 1, 1]} : vector<18x18x4xf32> to vector<16x16x4xf32>
    %11 = vector.extract_strided_slice %5 {offsets = [1, 2, 0], sizes = [16, 16, 4], strides = [1, 1, 1]} : vector<18x18x4xf32> to vector<16x16x4xf32>
    %12 = vector.extract_strided_slice %5 {offsets = [2, 0, 0], sizes = [16, 16, 4], strides = [1, 1, 1]} : vector<18x18x4xf32> to vector<16x16x4xf32>
    %13 = vector.extract_strided_slice %5 {offsets = [2, 1, 0], sizes = [16, 16, 4], strides = [1, 1, 1]} : vector<18x18x4xf32> to vector<16x16x4xf32>
    %14 = vector.extract_strided_slice %5 {offsets = [2, 2, 0], sizes = [16, 16, 4], strides = [1, 1, 1]} : vector<18x18x4xf32> to vector<16x16x4xf32>
    %15 = tpu.concatenate %6, %7, %8, %9, %10, %11, %12, %13, %14 in 2 : vector<16x16x4xf32>, vector<16x16x4xf32>, vector<16x16x4xf32>, vector<16x16x4xf32>, vector<16x16x4xf32>, vector<16x16x4xf32>, vector<16x16x4xf32>, vector<16x16x4xf32>, vector<16x16x4xf32> -> vector<16x16x36xf32>
    %16 = vector.shape_cast %15 : vector<16x16x36xf32> to vector<256x36xf32>
    %c0_4 = arith.constant 0 : index
    %c0_5 = arith.constant 0 : index
    %17 = vector.load %arg2[%c0_4, %c0_5] : memref<36x8xf32, #tpu.memory_space<vmem>>, vector<36x8xf32>
    %cst_6 = arith.constant dense<0.000000e+00> : vector<256x8xf32>
    %18 = tpu.matmul %16, %17, %cst_6 {dimension_numbers = #tpu.dot_dimension_numbers<[1], [0], [0], [1], [0, 0, 1, 1], [], []>} : vector<256x36xf32>, vector<36x8xf32>, vector<256x8xf32> -> vector<256x8xf32>
    %c0_7 = arith.constant 0 : index
    %c0_8 = arith.constant 0 : index
    %19 = vector.load %arg3[%c0_7, %c0_8] : memref<1x8xf32, #tpu.memory_space<vmem>>, vector<1x8xf32>
    %20 = vector.broadcast %19 : vector<1x8xf32> to vector<256x8xf32>
    %21 = arith.addf %18, %20 : vector<256x8xf32>
    %22 = vector.shape_cast %1 : vector<16x16x4xf32> to vector<256x4xf32>
    %c0_9 = arith.constant 0 : index
    %c0_10 = arith.constant 0 : index
    %23 = vector.load %arg4[%c0_9, %c0_10] : memref<4x8xf32, #tpu.memory_space<vmem>>, vector<4x8xf32>
    %cst_11 = arith.constant dense<0.000000e+00> : vector<256x8xf32>
    %24 = tpu.matmul %22, %23, %cst_11 {dimension_numbers = #tpu.dot_dimension_numbers<[1], [0], [0], [1], [0, 0, 1, 1], [], []>} : vector<256x4xf32>, vector<4x8xf32>, vector<256x8xf32> -> vector<256x8xf32>
    %c0_12 = arith.constant 0 : index
    %c0_13 = arith.constant 0 : index
    %25 = vector.load %arg5[%c0_12, %c0_13] : memref<1x8xf32, #tpu.memory_space<vmem>>, vector<1x8xf32>
    %26 = vector.broadcast %25 : vector<1x8xf32> to vector<256x8xf32>
    %27 = arith.addf %24, %26 : vector<256x8xf32>
    %c0_14 = arith.constant 0 : index
    %c0_15 = arith.constant 0 : index
    %c0_16 = arith.constant 0 : index
    %28 = vector.load %arg6[%c0_14, %c0_15, %c0_16] : memref<1x256x8xf32, #tpu.memory_space<vmem>>, vector<1x256x8xf32>
    %29 = vector.shape_cast %28 : vector<1x256x8xf32> to vector<256x8xf32>
    %30 = vector.shape_cast %21 : vector<256x8xf32> to vector<1x256x8xf32>
    tpu.vector_store %arg6[%c0_14, %c0_15, %c0_16], %30 {strides = array<i32>} : memref<1x256x8xf32, #tpu.memory_space<vmem>>, vector<1x256x8xf32>,
    %c0_17 = arith.constant 0 : index
    %c0_18 = arith.constant 0 : index
    %c0_19 = arith.constant 0 : index
    %31 = vector.load %arg7[%c0_17, %c0_18, %c0_19] : memref<1x256x8xf32, #tpu.memory_space<vmem>>, vector<1x256x8xf32>
    %32 = vector.shape_cast %31 : vector<1x256x8xf32> to vector<256x8xf32>
    %33 = vector.shape_cast %27 : vector<256x8xf32> to vector<1x256x8xf32>
    tpu.vector_store %arg7[%c0_17, %c0_18, %c0_19], %33 {strides = array<i32>} : memref<1x256x8xf32, #tpu.memory_space<vmem>>, vector<1x256x8xf32>,
    %cst_20 = arith.constant dense<0.000000e+00> : vector<8xf32>
    %34 = vector.multi_reduction <add>, %21, %cst_20 [0] : vector<256x8xf32> to vector<8xf32>
    %35 = vector.shape_cast %34 : vector<8xf32> to vector<1x8xf32>
    %36 = arith.mulf %21, %21 : vector<256x8xf32>
    %cst_21 = arith.constant dense<0.000000e+00> : vector<8xf32>
    %37 = vector.multi_reduction <add>, %36, %cst_21 [0] : vector<256x8xf32> to vector<8xf32>
    %38 = vector.shape_cast %37 : vector<8xf32> to vector<1x8xf32>
    %39 = tpu.concatenate %35, %38 in 0 : vector<1x8xf32>, vector<1x8xf32> -> vector<2x8xf32>
    %c0_22 = arith.constant 0 : index
    %c0_23 = arith.constant 0 : index
    %c0_24 = arith.constant 0 : index
    %40 = vector.load %arg8[%c0_22, %c0_23, %c0_24] : memref<1x2x8xf32, #tpu.memory_space<vmem>>, vector<1x2x8xf32>
    %41 = vector.shape_cast %40 : vector<1x2x8xf32> to vector<2x8xf32>
    %42 = vector.shape_cast %39 : vector<2x8xf32> to vector<1x2x8xf32>
    tpu.vector_store %arg8[%c0_22, %c0_23, %c0_24], %42 {strides = array<i32>} : memref<1x2x8xf32, #tpu.memory_space<vmem>>, vector<1x2x8xf32>,
    return
  }
  func.func @transform_0(%arg0: i32) -> (i32, i32, i32, i32) {
    %c0_i32 = arith.constant 0 : i32
    %c0_i32_0 = arith.constant 0 : i32
    %c0_i32_1 = arith.constant 0 : i32
    %c0_i32_2 = arith.constant 0 : i32
    return %arg0, %c0_i32, %c0_i32_0, %c0_i32_1 : i32, i32, i32, i32
  }
  func.func @transform_1(%arg0: i32) -> (i32, i32) {
    %c0_i32 = arith.constant 0 : i32
    %c0_i32_0 = arith.constant 0 : i32
    %c0_i32_1 = arith.constant 0 : i32
    return %c0_i32, %c0_i32_0 : i32, i32
  }
  func.func @transform_2(%arg0: i32) -> (i32, i32) {
    %c0_i32 = arith.constant 0 : i32
    %c0_i32_0 = arith.constant 0 : i32
    %c0_i32_1 = arith.constant 0 : i32
    return %c0_i32, %c0_i32_0 : i32, i32
  }
  func.func @transform_3(%arg0: i32) -> (i32, i32) {
    %c0_i32 = arith.constant 0 : i32
    %c0_i32_0 = arith.constant 0 : i32
    %c0_i32_1 = arith.constant 0 : i32
    return %c0_i32, %c0_i32_0 : i32, i32
  }
  func.func @transform_4(%arg0: i32) -> (i32, i32) {
    %c0_i32 = arith.constant 0 : i32
    %c0_i32_0 = arith.constant 0 : i32
    %c0_i32_1 = arith.constant 0 : i32
    return %c0_i32, %c0_i32_0 : i32, i32
  }
  func.func @transform_5(%arg0: i32) -> (i32, i32, i32) {
    %c0_i32 = arith.constant 0 : i32
    %c0_i32_0 = arith.constant 0 : i32
    %c0_i32_1 = arith.constant 0 : i32
    return %arg0, %c0_i32, %c0_i32_0 : i32, i32, i32
  }
  func.func @transform_6(%arg0: i32) -> (i32, i32, i32) {
    %c0_i32 = arith.constant 0 : i32
    %c0_i32_0 = arith.constant 0 : i32
    %c0_i32_1 = arith.constant 0 : i32
    return %arg0, %c0_i32, %c0_i32_0 : i32, i32, i32
  }
  func.func @transform_7(%arg0: i32) -> (i32, i32, i32) {
    %c0_i32 = arith.constant 0 : i32
    %c0_i32_0 = arith.constant 0 : i32
    %c0_i32_1 = arith.constant 0 : i32
    return %arg0, %c0_i32, %c0_i32_0 : i32, i32, i32
  }
}

module attributes {stable_mosaic.version = 11 : i64} {
  func.func @_k2_bn1_temb_conv2(%arg0: i32, %arg1: memref<1x256x8xf32, #tpu.memory_space<vmem>>, %arg2: memref<1x1x8xf32, #tpu.memory_space<vmem>>, %arg3: memref<2x8xf32, #tpu.memory_space<vmem>>, %arg4: memref<72x8xf32, #tpu.memory_space<vmem>>, %arg5: memref<1x8xf32, #tpu.memory_space<vmem>>, %arg6: memref<1x256x8xf32, #tpu.memory_space<vmem>>, %arg7: memref<1x2x8xf32, #tpu.memory_space<vmem>>) attributes {dimension_semantics = [#tpu.dimension_semantics<parallel>], iteration_bounds = array<i64: 2>, scalar_prefetch = 0 : i64, scratch_operands = 0 : i64, tpu.core_type = #tpu.core_type<tc>, window_params = [{transform_indices = @transform_0, window_bounds = array<i64: 1, 256, 8>}, {transform_indices = @transform_1, window_bounds = array<i64: 1, 1, 8>}, {pipeline_mode = #tpu.pipeline_mode<synchronous>, transform_indices = @transform_2, window_bounds = array<i64: 2, 8>}, {pipeline_mode = #tpu.pipeline_mode<synchronous>, transform_indices = @transform_3, window_bounds = array<i64: 72, 8>}, {pipeline_mode = #tpu.pipeline_mode<synchronous>, transform_indices = @transform_4, window_bounds = array<i64: 1, 8>}, {transform_indices = @transform_5, window_bounds = array<i64: 1, 256, 8>}, {transform_indices = @transform_6, window_bounds = array<i64: 1, 2, 8>}]} {
    %c0 = arith.constant 0 : index
    %c0_0 = arith.constant 0 : index
    %c0_1 = arith.constant 0 : index
    %0 = vector.load %arg1[%c0, %c0_0, %c0_1] : memref<1x256x8xf32, #tpu.memory_space<vmem>>, vector<1x256x8xf32>
    %1 = vector.shape_cast %0 : vector<1x256x8xf32> to vector<256x8xf32>
    %c0_2 = arith.constant 0 : index
    %c0_3 = arith.constant 0 : index
    %2 = vector.load %arg3[%c0_2, %c0_3] : memref<2x8xf32, #tpu.memory_space<vmem>>, vector<1x8xf32>
    %3 = vector.broadcast %2 : vector<1x8xf32> to vector<256x8xf32>
    %4 = arith.mulf %1, %3 : vector<256x8xf32>
    %c1 = arith.constant 1 : index
    %c0_4 = arith.constant 0 : index
    %5 = vector.load %arg3[%c1, %c0_4] : memref<2x8xf32, #tpu.memory_space<vmem>>, vector<1x8xf32>
    %6 = vector.broadcast %5 : vector<1x8xf32> to vector<256x8xf32>
    %7 = arith.addf %4, %6 : vector<256x8xf32>
    %cst = arith.constant 0.000000e+00 : f32
    %8 = vector.broadcast %cst : f32 to vector<256x8xf32>
    %9 = arith.maximumf %7, %8 : vector<256x8xf32>
    %c0_5 = arith.constant 0 : index
    %c0_6 = arith.constant 0 : index
    %c0_7 = arith.constant 0 : index
    %10 = vector.load %arg2[%c0_5, %c0_6, %c0_7] : memref<1x1x8xf32, #tpu.memory_space<vmem>>, vector<1x1x8xf32>
    %11 = vector.shape_cast %10 : vector<1x1x8xf32> to vector<1x8xf32>
    %12 = vector.broadcast %11 : vector<1x8xf32> to vector<256x8xf32>
    %13 = arith.addf %9, %12 : vector<256x8xf32>
    %14 = vector.shape_cast %13 : vector<256x8xf32> to vector<16x16x8xf32>
    %cst_8 = arith.constant 0.000000e+00 : f32
    %15 = vector.broadcast %cst_8 : f32 to vector<1x16x8xf32>
    %16 = tpu.concatenate %15, %14, %15 in 0 : vector<1x16x8xf32>, vector<16x16x8xf32>, vector<1x16x8xf32> -> vector<18x16x8xf32>
    %cst_9 = arith.constant 0.000000e+00 : f32
    %17 = vector.broadcast %cst_9 : f32 to vector<18x1x8xf32>
    %18 = tpu.concatenate %17, %16, %17 in 1 : vector<18x1x8xf32>, vector<18x16x8xf32>, vector<18x1x8xf32> -> vector<18x18x8xf32>
    %19 = vector.extract_strided_slice %18 {offsets = [0, 0, 0], sizes = [16, 16, 8], strides = [1, 1, 1]} : vector<18x18x8xf32> to vector<16x16x8xf32>
    %20 = vector.extract_strided_slice %18 {offsets = [0, 1, 0], sizes = [16, 16, 8], strides = [1, 1, 1]} : vector<18x18x8xf32> to vector<16x16x8xf32>
    %21 = vector.extract_strided_slice %18 {offsets = [0, 2, 0], sizes = [16, 16, 8], strides = [1, 1, 1]} : vector<18x18x8xf32> to vector<16x16x8xf32>
    %22 = vector.extract_strided_slice %18 {offsets = [1, 0, 0], sizes = [16, 16, 8], strides = [1, 1, 1]} : vector<18x18x8xf32> to vector<16x16x8xf32>
    %23 = vector.extract_strided_slice %18 {offsets = [1, 1, 0], sizes = [16, 16, 8], strides = [1, 1, 1]} : vector<18x18x8xf32> to vector<16x16x8xf32>
    %24 = vector.extract_strided_slice %18 {offsets = [1, 2, 0], sizes = [16, 16, 8], strides = [1, 1, 1]} : vector<18x18x8xf32> to vector<16x16x8xf32>
    %25 = vector.extract_strided_slice %18 {offsets = [2, 0, 0], sizes = [16, 16, 8], strides = [1, 1, 1]} : vector<18x18x8xf32> to vector<16x16x8xf32>
    %26 = vector.extract_strided_slice %18 {offsets = [2, 1, 0], sizes = [16, 16, 8], strides = [1, 1, 1]} : vector<18x18x8xf32> to vector<16x16x8xf32>
    %27 = vector.extract_strided_slice %18 {offsets = [2, 2, 0], sizes = [16, 16, 8], strides = [1, 1, 1]} : vector<18x18x8xf32> to vector<16x16x8xf32>
    %28 = tpu.concatenate %19, %20, %21, %22, %23, %24, %25, %26, %27 in 2 : vector<16x16x8xf32>, vector<16x16x8xf32>, vector<16x16x8xf32>, vector<16x16x8xf32>, vector<16x16x8xf32>, vector<16x16x8xf32>, vector<16x16x8xf32>, vector<16x16x8xf32>, vector<16x16x8xf32> -> vector<16x16x72xf32>
    %29 = vector.shape_cast %28 : vector<16x16x72xf32> to vector<256x72xf32>
    %c0_10 = arith.constant 0 : index
    %c0_11 = arith.constant 0 : index
    %30 = vector.load %arg4[%c0_10, %c0_11] : memref<72x8xf32, #tpu.memory_space<vmem>>, vector<72x8xf32>
    %cst_12 = arith.constant dense<0.000000e+00> : vector<256x8xf32>
    %31 = tpu.matmul %29, %30, %cst_12 {dimension_numbers = #tpu.dot_dimension_numbers<[1], [0], [0], [1], [0, 0, 1, 1], [], []>} : vector<256x72xf32>, vector<72x8xf32>, vector<256x8xf32> -> vector<256x8xf32>
    %c0_13 = arith.constant 0 : index
    %c0_14 = arith.constant 0 : index
    %32 = vector.load %arg5[%c0_13, %c0_14] : memref<1x8xf32, #tpu.memory_space<vmem>>, vector<1x8xf32>
    %33 = vector.broadcast %32 : vector<1x8xf32> to vector<256x8xf32>
    %34 = arith.addf %31, %33 : vector<256x8xf32>
    %c0_15 = arith.constant 0 : index
    %c0_16 = arith.constant 0 : index
    %c0_17 = arith.constant 0 : index
    %35 = vector.load %arg6[%c0_15, %c0_16, %c0_17] : memref<1x256x8xf32, #tpu.memory_space<vmem>>, vector<1x256x8xf32>
    %36 = vector.shape_cast %35 : vector<1x256x8xf32> to vector<256x8xf32>
    %37 = vector.shape_cast %34 : vector<256x8xf32> to vector<1x256x8xf32>
    tpu.vector_store %arg6[%c0_15, %c0_16, %c0_17], %37 {strides = array<i32>} : memref<1x256x8xf32, #tpu.memory_space<vmem>>, vector<1x256x8xf32>,
    %cst_18 = arith.constant dense<0.000000e+00> : vector<8xf32>
    %38 = vector.multi_reduction <add>, %34, %cst_18 [0] : vector<256x8xf32> to vector<8xf32>
    %39 = vector.shape_cast %38 : vector<8xf32> to vector<1x8xf32>
    %40 = arith.mulf %34, %34 : vector<256x8xf32>
    %cst_19 = arith.constant dense<0.000000e+00> : vector<8xf32>
    %41 = vector.multi_reduction <add>, %40, %cst_19 [0] : vector<256x8xf32> to vector<8xf32>
    %42 = vector.shape_cast %41 : vector<8xf32> to vector<1x8xf32>
    %43 = tpu.concatenate %39, %42 in 0 : vector<1x8xf32>, vector<1x8xf32> -> vector<2x8xf32>
    %c0_20 = arith.constant 0 : index
    %c0_21 = arith.constant 0 : index
    %c0_22 = arith.constant 0 : index
    %44 = vector.load %arg7[%c0_20, %c0_21, %c0_22] : memref<1x2x8xf32, #tpu.memory_space<vmem>>, vector<1x2x8xf32>
    %45 = vector.shape_cast %44 : vector<1x2x8xf32> to vector<2x8xf32>
    %46 = vector.shape_cast %43 : vector<2x8xf32> to vector<1x2x8xf32>
    tpu.vector_store %arg7[%c0_20, %c0_21, %c0_22], %46 {strides = array<i32>} : memref<1x2x8xf32, #tpu.memory_space<vmem>>, vector<1x2x8xf32>,
    return
  }
  func.func @transform_0(%arg0: i32) -> (i32, i32, i32) {
    %c0_i32 = arith.constant 0 : i32
    %c0_i32_0 = arith.constant 0 : i32
    %c0_i32_1 = arith.constant 0 : i32
    return %arg0, %c0_i32, %c0_i32_0 : i32, i32, i32
  }
  func.func @transform_1(%arg0: i32) -> (i32, i32, i32) {
    %c0_i32 = arith.constant 0 : i32
    %c0_i32_0 = arith.constant 0 : i32
    %c0_i32_1 = arith.constant 0 : i32
    return %arg0, %c0_i32, %c0_i32_0 : i32, i32, i32
  }
  func.func @transform_2(%arg0: i32) -> (i32, i32) {
    %c0_i32 = arith.constant 0 : i32
    %c0_i32_0 = arith.constant 0 : i32
    %c0_i32_1 = arith.constant 0 : i32
    return %c0_i32, %c0_i32_0 : i32, i32
  }
  func.func @transform_3(%arg0: i32) -> (i32, i32) {
    %c0_i32 = arith.constant 0 : i32
    %c0_i32_0 = arith.constant 0 : i32
    %c0_i32_1 = arith.constant 0 : i32
    return %c0_i32, %c0_i32_0 : i32, i32
  }
  func.func @transform_4(%arg0: i32) -> (i32, i32) {
    %c0_i32 = arith.constant 0 : i32
    %c0_i32_0 = arith.constant 0 : i32
    %c0_i32_1 = arith.constant 0 : i32
    return %c0_i32, %c0_i32_0 : i32, i32
  }
  func.func @transform_5(%arg0: i32) -> (i32, i32, i32) {
    %c0_i32 = arith.constant 0 : i32
    %c0_i32_0 = arith.constant 0 : i32
    %c0_i32_1 = arith.constant 0 : i32
    return %arg0, %c0_i32, %c0_i32_0 : i32, i32, i32
  }
  func.func @transform_6(%arg0: i32) -> (i32, i32, i32) {
    %c0_i32 = arith.constant 0 : i32
    %c0_i32_0 = arith.constant 0 : i32
    %c0_i32_1 = arith.constant 0 : i32
    return %arg0, %c0_i32, %c0_i32_0 : i32, i32, i32
  }
}

</mosaic_0001>

<bundles_post_ra>
// kernel: residual_block.2
= control target key start
LH: loop header
LB: loop body
LE: loop exit
PB: predicated region body
PF: predicated region fallthrough
CT: control target
= control target key end

     0   :  { %s3133_s24 = smov 0   ;;  %s5088_s0 = inlined_call_operand.vmem [shape: f32[2,16,16,4], index: 0, kind: input, shape index: {}]   ;;  %s5089_s1 = inlined_call_operand.vmem [shape: f32[36,8], index: 1, kind: input, shape index: {}]   ;;  %s5090_s2 = inlined_call_operand.vmem [shape: f32[1,8], index: 2, kind: input, shape index: {}]   ;;  %s5091_s3 = inlined_call_operand.vmem [shape: f32[4,8], index: 3, kind: input, shape index: {}]   ;;  %s5092_s4 = inlined_call_operand.vmem [shape: f32[1,8], index: 4, kind: input, shape index: {}]   ;;  %s5093_s5 = inlined_call_operand.vmem [shape: f32[2,256,8], index: 5, kind: output, shape index: {0}]   ;;  %s5094_s6 = inlined_call_operand.vmem [shape: f32[2,256,8], index: 6, kind: output, shape index: {1}]   ;;  %s5095_s7 = inlined_call_operand.vmem [shape: f32[2,2,8], index: 7, kind: output, shape index: {2}]  }
   0x1 LB: > { %s2733_s25 = sadd.s32 4294967295, %s3082_s24   ;;  %p2737_p0 = scmp.ge.s32.totalorder %s3082_s24, 1  ;;  %s3082_s24 = sphi %s3133_s24, %s18_s24  }
   0x2   : > { %p242_p1 = scmp.lt.s32.totalorder %s3082_s24, 3 }
   0x4   : > { %p243_p2 = pnand %p2737_p0, %p242_p1 }
   0x6   : > { %246 = sbr.rel (%p243_p2) target bundleno = 877 (0x36d), region = 40 }
   0xd   : > { %vm367_vm0 = vcmask 1040384   ;;  %p283_p3 = scmp.lt.s32.totalorder %s2733_s25, 1  ;;  %v3084_v0 = vmov 0.0   ;;  %vm533_vm1 = vcmask 1046528   ;;  %vm1475_vm2 = vcmask 31744   ;;  %s3085_s30 = smov 4  }
   0xe   : > { %v3141_v1 = vrot.slane %v3084_v0, 7  ;;  %vm710_vm3 = vcmask 1045504   ;;  %s3086_s8 = smov 8   ;;  %s3087_s9 = smov 12   ;;  %vm1848_vm4 = vcmask 1043456   ;;  %vm1541_vm5 = vcmask 97280  }
   0xf   : > { %s5411_s25 = smov (!%p283_p3, %s2733_s25), 1  ;;  %s3088_s14 = smov 16   ;;  %vm1508_vm6 = vcmask 64512   ;;  %vm1574_vm7 = vcmask 130048   ;;  %vm1607_vm8 = vcmask 162816   ;;  %vm1640_vm9 = vcmask 195584  }
  0x10   : > { %5202 = vst [vmem:[#allocation2_spill] sm:$0xff] %v3141_v1  ;;  %v3147_v2 = vsel %vm367_vm0, 0.0, %v3141_v1  ;;  %v3151_v3 = vsel %vm367_vm0, %v3141_v1, 0.0  ;;  %v535_v4 = vrot.slane %v3141_v1, 1  ;;  %s3157_s26 = sshll.u32 %s5411_s25, 8  ;;  %s3089_s15 = smov 20  }
  0x11   : > { %5203 = vst [vmem:[#allocation3_spill] sm:$0xff] %v3147_v2  ;;  %v534_v5 = vrot.slane %v3147_v2, 1  ;;  %v537_v6 = vrot.slane %v3151_v3, 1  ;;  %s3163_s29 = scalar_lea.vmem %s5088_s0, %s3157_s26  ;;  %s3090_s20 = smov 24   ;;  %vm1673_vm10 = vcmask 228352   ;;  %vm1706_vm11 = vcmask 261120  }
  0x12   : > { %v302_v9 = vld [vmem:[%s3163_s29] sm:$0xff]  ;;  %v303_v10 = vld [vmem:[%s3163_s29 + $0x8] sm:$0xff]  ;;  %v304_v11 = vld [vmem:[%s3163_s29 + $0x10] sm:$0xff]  ;;  %s3091_s23 = smov 28   ;;  %s3092_s27 = smov 32   ;;  %vm1751_vm12 = vcmask 293888  }
  0x13   : > { %v536_v7 = vsel %vm533_vm1, %v534_v5, %v535_v4  ;;  %v538_v8 = vsel %vm533_vm1, %v535_v4, %v537_v6  ;;  %v370_v13 = vrot.slane %v302_v9, 7  ;;  %v371_v14 = vrot.slane %v303_v10, 7  ;;  %v305_v15 = vld [vmem:[%s3163_s29 + $0x18] sm:$0xff]  ;;  %v306_v16 = vld [vmem:[%s3163_s29 + $0x20] sm:$0xff]  ;;  %v307_v17 = vld [vmem:[%s3163_s29 + $0x28] sm:$0xff]  ;;  %2948 = vmatprep.mubr.msk.f32.mxu1 %vm1475_vm2, %v302_v9  ;;  %s4649_s12 = scalar_lea.vmem %s5093_s5, %s3157_s26  ;;  %s4900_s16 = scalar_lea.vmem %s5094_s6, %s3157_s26 }
  0x14   : > { %v3170_v12 = vpack.i.bf16 %v538_v8, %v536_v7  ;;  %v373_v18 = vrot.slane %v304_v11, 7  ;;  %v374_v19 = vrot.slane %v305_v15, 7  ;;  %v376_v20 = vrot.slane %v306_v16, 7  ;;  %v308_v22 = vld [vmem:[%s3163_s29 + $0x30] sm:$0xff]  ;;  %v309_v31 = vld [vmem:[%s3163_s29 + $0x38] sm:$0xff]  ;;  %v310_v40 = vld [vmem:[%s3163_s29 + $0x40] sm:$0xff] }
  0x15   : > { %v377_v21 = vrot.slane %v307_v17, 7  ;;  %v3180_v23 = vsel %vm367_vm0, %v370_v13, %v371_v14  ;;  %v3183_v24 = vsel %vm367_vm0, %v371_v14, 0.0  ;;  %v3186_v25 = vsel %vm367_vm0, 0.0, %v370_v13  ;;  %v311_v49 = vld [vmem:[%s3163_s29 + $0x48] sm:$0xff]  ;;  %v312_v50 = vld [vmem:[%s3163_s29 + $0x50] sm:$0xff]  ;;  %v313_v55 = vld [vmem:[%s3163_s29 + $0x58] sm:$0xff] }
  0x16   : > { %5204 = vst [vmem:[#allocation4_spill] sm:$0xff] %v3170_v12  ;;  %3022 = vrot.lane.b32.xlu0 %v3170_v12, %s3085_s30  ;;  %v379_v26 = vrot.slane %v308_v22, 7  ;;  %v540_v27 = vrot.slane %v3180_v23, 1  ;;  %v542_v28 = vrot.slane %v3183_v24, 1  ;;  %v539_v29 = vrot.slane %v3186_v25, 1  ;;  %v314_v4 = vld [vmem:[%s3163_s29 + $0x60] sm:$0xff] }
  0x17   : > { %v3192_v30 = vsel %vm367_vm0, %v373_v18, %v374_v19  ;;  %v3196_v32 = vsel %vm367_vm0, 0.0, %v373_v18  ;;  %v3200_v34 = vsel %vm367_vm0, %v374_v19, 0.0  ;;  %v3203_v35 = vsel %vm367_vm0, %v376_v20, %v377_v21  ;;  %v315_v5 = vld [vmem:[%s3163_s29 + $0x68] sm:$0xff]  ;;  %v316_v19 = vld [vmem:[%s3163_s29 + $0x70] sm:$0xff]  ;;  %s2744_s18 = sshll.u32 %s5411_s25, 1 }
  0x18   : > { %v545_v33 = vrot.slane %v3192_v30, 1  ;;  %v3206_v36 = vsel %vm533_vm1, %v540_v27, %v542_v28  ;;  %v3209_v37 = vsel %vm533_vm1, %v539_v29, %v540_v27  ;;  %v544_v38 = vrot.slane %v3196_v32, 1  ;;  %v324_v12 = vld [vmem:[%s3163_s29 + $0xb0] sm:$0xff]  ;;  %s301_s21 = scalar_lea.vmem %s5095_s7, %s2744_s18 }
  0x19   : > { %v547_v39 = vrot.slane %v3200_v34, 1  ;;  %620 = vrot.lane.b32.xlu1 %v3206_v36, %s3085_s30  ;;  %v3219_v41 = vsel %vm367_vm0, 0.0, %v376_v20  ;;  %v550_v42 = vrot.slane %v3203_v35, 1  ;;  %v3223_v43 = vsel %vm367_vm0, %v377_v21, 0.0  ;;  %v317_v20 = vld [vmem:[%s3163_s29 + $0x78] sm:$0xff] }
  0x1a   : > { %618 = vrot.lane.b32.xlu0 %v3209_v37, %s3085_s30  ;;  %v380_v44 = vrot.slane %v309_v31, 7  ;;  %v3226_v45 = vsel %vm533_vm1, %v544_v38, %v545_v33  ;;  %v549_v47 = vrot.slane %v3219_v41, 1  ;;  %v552_v48 = vrot.slane %v3223_v43, 1 }
  0x1b   : > { %v3229_v46 = vsel %vm533_vm1, %v545_v33, %v547_v39  ;;  %v3239_v52 = vsel %vm367_vm0, 0.0, %v379_v26  ;;  %v382_v54 = vrot.slane %v310_v40, 7  ;;  %v383_v58 = vrot.slane %v311_v49, 7  ;;  %v318_v39 = vld [vmem:[%s3163_s29 + $0x80] sm:$0xff]  ;;  %v319_v40 = vld [vmem:[%s3163_s29 + $0x88] sm:$0xff] }
  0x1c   : > { %v3236_v51 = vsel %vm367_vm0, %v379_v26, %v380_v44  ;;  %v3242_v53 = vsel %vm367_vm0, %v380_v44, 0.0  ;;  %v3246_v56 = vsel %vm533_vm1, %v549_v47, %v550_v42  ;;  %v3253_v57 = vsel %vm533_vm1, %v550_v42, %v552_v48 }
  0x1d   : > { %622 = vrot.lane.b32.xlu1 %v3226_v45, %s3085_s30  ;;  %v3256_v59 = vsel %vm367_vm0, 0.0, %v382_v54  ;;  %v385_v60 = vrot.slane %v312_v50, 7  ;;  %v554_v61 = vrot.slane %v3239_v52, 1  ;;  %v555_v62 = vrot.slane %v3236_v51, 1 }
  0x1e   : > { %624 = vrot.lane.b32.xlu0 %v3229_v46, %s3085_s30  ;;  %5205 = vst [vmem:[#allocation5_spill] sm:$0xff] %v3256_v59  ;;  %v557_v63 = vrot.slane %v3242_v53, 1  ;;  %v386_v0 = vrot.slane %v313_v55, 7  ;;  %v3264_v6 = vsel %vm367_vm0, %v382_v54, %v383_v58  ;;  %v3267_v7 = vsel %vm367_vm0, %v383_v58, 0.0  ;;  %v320_v54 = vld [vmem:[%s3163_s29 + $0x90] sm:$0xff] }
  0x1f   : > { %5206 = vst [vmem:[#allocation6_spill] sm:$0xff] %v3264_v6  ;;  %v559_v8 = vrot.slane %v3256_v59, 1  ;;  %v560_v9 = vrot.slane %v3264_v6, 1  ;;  %v3276_v10 = vsel %vm367_vm0, 0.0, %v385_v60  ;;  %v388_v11 = vrot.slane %v314_v4, 7 }
  0x20   : > { %5207 = vst [vmem:[#allocation7_spill] sm:$0xff] %v3276_v10  ;;  %v389_v13 = vrot.slane %v315_v5, 7  ;;  %v3279_v14 = vsel %vm533_vm1, %v554_v61, %v555_v62  ;;  %v3282_v15 = vsel %vm533_vm1, %v555_v62, %v557_v63  ;;  %v562_v16 = vrot.slane %v3267_v7, 1  ;;  %v321_v63 = vld [vmem:[%s3163_s29 + $0x98] sm:$0xff] }
  0x21   : > { %626 = vrot.lane.b32.xlu1 %v3246_v56, %s3085_s30  ;;  %5208 = vst [vmem:[#allocation8_spill] sm:$0xff] %v3282_v15  ;;  %v3286_v17 = vsel %vm367_vm0, %v385_v60, %v386_v0  ;;  %v3289_v18 = vsel %vm367_vm0, %v386_v0, 0.0  ;;  %v564_v21 = vrot.slane %v3276_v10, 1  ;;  %v3299_v22 = vsel %vm533_vm1, %v559_v8, %v560_v9 }
  0x22   : > { %628 = vrot.lane.b32.xlu0 %v3253_v57, %s3085_s30  ;;  %5209 = vst [vmem:[#allocation9_spill] sm:$0xff] %v3286_v17  ;;  %5210 = vst [vmem:[#allocation10_spill] sm:$0xff] %v3299_v22  ;;  %v565_v26 = vrot.slane %v3286_v17, 1  ;;  %v3303_v27 = vsel %vm367_vm0, %v388_v11, %v389_v13  ;;  %v3306_v28 = vsel %vm367_vm0, 0.0, %v388_v11  ;;  %v3309_v29 = vsel %vm533_vm1, %v560_v9, %v562_v16 }
  0x23   : > { %5211 = vst [vmem:[#allocation11_spill] sm:$0xff] %v3303_v27  ;;  %5212 = vst [vmem:[#allocation12_spill] sm:$0xff] %v3306_v28  ;;  %v567_v31 = vrot.slane %v3289_v18, 1  ;;  %v391_v33 = vrot.slane %v316_v19, 7  ;;  %v392_v38 = vrot.slane %v317_v20, 7  ;;  %v3315_v42 = vsel %vm367_vm0, %v389_v13, 0.0 }
  0x24   : > { %5213 = vst [vmem:[#allocation13_spill] sm:$0xff] %v3309_v29  ;;  %v569_v44 = vrot.slane %v3306_v28, 1  ;;  %v570_v47 = vrot.slane %v3303_v27, 1  ;;  %v3324_v48 = vsel %vm533_vm1, %v564_v21, %v565_v26  ;;  %v394_v49 = vrot.slane %v318_v39, 7  ;;  %v322_v21 = vld [vmem:[%s3163_s29 + $0xa0] sm:$0xff] }
  0x25   : > { %630 = vrot.lane.b32.xlu1 %v3279_v14, %s3085_s30  ;;  %5214 = vst [vmem:[#allocation14_spill] sm:$0xff] %v3324_v48  ;;  %v395_v50 = vrot.slane %v319_v40, 7  ;;  %v3328_v55 = vsel %vm533_vm1, %v565_v26, %v567_v31  ;;  %v572_v58 = vrot.slane %v3315_v42, 1  ;;  %v3332_v60 = vsel %vm367_vm0, %v391_v33, %v392_v38  ;;  %v323_v26 = vld [vmem:[%s3163_s29 + $0xa8] sm:$0xff] }
  0x26   : > { %632 = vrot.lane.b32.xlu0 %v3282_v15, %s3085_s30  ;;  %5215 = vst [vmem:[#allocation15_spill] sm:$0xff] %v3328_v55  ;;  %5216 = vst [vmem:[#allocation16_spill] sm:$0xff] %v3332_v60  ;;  %v3335_v61 = vsel %vm367_vm0, 0.0, %v391_v33  ;;  %v3338_v62 = vsel %vm367_vm0, %v392_v38, 0.0  ;;  %v3342_v0 = vsel %vm533_vm1, %v569_v44, %v570_v47  ;;  %v397_v4 = vrot.slane %v320_v54, 7 }
  0x27   : > { %5217 = vst [vmem:[#allocation17_spill] sm:$0xff] %v3342_v0  ;;  %v574_v5 = vrot.slane %v3335_v61, 1  ;;  %v575_v8 = vrot.slane %v3332_v60, 1  ;;  %v3351_v9 = vsel %vm367_vm0, %v394_v49, %v395_v50  ;;  %v3354_v11 = vsel %vm367_vm0, 0.0, %v394_v49 }
  0x28   : > { %5218 = vst [vmem:[#allocation18_spill] sm:$0xff] %v3351_v9  ;;  %v3357_v13 = vsel %vm533_vm1, %v570_v47, %v572_v58  ;;  %v577_v16 = vrot.slane %v3338_v62, 1  ;;  %v3361_v19 = vsel %vm367_vm0, %v395_v50, 0.0  ;;  %v398_v20 = vrot.slane %v321_v63, 7 }
  0x29   : > { %634 = vrot.lane.b32.xlu1 %v3299_v22, %s3085_s30  ;;  %5219 = vst [vmem:[#allocation19_spill] sm:$0xff] %v3357_v13  ;;  %v712_v31 = vrot.slane %v3141_v1, 2  ;;  %v714_v33 = vrot.slane %v3151_v3, 2  ;;  %v579_v38 = vrot.slane %v3354_v11, 1  ;;  %v580_v39 = vrot.slane %v3351_v9, 1 }
  0x2a   : > { %636 = vrot.lane.b32.xlu0 %v3309_v29, %s3085_s30  ;;  %v711_v40 = vrot.slane %v3147_v2, 2  ;;  %v3375_v44 = vsel %vm533_vm1, %v574_v5, %v575_v8  ;;  %v582_v47 = vrot.slane %v3361_v19, 1  ;;  %v3379_v49 = vsel %vm367_vm0, 0.0, %v397_v4  ;;  %v325_v5 = vld [vmem:[%s3163_s29 + $0xb8] sm:$0xff]  ;;  %v331_v29 = vld [vmem:[%s3163_s29 + $0xe8] sm:$0xff] }
  0x2b   : > { %5220 = vst [vmem:[#allocation20_spill] sm:$0xff] %v3375_v44  ;;  %v400_v3 = vrot.slane %v322_v21, 7  ;;  %v3382_v50 = vsel %vm533_vm1, %v575_v8, %v577_v16  ;;  %v3385_v54 = vsel %vm367_vm0, %v397_v4, %v398_v20  ;;  %v3388_v58 = vsel %vm367_vm0, %v398_v20, 0.0 }
  0x2c   : > { %5221 = vst [vmem:[#allocation21_spill] sm:$0xff] %v3382_v50  ;;  %5222 = vst [vmem:[#allocation22_spill] sm:$0xff] %v3385_v54  ;;  %v401_v63 = vrot.slane %v323_v26, 7  ;;  %v3393_v1 = vsel %vm533_vm1, %v579_v38, %v580_v39  ;;  %v584_v2 = vrot.slane %v3379_v49, 1  ;;  %v713_v21 = vsel %vm710_vm3, %v711_v40, %v712_v31 }
  0x2d   : > { %638 = vrot.lane.b32.xlu1 %v3324_v48, %s3085_s30  ;;  %5223 = vst [vmem:[#allocation23_spill] sm:$0xff] %v3393_v1  ;;  %v715_v8 = vsel %vm710_vm3, %v712_v31, %v714_v33  ;;  %v3403_v4 = vsel %vm533_vm1, %v580_v39, %v582_v47  ;;  %v585_v16 = vrot.slane %v3385_v54, 1  ;;  %v587_v20 = vrot.slane %v3388_v58, 1  ;;  %v330_v48 = vld [vmem:[%s3163_s29 + $0xe0] sm:$0xff] }
  0x2e   : > { %640 = vrot.lane.b32.xlu0 %v3328_v55, %s3085_s30  ;;  %5224 = vst [vmem:[#allocation24_spill] sm:$0xff] %v3403_v4  ;;  %v3408_v26 = vsel %vm367_vm0, 0.0, %v400_v3  ;;  %v3411_v38 = vsel %vm367_vm0, %v400_v3, %v401_v63  ;;  %v3414_v31 = vsel %vm367_vm0, %v401_v63, 0.0  ;;  %v403_v33 = vrot.slane %v324_v12, 7 }
  0x2f   : > { %5225 = vst [vmem:[#allocation25_spill] sm:$0xff] %v3411_v38  ;;  %v404_v40 = vrot.slane %v325_v5, 7  ;;  %v3417_v39 = vpack.i.bf16 %v715_v8, %v713_v21  ;;  %v589_v47 = vrot.slane %v3408_v26, 1  ;;  %v3426_v3 = vsel %vm533_vm1, %v584_v2, %v585_v16 }
  0x30   : > { %5227 = vst [vmem:[#allocation27_spill] sm:$0xff] %v3426_v3  ;;  %v3429_v12 = vsel %vm533_vm1, %v585_v16, %v587_v20  ;;  %v590_v63 = vrot.slane %v3411_v38, 1  ;;  %v592_v5 = vrot.slane %v3414_v31, 1  ;;  %v3437_v8 = vsel %vm367_vm0, 0.0, %v403_v33  ;;  %v329_v16 = vld [vmem:[%s3163_s29 + $0xd8] sm:$0xff] }
  0x31   : > { %642 = vrot.lane.b32.xlu1 %v3342_v0, %s3085_s30  ;;  %5226 = vst [vmem:[#allocation26_spill] sm:$0xff] %v3417_v39  ;;  %5228 = vst [vmem:[#allocation28_spill] sm:$0xff] %v3429_v12  ;;  %v3434_v21 = vsel %vm367_vm0, %v403_v33, %v404_v40  ;;  %v594_v33 = vrot.slane %v3437_v8, 1  ;;  %vm2612_vm13 = vcmask 58368  }
  0x32   : > { %644 = vrot.lane.b32.xlu0 %v3357_v13, %s3085_s30  ;;  %5229 = vst [vmem:[#allocation29_spill] sm:$0xff] %v3434_v21  ;;  %5230 = vst [vmem:[#allocation30_spill] sm:$0xff] %v3437_v8  ;;  %v328_v13 = vld [vmem:[%s3163_s29 + $0xd0] sm:$0xff]  ;;  %v3449_v20 = vsel %vm533_vm1, %v589_v47, %v590_v63  ;;  %v595_v0 = vrot.slane %v3434_v21, 1 }
  0x33   : > { %5231 = vst [vmem:[#allocation31_spill] sm:$0xff] %v3449_v20  ;;  %v409_v55 = vrot.slane %v328_v13, 7 }
  0x35   : > { %646 = vrot.lane.b32.xlu1 %v3375_v44, %s3085_s30  ;;  %v327_v44 = vld [vmem:[%s3163_s29 + $0xc8] sm:$0xff] }
  0x36   : > { %648 = vrot.lane.b32.xlu0 %v3382_v50, %s3085_s30  ;;  %v326_v50 = vld [vmem:[%s3163_s29 + $0xc0] sm:$0xff]  ;;  %v407_v2 = vrot.slane %v327_v44, 7  ;;  %v3455_v44 = vsel %vm533_vm1, %v590_v63, %v592_v5  ;;  %v3473_v63 = vsel %vm533_vm1, %v594_v33, %v595_v0  ;;  %v413_v33 = vrot.slane %v331_v29, 7 }
  0x37   : > { %5232 = vst [vmem:[#allocation32_spill] sm:$0xff] %v3455_v44  ;;  %5235 = vst [vmem:[#allocation35_spill] sm:$0xff] %v3473_v63 }
  0x38   : > { %v3465_v47 = vsel %vm367_vm0, %v407_v2, 0.0 }
  0x39   : > { %650 = vrot.lane.b32.xlu1 %v3393_v1, %s3085_s30  ;;  %v3440_v1 = vsel %vm367_vm0, %v404_v40, 0.0 }
  0x3a   : > { %652 = vrot.lane.b32.xlu0 %v3403_v4, %s3085_s30  ;;  %v406_v4 = vrot.slane %v326_v50, 7  ;;  %v597_v40 = vrot.slane %v3440_v1, 1 }
  0x3c   : > { %v3458_v50 = vsel %vm367_vm0, 0.0, %v406_v4  ;;  %v3476_v13 = vsel %vm533_vm1, %v595_v0, %v597_v40 }
  0x3d   : > { %654 = vrot.lane.b32.xlu1 %v3426_v3, %s3085_s30  ;;  %5233 = vst [vmem:[#allocation33_spill] sm:$0xff] %v3458_v50  ;;  %v410_v3 = vrot.slane %v329_v16, 7  ;;  %5236 = vst [vmem:[#allocation36_spill] sm:$0xff] %v3476_v13  ;;  %v599_v5 = vrot.slane %v3458_v50, 1 }
  0x3e   : > { %656 = vrot.lane.b32.xlu0 %v3429_v12, %s3085_s30  ;;  %v3462_v12 = vsel %vm367_vm0, %v406_v4, %v407_v2  ;;  %v412_v4 = vrot.slane %v330_v48, 7  ;;  %v602_v2 = vrot.slane %v3465_v47, 1 }
  0x3f   : > { %5234 = vst [vmem:[#allocation34_spill] sm:$0xff] %v3462_v12  ;;  %v600_v16 = vrot.slane %v3462_v12, 1  ;;  %v3482_v22 = vsel %vm367_vm0, %v409_v55, %v410_v3 }
  0x40   : > { %5237 = vst [vmem:[#allocation37_spill] sm:$0xff] %v3482_v22  ;;  %v605_v0 = vrot.slane %v3482_v22, 1  ;;  %v3504_v29 = vsel %vm367_vm0, 0.0, %v412_v4 }
  0x41   : > { %658 = vrot.lane.b32.xlu1 %v3449_v20, %s3085_s30  ;;  %v3485_v20 = vsel %vm367_vm0, 0.0, %v409_v55  ;;  %v3497_v40 = vsel %vm533_vm1, %v599_v5, %v600_v16  ;;  %v3500_v55 = vsel %vm533_vm1, %v600_v16, %v602_v2  ;;  %5241 = vst [vmem:[#allocation41_spill] sm:$0xff] %v3504_v29  ;;  %v609_v5 = vrot.slane %v3504_v29, 1 }
  0x42   : > { %660 = vrot.lane.b32.xlu0 %v3455_v44, %s3085_s30  ;;  %5238 = vst [vmem:[#allocation38_spill] sm:$0xff] %v3485_v20  ;;  %v3488_v44 = vsel %vm367_vm0, %v410_v3, 0.0  ;;  %v604_v48 = vrot.slane %v3485_v20, 1  ;;  %5239 = vst [vmem:[#allocation39_spill] sm:$0xff] %v3497_v40 }
  0x43   : > { %5240 = vst [vmem:[#allocation40_spill] sm:$0xff] %v3500_v55  ;;  %v607_v3 = vrot.slane %v3488_v44, 1 }
  0x44   : > { %v3518_v16 = vsel %vm533_vm1, %v604_v48, %v605_v0  ;;  %v716_v48 = vrot.slane %v3186_v25, 2 }
  0x45   : > { %662 = vrot.lane.b32.xlu1 %v3473_v63, %s3085_s30  ;;  %v3507_v63 = vsel %vm367_vm0, %v412_v4, %v413_v33  ;;  %5243 = vst [vmem:[#allocation43_spill] sm:$0xff] %v3518_v16  ;;  %v3521_v2 = vsel %vm533_vm1, %v605_v0, %v607_v3  ;;  %v717_v0 = vrot.slane %v3180_v23, 2 }
  0x46   : > { %664 = vrot.lane.b32.xlu0 %v3476_v13, %s3085_s30  ;;  %5242 = vst [vmem:[#allocation42_spill] sm:$0xff] %v3507_v63  ;;  %v3510_v13 = vsel %vm367_vm0, %v413_v33, 0.0  ;;  %5244 = vst [vmem:[#allocation44_spill] sm:$0xff] %v3521_v2  ;;  %v610_v4 = vrot.slane %v3507_v63, 1 }
  0x47   : > { %v612_v15 = vrot.slane %v3510_v13, 1  ;;  %v3542_v3 = vsel %vm710_vm3, %v716_v48, %v717_v0 }
  0x48   : > { %v3530_v33 = vsel %vm533_vm1, %v609_v5, %v610_v4  ;;  %v721_v5 = vrot.slane %v3196_v32, 2 }
  0x49   : > { %666 = vrot.lane.b32.xlu1 %v3497_v40, %s3085_s30  ;;  %5245 = vst [vmem:[#allocation45_spill] sm:$0xff] %v3530_v33  ;;  %v739_v40 = vrot.slane %v3267_v7, 2 }
  0x4a   : > { %668 = vrot.lane.b32.xlu0 %v3500_v55, %s3085_s30  ;;  %v3533_v55 = vsel %vm533_vm1, %v610_v4, %v612_v15  ;;  %v722_v15 = vrot.slane %v3192_v30, 2  ;;  %v724_v4 = vrot.slane %v3200_v34, 2 }
  0x4b   : > { %5246 = vst [vmem:[#allocation46_spill] sm:$0xff] %v3533_v55 }
  0x4c   : > { %v3556_v48 = vsel %vm710_vm3, %v721_v5, %v722_v15  ;;  %v732_v5 = vrot.slane %v3236_v51, 2 }
  0x4d   : > { %670 = vrot.lane.b32.xlu1 %v3518_v16, %s3085_s30  ;;  %v734_v16 = vrot.slane %v3242_v53, 2 }
  0x4e   : > { %672 = vrot.lane.b32.xlu0 %v3521_v2, %s3085_s30  ;;  %v719_v2 = vrot.slane %v3183_v24, 2  ;;  %v726_v24 = vrot.slane %v3219_v41, 2 }
  0x4f   : > { %v3592_v53 = vsel %vm710_vm3, %v732_v5, %v734_v16 }
  0x51   : > { %674 = vrot.lane.b32.xlu1 %v3530_v33, %s3085_s30  ;;  %v727_v33 = vrot.slane %v3203_v35, 2 }
  0x52   : > { %676 = vrot.lane.b32.xlu0 %v3533_v55, %s3085_s30  ;;  %v3553_v55 = vsel %vm710_vm3, %v717_v0, %v719_v2  ;;  %v729_v2 = vrot.slane %v3223_v43, 2  ;;  %v731_v0 = vrot.slane %v3239_v52, 2  ;;  %v736_v43 = vrot.slane %v3256_v59, 2 }
  0x53   : > { %v3568_v34 = vsel %vm710_vm3, %v726_v24, %v727_v33  ;;  %v737_v24 = vrot.slane %v3264_v6, 2 }
  0x55   : > { %3027 = vrot.lane.b32.xlu1 %v3417_v39, %s3086_s8  ;;  %v3565_v39 = vsel %vm710_vm3, %v722_v15, %v724_v4  ;;  %v3579_v15 = vsel %vm710_vm3, %v727_v33, %v729_v2  ;;  %v3582_v4 = vsel %vm710_vm3, %v731_v0, %v732_v5  ;;  %v3595_v33 = vsel %vm710_vm3, %v736_v43, %v737_v24 }
  0x56   : > { %795 = vrot.lane.b32.xlu0 %v3542_v3, %s3086_s8  ;;  %5247 = vst [vmem:[#allocation47_spill] sm:$0xff] %v3582_v4  ;;  %5248 = vst [vmem:[#allocation48_spill] sm:$0xff] %v3595_v33  ;;  %v741_v2 = vrot.slane %v3276_v10, 2  ;;  %v742_v0 = vrot.slane %v3286_v17, 2  ;;  %v3605_v7 = vsel %vm710_vm3, %v737_v24, %v739_v40  ;;  %v746_v5 = vrot.slane %v3306_v28, 2 }
  0x57   : > { %v747_v43 = vrot.slane %v3303_v27, 2  ;;  %v749_v40 = vrot.slane %v3315_v42, 2  ;;  %v751_v24 = vrot.slane %v3335_v61, 2  ;;  %v754_v27 = vrot.slane %v3338_v62, 2 }
  0x58   : > { %v3608_v16 = vsel %vm710_vm3, %v741_v2, %v742_v0  ;;  %v752_v2 = vrot.slane %v3332_v60, 2  ;;  %v756_v42 = vrot.slane %v3354_v11, 2  ;;  %v759_v60 = vrot.slane %v3361_v19, 2 }
  0x59   : > { %797 = vrot.lane.b32.xlu1 %v3553_v55, %s3086_s8 }
  0x5a   : > { %799 = vrot.lane.b32.xlu0 %v3556_v48, %s3086_s8  ;;  %v3644_v62 = vsel %vm710_vm3, %v752_v2, %v754_v27 }
  0x5d   : > { %801 = vrot.lane.b32.xlu1 %v3565_v39, %s3086_s8 }
  0x5e   : > { %803 = vrot.lane.b32.xlu0 %v3568_v34, %s3086_s8 }
  0x61   : > { %805 = vrot.lane.b32.xlu1 %v3579_v15, %s3086_s8 }
  0x62   : > { %807 = vrot.lane.b32.xlu0 %v3582_v4, %s3086_s8  ;;  %v744_v4 = vrot.slane %v3289_v18, 2  ;;  %v3620_v18 = vsel %vm710_vm3, %v746_v5, %v747_v43  ;;  %v757_v5 = vrot.slane %v3351_v9, 2  ;;  %v764_v9 = vrot.slane %v3388_v58, 2 }
  0x64   : > { %v3657_v19 = vsel %vm710_vm3, %v757_v5, %v759_v60  ;;  %v769_v60 = vrot.slane %v3414_v31, 2  ;;  %v776_v31 = vrot.slane %v3458_v50, 2 }
  0x65   : > { %809 = vrot.lane.b32.xlu1 %v3592_v53, %s3086_s8 }
  0x66   : > { %811 = vrot.lane.b32.xlu0 %v3595_v33, %s3086_s8  ;;  %v3617_v33 = vsel %vm710_vm3, %v742_v0, %v744_v4  ;;  %v3631_v4 = vsel %vm710_vm3, %v747_v43, %v749_v40  ;;  %v3634_v0 = vsel %vm710_vm3, %v751_v24, %v752_v2  ;;  %v3647_v43 = vsel %vm710_vm3, %v756_v42, %v757_v5 }
  0x67   : > { %v761_v40 = vrot.slane %v3379_v49, 2  ;;  %v762_v24 = vrot.slane %v3385_v54, 2  ;;  %v766_v2 = vrot.slane %v3408_v26, 2  ;;  %v767_v42 = vrot.slane %v3411_v38, 2 }
  0x68   : > { %v771_v5 = vrot.slane %v3437_v8, 2  ;;  %v774_v38 = vrot.slane %v3440_v1, 2 }
  0x69   : > { %813 = vrot.lane.b32.xlu1 %v3605_v7, %s3086_s8  ;;  %v3660_v27 = vsel %vm710_vm3, %v761_v40, %v762_v24  ;;  %v3669_v54 = vsel %vm710_vm3, %v762_v24, %v764_v9  ;;  %v3672_v58 = vsel %vm710_vm3, %v766_v2, %v767_v42  ;;  %v772_v40 = vrot.slane %v3434_v21, 2 }
  0x6a   : > { %815 = vrot.lane.b32.xlu0 %v3608_v16, %s3086_s8  ;;  %v3683_v9 = vsel %vm710_vm3, %v767_v42, %v769_v60  ;;  %v777_v2 = vrot.slane %v3462_v12, 2  ;;  %v779_v21 = vrot.slane %v3465_v47, 2  ;;  %v781_v60 = vrot.slane %v3485_v20, 2 }
  0x6b   : > { %5249 = vst [vmem:[#allocation49_spill] sm:$0xff] %v3683_v9  ;;  %v3686_v24 = vsel %vm710_vm3, %v771_v5, %v772_v40  ;;  %v3696_v1 = vsel %vm710_vm3, %v772_v40, %v774_v38  ;;  %v782_v5 = vrot.slane %v3482_v22, 2  ;;  %v784_v12 = vrot.slane %v3488_v44, 2 }
  0x6c   : > { %5250 = vst [vmem:[#allocation50_spill] sm:$0xff] %v3686_v24  ;;  %5251 = vst [vmem:[#allocation51_spill] sm:$0xff] %v3696_v1  ;;  %v3699_v42 = vsel %vm710_vm3, %v776_v31, %v777_v2  ;;  %v3709_v47 = vsel %vm710_vm3, %v777_v2, %v779_v21  ;;  %v786_v40 = vrot.slane %v3504_v29, 2  ;;  %v787_v31 = vrot.slane %v3507_v63, 2 }
  0x6d   : > { %817 = vrot.lane.b32.xlu1 %v3617_v33, %s3086_s8  ;;  %5252 = vst [vmem:[#allocation52_spill] sm:$0xff] %v3699_v42  ;;  %5253 = vst [vmem:[#allocation53_spill] sm:$0xff] %v3709_v47  ;;  %v3712_v38 = vsel %vm710_vm3, %v781_v60, %v782_v5  ;;  %v3723_v44 = vsel %vm710_vm3, %v782_v5, %v784_v12  ;;  %v789_v2 = vrot.slane %v3510_v13, 2 }
  0x6e   : > { %819 = vrot.lane.b32.xlu0 %v3620_v18, %s3086_s8  ;;  %5254 = vst [vmem:[#allocation54_spill] sm:$0xff] %v3712_v38  ;;  %5255 = vst [vmem:[#allocation55_spill] sm:$0xff] %v3723_v44  ;;  %v3726_v21 = vsel %vm710_vm3, %v786_v40, %v787_v31 }
  0x6f   : > { %5256 = vst [vmem:[#allocation56_spill] sm:$0xff] %v3726_v21  ;;  %v3738_v63 = vsel %vm710_vm3, %v787_v31, %v789_v2 }
  0x70   : > { %5257 = vst [vmem:[#allocation57_spill] sm:$0xff] %v3738_v63 }
  0x71   : > { %821 = vrot.lane.b32.xlu1 %v3631_v4, %s3086_s8 }
  0x72   : > { %823 = vrot.lane.b32.xlu0 %v3634_v0, %s3086_s8 }
  0x75   : > { %825 = vrot.lane.b32.xlu1 %v3644_v62, %s3086_s8 }
  0x76   : > { %827 = vrot.lane.b32.xlu0 %v3647_v43, %s3086_s8 }
  0x79   : > { %829 = vrot.lane.b32.xlu1 %v3657_v19, %s3086_s8 }
  0x7a   : > { %831 = vrot.lane.b32.xlu0 %v3660_v27, %s3086_s8 }
  0x7d   : > { %833 = vrot.lane.b32.xlu1 %v3669_v54, %s3086_s8 }
  0x7e   : > { %835 = vrot.lane.b32.xlu0 %v3672_v58, %s3086_s8 }
  0x81   : > { %837 = vrot.lane.b32.xlu1 %v3683_v9, %s3086_s8 }
  0x82   : > { %839 = vrot.lane.b32.xlu0 %v3686_v24, %s3086_s8  ;;  %v5313_v24 = vld [vmem:[#allocation17_spill] sm:$0xff] }
  0x85   : > { %841 = vrot.lane.b32.xlu1 %v3696_v1, %s3086_s8 }
  0x86   : > { %843 = vrot.lane.b32.xlu0 %v3699_v42, %s3086_s8 }
  0x88   : > { %v3716_v20 = vpop.permute.xlu0 %3022 }
  0x89   : > { %845 = vrot.lane.b32.xlu1 %v3709_v47, %s3086_s8 }
  0x8a   : > { %847 = vrot.lane.b32.xlu0 %v3712_v38, %s3086_s8 }
  0x8b   : > { %v3729_v60 = vpop.permute.xlu1 %620 }
  0x8c   : > { %v3731_v29 = vpop.permute.xlu0 %618 }
  0x8d   : > { %849 = vrot.lane.b32.xlu1 %v3723_v44, %s3086_s8 }
  0x8e   : > { %851 = vrot.lane.b32.xlu0 %v3726_v21, %s3086_s8 }
  0x8f   : > { %v3740_v12 = vpop.permute.xlu1 %622 }
  0x90   : > { %v3742_v5 = vpop.permute.xlu0 %624 }
  0x91   : > { %853 = vrot.lane.b32.xlu1 %v3738_v63, %s3086_s8 }
  0x92   : > { %888 = vrot.lane.b32.xlu0 %v3186_v25, %s3087_s9 }
  0x93   : > { %v3748_v13 = vpop.permute.xlu1 %626 }
  0x94   : > { %v3750_v40 = vpop.permute.xlu0 %628 }
  0x95   : > { %890 = vrot.lane.b32.xlu1 %v3180_v23, %s3087_s9 }
  0x96   : > { %892 = vrot.lane.b32.xlu0 %v3196_v32, %s3087_s9 }
  0x97   : > { %v3756_v31 = vpop.permute.xlu1 %630 }
  0x98   : > { %v3758_v2 = vpop.permute.xlu0 %632 }
  0x99   : > { %894 = vrot.lane.b32.xlu1 %v3192_v30, %s3087_s9 }
  0x9a   : > { %896 = vrot.lane.b32.xlu0 %v3219_v41, %s3087_s9 }
  0x9b   : > { %v3764_v63 = vpop.permute.xlu1 %634 }
  0x9c   : > { %5258 = vst [vmem:[#allocation58_spill] sm:$0xff] %v3764_v63  ;;  %v3766_v21 = vpop.permute.xlu0 %636 }
  0x9d   : > { %5259 = vst [vmem:[#allocation59_spill] sm:$0xff] %v3766_v21  ;;  %898 = vrot.lane.b32.xlu1 %v3203_v35, %s3087_s9 }
  0x9e   : > { %900 = vrot.lane.b32.xlu0 %v3239_v52, %s3087_s9 }
  0x9f   : > { %v3772_v44 = vpop.permute.xlu1 %638 }
  0xa0   : > { %5260 = vst [vmem:[#allocation60_spill] sm:$0xff] %v3772_v44  ;;  %v3774_v38 = vpop.permute.xlu0 %640 }
  0xa1   : > { %5261 = vst [vmem:[#allocation61_spill] sm:$0xff] %v3774_v38  ;;  %902 = vrot.lane.b32.xlu1 %v3236_v51, %s3087_s9 }
  0xa2   : > { %904 = vrot.lane.b32.xlu0 %v3256_v59, %s3087_s9 }
  0xa3   : > { %v3780_v22 = vpop.permute.xlu1 %642 }
  0xa4   : > { %5262 = vst [vmem:[#allocation62_spill] sm:$0xff] %v3780_v22  ;;  %v3782_v47 = vpop.permute.xlu0 %644 }
  0xa5   : > { %5263 = vst [vmem:[#allocation63_spill] sm:$0xff] %v3782_v47  ;;  %906 = vrot.lane.b32.xlu1 %v3264_v6, %s3087_s9  ;;  %v1739_v47 = vld [vmem:[%s5089_s1] sm:$0xff] }
  0xa6   : > { %908 = vrot.lane.b32.xlu0 %v3276_v10, %s3087_s9 }
  0xa7   : > { %v3788_v42 = vpop.permute.xlu1 %646 }
  0xa8   : > { %5264 = vst [vmem:[#allocation64_spill] sm:$0xff] %v3788_v42  ;;  %v3790_v44 = vpop.permute.xlu0 %648  ;;  %v1740_v42 = vld [vmem:[%s5089_s1 + $0x8] sm:$0xff] }
  0xa9   : > { %5265 = vst [vmem:[#allocation65_spill] sm:$0xff] %v3790_v44  ;;  %910 = vrot.lane.b32.xlu1 %v3286_v17, %s3087_s9  ;;  %v2996_v44 = vpack.c.bf16 %v1740_v42, %v1739_v47 }
  0xaa   : > { %912 = vrot.lane.b32.xlu0 %v3306_v28, %s3087_s9 }
  0xab   : > { %v3796_v38 = vpop.permute.xlu1 %650  ;;  %2997 = vmatprep.subr.bf16.mxu0 %v2996_v44 }
  0xac   : > { %5266 = vst [vmem:[#allocation66_spill] sm:$0xff] %v3796_v38  ;;  %v3798_v22 = vpop.permute.xlu0 %652  ;;  %2999 = vmatpush3.bf16.msra.mxu0 %v2996_v44 }
  0xad   : > { %5267 = vst [vmem:[#allocation67_spill] sm:$0xff] %v3798_v22  ;;  %990 = vrot.lane.b32.xlu1 %v3209_v37, %s3088_s14  ;;  %v1741_v37 = vld [vmem:[%s5089_s1 + $0x10] sm:$0xff]  ;;  %v5288_v22 = vld [vmem:[#allocation47_spill] sm:$0xff] }
  0xae   : > { %992 = vrot.lane.b32.xlu0 %v3206_v36, %s3088_s14  ;;  %v1742_v36 = vld [vmem:[%s5089_s1 + $0x18] sm:$0xff] }
  0xaf   : > { %v3810_v50 = vpop.permute.xlu1 %654  ;;  %v3000_v42 = vpack.c.bf16 %v1742_v36, %v1741_v37 }
  0xb0   : > { %5268 = vst [vmem:[#allocation68_spill] sm:$0xff] %v3810_v50  ;;  %v3812_v38 = vpop.permute.xlu0 %656  ;;  %v5287_v50 = vld [vmem:[#allocation8_spill] sm:$0xff] }
  0xb1   : > { %5269 = vst [vmem:[#allocation69_spill] sm:$0xff] %v3812_v38  ;;  %1091 = vrot.lane.b32.xlu1 %v3542_v3, %s3089_s15  ;;  %3001 = vmatprep.subr.bf16.mxu0 %v3000_v42 }
  0xb2   : > { %1093 = vrot.lane.b32.xlu0 %v3553_v55, %s3089_s15  ;;  %v1743_v55 = vld [vmem:[%s5089_s1 + $0x20] sm:$0xf]  ;;  %3003 = vmatpush3.bf16.msra.mxu0 %v3000_v42 }
  0xb3   : > { %v3824_v47 = vpop.permute.xlu1 %658  ;;  %2896 = vmatprep.subr.msk.mxu0 %vm1848_vm4, %v1743_v55 }
  0xb4   : > { %5270 = vst [vmem:[#allocation70_spill] sm:$0xff] %v3824_v47  ;;  %v3826_v38 = vpop.permute.xlu0 %660 }
  0xb5   : > { %5271 = vst [vmem:[#allocation71_spill] sm:$0xff] %v3826_v38  ;;  %1187 = vrot.lane.b32.xlu1 %v3196_v32, %s3090_s20 }
  0xb6   : > { %1189 = vrot.lane.b32.xlu0 %v3192_v30, %s3090_s20  ;;  %2897 = vmatpush3.msk.msra.mxu0 %vm1848_vm4, %v1743_v55 }
  0xb7   : > { %v3835_v3 = vpop.permute.xlu1 %662 }
  0xb8   : > { %5272 = vst [vmem:[#allocation72_spill] sm:$0xff] %v3835_v3  ;;  %v3837_v44 = vpop.permute.xlu0 %664 }
  0xb9   : > { %5273 = vst [vmem:[#allocation73_spill] sm:$0xff] %v3837_v44  ;;  %1283 = vrot.lane.b32.xlu1 %v3226_v45, %s3091_s23 }
  0xba   : > { %994 = vrot.lane.b32.xlu0 %v3226_v45, %s3088_s14 }
  0xbb   : > { %v3845_v37 = vpop.permute.xlu1 %666 }
  0xbc   : > { %5274 = vst [vmem:[#allocation74_spill] sm:$0xff] %v3845_v37  ;;  %v3847_v36 = vpop.permute.xlu0 %668 }
  0xbd   : > { %5275 = vst [vmem:[#allocation75_spill] sm:$0xff] %v3847_v36  ;;  %1285 = vrot.lane.b32.xlu1 %v3229_v46, %s3091_s23 }
  0xbe   : > { %1379 = vrot.lane.b32.xlu0 %v3556_v48, %s3092_s27 }
  0xbf   : > { %v3853_v42 = vpop.permute.xlu1 %670 }
  0xc0   : > { %5276 = vst [vmem:[#allocation76_spill] sm:$0xff] %v3853_v42  ;;  %v3855_v44 = vpop.permute.xlu0 %672 }
  0xc1   : > { %5277 = vst [vmem:[#allocation77_spill] sm:$0xff] %v3855_v44  ;;  %996 = vrot.lane.b32.xlu1 %v3229_v46, %s3088_s14 }
  0xc2   : > { %1095 = vrot.lane.b32.xlu0 %v3556_v48, %s3089_s15 }
  0xc3   : > { %v3861_v45 = vpop.permute.xlu1 %674 }
  0xc4   : > { %5278 = vst [vmem:[#allocation78_spill] sm:$0xff] %v3861_v45  ;;  %v3863_v55 = vpop.permute.xlu0 %676 }
  0xc5   : > { %5279 = vst [vmem:[#allocation79_spill] sm:$0xff] %v3863_v55  ;;  %1381 = vrot.lane.b32.xlu1 %v3565_v39, %s3092_s27 }
  0xc6   : > { %1097 = vrot.lane.b32.xlu0 %v3565_v39, %s3089_s15 }
  0xc7   : > { %v3869_v36 = vpop.permute.xlu1 %3027 }
  0xc8   : > { %v3871_v42 = vpop.permute.xlu0 %795 }
  0xc9   : > { %1191 = vrot.lane.b32.xlu1 %v3219_v41, %s3090_s20 }
  0xca   : > { %1193 = vrot.lane.b32.xlu0 %v3203_v35, %s3090_s20 }
  0xcb   : > { %v3877_v46 = vpop.permute.xlu1 %797 }
  0xcc   : > { %v3879_v48 = vpop.permute.xlu0 %799 }
  0xcd   : > { %1287 = vrot.lane.b32.xlu1 %v3246_v56, %s3091_s23 }
  0xce   : > { %998 = vrot.lane.b32.xlu0 %v3246_v56, %s3088_s14 }
  0xcf   : > { %v3885_v39 = vpop.permute.xlu1 %801 }
  0xd0   : > { %v3887_v45 = vpop.permute.xlu0 %803 }
  0xd1   : > { %1289 = vrot.lane.b32.xlu1 %v3253_v57, %s3091_s23 }
  0xd2   : > { %1383 = vrot.lane.b32.xlu0 %v3568_v34, %s3092_s27 }
  0xd3   : > { %v3893_v55 = vpop.permute.xlu1 %805 }
  0xd4   : > { %v3895_v44 = vpop.permute.xlu0 %807 }
  0xd5   : > { %1000 = vrot.lane.b32.xlu1 %v3253_v57, %s3088_s14 }
  0xd6   : > { %1099 = vrot.lane.b32.xlu0 %v3568_v34, %s3089_s15 }
  0xd7   : > { %v3901_v56 = vpop.permute.xlu1 %809 }
  0xd8   : > { %v3903_v37 = vpop.permute.xlu0 %811 }
  0xd9   : > { %5280 = vst [vmem:[#allocation80_spill] sm:$0xff] %v3903_v37  ;;  %1385 = vrot.lane.b32.xlu1 %v3579_v15, %s3092_s27 }
  0xda   : > { %1101 = vrot.lane.b32.xlu0 %v3579_v15, %s3089_s15 }
  0xdb   : > { %v3909_v3 = vpop.permute.xlu1 %813 }
  0xdc   : > { %5281 = vst [vmem:[#allocation81_spill] sm:$0xff] %v3909_v3  ;;  %v3911_v38 = vpop.permute.xlu0 %815 }
  0xdd   : > { %5282 = vst [vmem:[#allocation82_spill] sm:$0xff] %v3911_v38  ;;  %1195 = vrot.lane.b32.xlu1 %v3239_v52, %s3090_s20 }
  0xde   : > { %1197 = vrot.lane.b32.xlu0 %v3236_v51, %s3090_s20 }
  0xdf   : > { %v3917_v57 = vpop.permute.xlu1 %817 }
  0xe0   : > { %5283 = vst [vmem:[#allocation83_spill] sm:$0xff] %v3917_v57  ;;  %v3919_v34 = vpop.permute.xlu0 %819 }
  0xe1   : > { %5284 = vst [vmem:[#allocation84_spill] sm:$0xff] %v3919_v34  ;;  %1291 = vrot.lane.b32.xlu1 %v3279_v14, %s3091_s23 }
  0xe2   : > { %1002 = vrot.lane.b32.xlu0 %v3279_v14, %s3088_s14 }
  0xe3   : > { %v3925_v15 = vpop.permute.xlu1 %821 }
  0xe4   : > { %5285 = vst [vmem:[#allocation85_spill] sm:$0xff] %v3925_v15  ;;  %v3927_v47 = vpop.permute.xlu0 %823 }
  0xe5   : > { %5286 = vst [vmem:[#allocation86_spill] sm:$0xff] %v3927_v47  ;;  %1293 = vrot.lane.b32.xlu1 %v5287_v50, %s3091_s23 }
  0xe6   : > { %1387 = vrot.lane.b32.xlu0 %v5288_v22, %s3092_s27 }
  0xe7   : > { %v3933_v38 = vpop.permute.xlu1 %825 }
  0xe8   : > { %5289 = vst [vmem:[#allocation8_spill] sm:$0xff] %v3933_v38  ;;  %v3935_v57 = vpop.permute.xlu0 %827 }
  0xe9   : > { %5290 = vst [vmem:[#allocation47_spill] sm:$0xff] %v3935_v57  ;;  %1004 = vrot.lane.b32.xlu1 %v5287_v50, %s3088_s14 }
  0xea   : > { %1103 = vrot.lane.b32.xlu0 %v5288_v22, %s3089_s15 }
  0xeb   : > { %v3941_v14 = vpop.permute.xlu1 %829 }
  0xec   : > { %5291 = vst [vmem:[#allocation87_spill] sm:$0xff] %v3941_v14  ;;  %v3943_v15 = vpop.permute.xlu0 %831  ;;  %v5301_v14 = vld [vmem:[#allocation48_spill] sm:$0xff] }
  0xed   : > { %5292 = vst [vmem:[#allocation88_spill] sm:$0xff] %v3943_v15  ;;  %1389 = vrot.lane.b32.xlu1 %v3592_v53, %s3092_s27  ;;  %v5297_v15 = vld [vmem:[#allocation10_spill] sm:$0xff] }
  0xee   : > { %1105 = vrot.lane.b32.xlu0 %v3592_v53, %s3089_s15 }
  0xef   : > { %v3949_v47 = vpop.permute.xlu1 %833 }
  0xf0   : > { %5293 = vst [vmem:[#allocation89_spill] sm:$0xff] %v3949_v47  ;;  %v3951_v38 = vpop.permute.xlu0 %835 }
  0xf1   : > { %5294 = vst [vmem:[#allocation90_spill] sm:$0xff] %v3951_v38  ;;  %1199 = vrot.lane.b32.xlu1 %v3256_v59, %s3090_s20  ;;  %v5300_v38 = vld [vmem:[#allocation13_spill] sm:$0xff] }
  0xf2   : > { %1201 = vrot.lane.b32.xlu0 %v3264_v6, %s3090_s20 }
  0xf3   : > { %v3957_v22 = vpop.permute.xlu1 %837 }
  0xf4   : > { %5295 = vst [vmem:[#allocation91_spill] sm:$0xff] %v3957_v22  ;;  %v3959_v50 = vpop.permute.xlu0 %839 }
  0xf5   : > { %5296 = vst [vmem:[#allocation92_spill] sm:$0xff] %v3959_v50  ;;  %1295 = vrot.lane.b32.xlu1 %v5297_v15, %s3091_s23 }
  0xf6   : > { %1006 = vrot.lane.b32.xlu0 %v5297_v15, %s3088_s14 }
  0xf7   : > { %v3965_v53 = vpop.permute.xlu1 %841 }
  0xf8   : > { %5298 = vst [vmem:[#allocation10_spill] sm:$0xff] %v3965_v53  ;;  %v3967_v47 = vpop.permute.xlu0 %843 }
  0xf9   : > { %5299 = vst [vmem:[#allocation93_spill] sm:$0xff] %v3967_v47  ;;  %1297 = vrot.lane.b32.xlu1 %v5300_v38, %s3091_s23 }
  0xfa   : > { %1391 = vrot.lane.b32.xlu0 %v5301_v14, %s3092_s27 }
  0xfb   : > { %v3973_v57 = vpop.permute.xlu1 %845 }
  0xfc   : > { %5302 = vst [vmem:[#allocation13_spill] sm:$0xff] %v3973_v57  ;;  %v3975_v22 = vpop.permute.xlu0 %847 }
  0xfd   : > { %5303 = vst [vmem:[#allocation48_spill] sm:$0xff] %v3975_v22  ;;  %1008 = vrot.lane.b32.xlu1 %v5300_v38, %s3088_s14 }
  0xfe   : > { %1107 = vrot.lane.b32.xlu0 %v5301_v14, %s3089_s15 }
  0xff   : > { %v3981_v15 = vpop.permute.xlu1 %849 }
 0x100   : > { %5304 = vst [vmem:[#allocation94_spill] sm:$0xff] %v3981_v15  ;;  %v3983_v53 = vpop.permute.xlu0 %851  ;;  %v5308_v15 = vld [vmem:[#allocation15_spill] sm:$0xff] }
 0x101   : > { %5305 = vst [vmem:[#allocation95_spill] sm:$0xff] %v3983_v53  ;;  %1393 = vrot.lane.b32.xlu1 %v3605_v7, %s3092_s27  ;;  %v5307_v53 = vld [vmem:[#allocation14_spill] sm:$0xff] }
 0x102   : > { %1109 = vrot.lane.b32.xlu0 %v3605_v7, %s3089_s15 }
 0x103   : > { %v3989_v47 = vpop.permute.xlu1 %853 }
 0x104   : > { %5306 = vst [vmem:[#allocation96_spill] sm:$0xff] %v3989_v47  ;;  %v889_v57 = vpop.permute.xlu0 %888 }
 0x105   : > { %1203 = vrot.lane.b32.xlu1 %v3276_v10, %s3090_s20 }
 0x106   : > { %1205 = vrot.lane.b32.xlu0 %v3286_v17, %s3090_s20 }
 0x107   : > { %v3995_v38 = vpop.permute.xlu1 %890 }
 0x108   : > { %v3997_v14 = vpop.permute.xlu0 %892 }
 0x109   : > { %1299 = vrot.lane.b32.xlu1 %v5307_v53, %s3091_s23 }
 0x10a   : > { %1010 = vrot.lane.b32.xlu0 %v5307_v53, %s3088_s14 }
 0x10b   : > { %v4003_v7 = vpop.permute.xlu1 %894 }
 0x10c   : > { %v4005_v47 = vpop.permute.xlu0 %896 }
 0x10d   : > { %1301 = vrot.lane.b32.xlu1 %v5308_v15, %s3091_s23 }
 0x10e   : > { %1395 = vrot.lane.b32.xlu0 %v3608_v16, %s3092_s27 }
 0x10f   : > { %v4011_v22 = vpop.permute.xlu1 %898 }
 0x110   : > { %v4013_v50 = vpop.permute.xlu0 %900 }
 0x111   : > { %1012 = vrot.lane.b32.xlu1 %v5308_v15, %s3088_s14  ;;  %v5310_v15 = vld [vmem:[#allocation11_spill] sm:$0xff] }
 0x112   : > { %1111 = vrot.lane.b32.xlu0 %v3608_v16, %s3089_s15 }
 0x113   : > { %v4019_v53 = vpop.permute.xlu1 %902 }
 0x114   : > { %v4021_v34 = vpop.permute.xlu0 %904 }
 0x115   : > { %1397 = vrot.lane.b32.xlu1 %v3617_v33, %s3092_s27 }
 0x116   : > { %1113 = vrot.lane.b32.xlu0 %v3617_v33, %s3089_s15 }
 0x117   : > { %v4027_v17 = vpop.permute.xlu1 %906 }
 0x118   : > { %v4029_v10 = vpop.permute.xlu0 %908 }
 0x119   : > { %5309 = vst [vmem:[#allocation14_spill] sm:$0xff] %v4029_v10  ;;  %1207 = vrot.lane.b32.xlu1 %v3306_v28, %s3090_s20  ;;  %v5314_v28 = vld [vmem:[#allocation19_spill] sm:$0xff] }
 0x11a   : > { %1209 = vrot.lane.b32.xlu0 %v5310_v15, %s3090_s20 }
 0x11b   : > { %v4035_v16 = vpop.permute.xlu1 %910 }
 0x11c   : > { %5311 = vst [vmem:[#allocation15_spill] sm:$0xff] %v4035_v16  ;;  %v4037_v1 = vpop.permute.xlu0 %912  ;;  %v3024_v16 = vunpack.i.l.bf16 %v3716_v20 }
 0x11d   : > { %5312 = vst [vmem:[#allocation97_spill] sm:$0xff] %v4037_v1  ;;  %1303 = vrot.lane.b32.xlu1 %v5313_v24, %s3091_s23 }
 0x11e   : > { %914 = vrot.lane.b32.xlu0 %v5310_v15, %s3087_s9  ;;  %v3029_v15 = vunpack.i.l.bf16 %v3869_v36 }
 0x11f   : > { %v991_v33 = vpop.permute.xlu1 %990 }
 0x120   : > { %v993_v3 = vpop.permute.xlu0 %992 }
 0x121   : > { %1014 = vrot.lane.b32.xlu1 %v5313_v24, %s3088_s14  ;;  %v5315_v24 = vld [vmem:[#allocation3_spill] sm:$0xff] }
 0x122   : > { %1305 = vrot.lane.b32.xlu0 %v5314_v28, %s3091_s23  ;;  %v1476_v37 = vsel %vm1475_vm2, %v5315_v24, %v3024_v16  ;;  %v3025_v16 = vunpack.i.h.bf16 %v3716_v20 }
 0x123   : > { %v1092_v6 = vpop.permute.xlu1 %1091  ;;  %v1509_v59 = vsel %vm1508_vm6, %v1476_v37, %v3029_v15 }
 0x124   : > { %v1094_v21 = vpop.permute.xlu0 %1093 }
 0x125   : > { %1399 = vrot.lane.b32.xlu1 %v3620_v18, %s3092_s27 }
 0x126   : > { %1016 = vrot.lane.b32.xlu0 %v5314_v28, %s3088_s14  ;;  %v1542_v28 = vsel %vm1541_vm5, %v1509_v59, %v889_v57 }
 0x127   : > { %v1188_v1 = vpop.permute.xlu1 %1187  ;;  %v1575_v9 = vsel %vm1574_vm7, %v1542_v28, %v991_v33  ;;  %v5316_v33 = vld [vmem:[#allocation2_spill] sm:$0xff] }
 0x128   : > { %v1190_v10 = vpop.permute.xlu0 %1189  ;;  %v1608_v24 = vsel %vm1607_vm8, %v1575_v9, %v1092_v6  ;;  %v1477_v6 = vsel %vm1475_vm2, %v5316_v33, %v3025_v16  ;;  %v5318_v16 = vld [vmem:[#allocation20_spill] sm:$0xff] }
 0x129   : > { %1115 = vrot.lane.b32.xlu1 %v3620_v18, %s3089_s15  ;;  %v3030_v18 = vunpack.i.h.bf16 %v3869_v36  ;;  %v1641_v59 = vsel %vm1640_vm9, %v1608_v24, %v1188_v1 }
 0x12a   : > { %1401 = vrot.lane.b32.xlu0 %v3631_v4, %s3092_s27 }
 0x12b   : > { %v1284_v63 = vpop.permute.xlu1 %1283  ;;  %v1510_v9 = vsel %vm1508_vm6, %v1477_v6, %v3030_v18 }
 0x12c   : > { %v995_v8 = vpop.permute.xlu0 %994  ;;  %v1674_v37 = vsel %vm1673_vm10, %v1641_v59, %v1284_v63  ;;  %v1543_v63 = vsel %vm1541_vm5, %v1510_v9, %v3995_v38 }
 0x12d   : > { %1117 = vrot.lane.b32.xlu1 %v3631_v4, %s3089_s15  ;;  %v5317_v4 = vld [vmem:[#allocation16_spill] sm:$0xff]  ;;  %v1576_v24 = vsel %vm1574_vm7, %v1543_v63, %v993_v3  ;;  %v5319_v3 = vld [vmem:[#allocation21_spill] sm:$0xff] }
 0x12e   : > { %1211 = vrot.lane.b32.xlu0 %v3335_v61, %s3090_s20  ;;  %v1609_v28 = vsel %vm1607_vm8, %v1576_v24, %v1094_v21 }
 0x12f   : > { %v1286_v57 = vpop.permute.xlu1 %1285  ;;  %v1642_v59 = vsel %vm1640_vm9, %v1609_v28, %v1190_v10  ;;  %v1478_v10 = vsel %vm1475_vm2, %v3186_v25, %v3731_v29 }
 0x130   : > { %v1380_v15 = vpop.permute.xlu0 %1379  ;;  %v1675_v18 = vsel %vm1673_vm10, %v1642_v59, %v1286_v57  ;;  %v1511_v57 = vsel %vm1508_vm6, %v1478_v10, %v3871_v42  ;;  %v5322_v10 = vld [vmem:[#allocation24_spill] sm:$0xff] }
 0x131   : > { %v1707_v20 = vsel %vm1706_vm11, %v1674_v37, %v1380_v15  ;;  %916 = vrot.lane.b32.xlu1 %v3335_v61, %s3087_s9  ;;  %v1544_v6 = vsel %vm1541_vm5, %v1511_v57, %v3997_v14 }
 0x132   : > { %1213 = vrot.lane.b32.xlu0 %v5317_v4, %s3090_s20  ;;  %2898 = vmatprep.mubr.msk.f32.mxu0 %vm1751_vm12, %v1707_v20  ;;  %v1577_v24 = vsel %vm1574_vm7, %v1544_v6, %v995_v8  ;;  %v1479_v8 = vsel %vm1475_vm2, %v3180_v23, %v3729_v60 }
 0x133   : > { %v997_v1 = vpop.permute.xlu1 %996 }
 0x134   : > { %v1096_v36 = vpop.permute.xlu0 %1095 }
 0x135   : > { %1307 = vrot.lane.b32.xlu1 %v5318_v16, %s3091_s23  ;;  %v1610_v28 = vsel %vm1607_vm8, %v1577_v24, %v1096_v36 }
 0x136   : > { %918 = vrot.lane.b32.xlu0 %v5317_v4, %s3087_s9 }
 0x137   : > { %v1382_v37 = vpop.permute.xlu1 %1381 }
 0x138   : > { %v1098_v15 = vpop.permute.xlu0 %1097  ;;  %v1708_v38 = vsel %vm1706_vm11, %v1675_v18, %v1382_v37 }
 0x139   : > { %1018 = vrot.lane.b32.xlu1 %v5318_v16, %s3088_s14  ;;  %2899 = vmatmul.mubr.msk.f32.vlgmr.msra.gmra.mrb[0].mxu0 %vm1751_vm12, %v1708_v38 }
 0x13a   : > { %1309 = vrot.lane.b32.xlu0 %v5319_v3, %s3091_s23 }
 0x13b   : > { %v1192_v21 = vpop.permute.xlu1 %1191 }
 0x13c   : > { %v1194_v20 = vpop.permute.xlu0 %1193  ;;  %v1643_v25 = vsel %vm1640_vm9, %v1610_v28, %v1192_v21  ;;  %v5321_v21 = vld [vmem:[#allocation23_spill] sm:$0xff] }
 0x13d   : > { %1403 = vrot.lane.b32.xlu1 %v3634_v0, %s3092_s27 }
 0x13e   : > { %1020 = vrot.lane.b32.xlu0 %v5319_v3, %s3088_s14 }
 0x13f   : > { %v1288_v9 = vpop.permute.xlu1 %1287 }
 0x140   : > { %v999_v63 = vpop.permute.xlu0 %998  ;;  %v1676_v29 = vsel %vm1673_vm10, %v1643_v25, %v1288_v9 }
 0x141   : > { %1119 = vrot.lane.b32.xlu1 %v3634_v0, %s3089_s15  ;;  %v1512_v0 = vsel %vm1508_vm6, %v1479_v8, %v3877_v46 }
 0x142   : > { %1405 = vrot.lane.b32.xlu0 %v3644_v62, %s3092_s27  ;;  %v1545_v36 = vsel %vm1541_vm5, %v1512_v0, %v4003_v7 }
 0x143   : > { %v1290_v42 = vpop.permute.xlu1 %1289  ;;  %v1578_v37 = vsel %vm1574_vm7, %v1545_v36, %v997_v1 }
 0x144   : > { %v1384_v16 = vpop.permute.xlu0 %1383  ;;  %v1611_v23 = vsel %vm1607_vm8, %v1578_v37, %v1098_v15  ;;  %v1482_v37 = vsel %vm1475_vm2, %v3219_v41, %v3748_v13  ;;  %v5325_v41 = vld [vmem:[#allocation28_spill] sm:$0xff] }
 0x145   : > { %v1709_v14 = vsel %vm1706_vm11, %v1676_v29, %v1384_v16  ;;  %1121 = vrot.lane.b32.xlu1 %v3644_v62, %s3089_s15  ;;  %v5320_v62 = vld [vmem:[#allocation18_spill] sm:$0xff]  ;;  %v1644_v60 = vsel %vm1640_vm9, %v1611_v23, %v1194_v20  ;;  %v1480_v20 = vsel %vm1475_vm2, %v3196_v32, %v3740_v12  ;;  %v5324_v23 = vld [vmem:[#allocation27_spill] sm:$0xff] }
 0x146   : > { %1215 = vrot.lane.b32.xlu0 %v3354_v11, %s3090_s20  ;;  %2901 = vmatprep.mubr.msk.f32.mxu0 %vm1751_vm12, %v1709_v14  ;;  %v1677_v46 = vsel %vm1673_vm10, %v1644_v60, %v1290_v42  ;;  %v1513_v57 = vsel %vm1508_vm6, %v1480_v20, %v3879_v48  ;;  %v1515_v60 = vsel %vm1508_vm6, %v1482_v37, %v3887_v45  ;;  %v5329_v37 = vld [vmem:[#allocation49_spill] sm:$0xff] }
 0x147   : > { %v1001_v59 = vpop.permute.xlu1 %1000  ;;  %v1546_v6 = vsel %vm1541_vm5, %v1513_v57, %v4005_v47  ;;  %v1483_v20 = vsel %vm1475_vm2, %v3203_v35, %v3750_v40 }
 0x148   : > { %v1100_v18 = vpop.permute.xlu0 %1099  ;;  %v1579_v28 = vsel %vm1574_vm7, %v1546_v6, %v999_v63  ;;  %v1481_v63 = vsel %vm1475_vm2, %v3192_v30, %v3742_v5 }
 0x149   : > { %920 = vrot.lane.b32.xlu1 %v3354_v11, %s3087_s9  ;;  %v1612_v25 = vsel %vm1607_vm8, %v1579_v28, %v1100_v18  ;;  %v1514_v42 = vsel %vm1508_vm6, %v1481_v63, %v3885_v39 }
 0x14a   : > { %1217 = vrot.lane.b32.xlu0 %v5320_v62, %s3090_s20  ;;  %v1547_v16 = vsel %vm1541_vm5, %v1514_v42, %v4011_v22 }
 0x14b   : > { %v1386_v38 = vpop.permute.xlu1 %1385  ;;  %v1580_v0 = vsel %vm1574_vm7, %v1547_v16, %v1001_v59  ;;  %v5323_v59 = vld [vmem:[#allocation22_spill] sm:$0xff] }
 0x14c   : > { %v1102_v3 = vpop.permute.xlu0 %1101  ;;  %v1710_v7 = vsel %vm1706_vm11, %v1677_v46, %v1386_v38  ;;  %v1548_v46 = vsel %vm1541_vm5, %v1515_v60, %v4013_v50 }
 0x14d   : > { %1311 = vrot.lane.b32.xlu1 %v5321_v21, %s3091_s23  ;;  %2902 = vmatmul.mubr.msk.f32.gmra.mrb[2].mxu0 %vm1751_vm12, %v1710_v7  ;;  %v1613_v30 = vsel %vm1607_vm8, %v1580_v0, %v1102_v3  ;;  %v1485_v0 = vsel %vm1475_vm2, %v3236_v51, %v3758_v2 }
 0x14e   : > { %922 = vrot.lane.b32.xlu0 %v5320_v62, %s3087_s9 }
 0x14f   : > { %v1196_v1 = vpop.permute.xlu1 %1195 }
 0x150   : > { %v1198_v15 = vpop.permute.xlu0 %1197  ;;  %v1645_v32 = vsel %vm1640_vm9, %v1612_v25, %v1196_v1 }
 0x151   : > { %1022 = vrot.lane.b32.xlu1 %v5321_v21, %s3088_s14 }
 0x152   : > { %1313 = vrot.lane.b32.xlu0 %v5322_v10, %s3091_s23 }
 0x153   : > { %v1292_v9 = vpop.permute.xlu1 %1291 }
 0x154   : > { %v1003_v24 = vpop.permute.xlu0 %1002  ;;  %v1678_v12 = vsel %vm1673_vm10, %v1645_v32, %v1292_v9 }
 0x155   : > { %1407 = vrot.lane.b32.xlu1 %v3647_v43, %s3092_s27  ;;  %v1581_v7 = vsel %vm1574_vm7, %v1548_v46, %v1003_v24  ;;  %v5330_v46 = vld [vmem:[#allocation30_spill] sm:$0xff] }
 0x156   : > { %1024 = vrot.lane.b32.xlu0 %v5322_v10, %s3088_s14  ;;  %v1516_v10 = vsel %vm1508_vm6, %v1483_v20, %v3893_v55 }
 0x157   : > { %v1294_v48 = vpop.permute.xlu1 %1293  ;;  %v1549_v57 = vsel %vm1541_vm5, %v1516_v10, %v4019_v53 }
 0x158   : > { %v1388_v29 = vpop.permute.xlu0 %1387 }
 0x159   : > { %v1711_v47 = vsel %vm1706_vm11, %v1678_v12, %v1388_v29  ;;  %1123 = vrot.lane.b32.xlu1 %v3647_v43, %s3089_s15  ;;  %v1646_v43 = vsel %vm1640_vm9, %v1613_v30, %v1198_v15  ;;  %v1484_v12 = vsel %vm1475_vm2, %v3239_v52, %v3756_v31  ;;  %v5327_v52 = vld [vmem:[#allocation31_spill] sm:$0xff]  ;;  %v5328_v30 = vld [vmem:[#allocation32_spill] sm:$0xff] }
 0x15a   : > { %1409 = vrot.lane.b32.xlu0 %v3657_v19, %s3092_s27  ;;  %2904 = vmatprep.mubr.msk.f32.mxu0 %vm1751_vm12, %v1711_v47  ;;  %v1679_v5 = vsel %vm1673_vm10, %v1646_v43, %v1294_v48  ;;  %v5326_v48 = vld [vmem:[#allocation25_spill] sm:$0xff]  ;;  %v1518_v43 = vsel %vm1508_vm6, %v1485_v0, %v3901_v56  ;;  %v5343_v0 = vld [vmem:[#allocation51_spill] sm:$0xff] }
 0x15b   : > { %v1005_v14 = vpop.permute.xlu1 %1004 }
 0x15c   : > { %v1104_v8 = vpop.permute.xlu0 %1103  ;;  %v1582_v24 = vsel %vm1574_vm7, %v1549_v57, %v1005_v14  ;;  %v5336_v57 = vld [vmem:[#allocation59_spill] sm:$0xff] }
 0x15d   : > { %1125 = vrot.lane.b32.xlu1 %v3657_v19, %s3089_s15  ;;  %v1614_v21 = vsel %vm1607_vm8, %v1581_v7, %v1104_v8  ;;  %v5331_v7 = vld [vmem:[#allocation58_spill] sm:$0xff] }
 0x15e   : > { %1219 = vrot.lane.b32.xlu0 %v3379_v49, %s3090_s20 }
 0x15f   : > { %v1390_v39 = vpop.permute.xlu1 %1389 }
 0x160   : > { %v1106_v36 = vpop.permute.xlu0 %1105  ;;  %v1712_v22 = vsel %vm1706_vm11, %v1679_v5, %v1390_v39  ;;  %v1551_v5 = vsel %vm1541_vm5, %v1518_v43, %v4027_v17 }
 0x161   : > { %924 = vrot.lane.b32.xlu1 %v3379_v49, %s3087_s9  ;;  %2905 = vmatmul.mubr.msk.f32.gmra.mrb[4].mxu0 %vm1751_vm12, %v1712_v22  ;;  %v1615_v35 = vsel %vm1607_vm8, %v1582_v24, %v1106_v36 }
 0x162   : > { %1221 = vrot.lane.b32.xlu0 %v5323_v59, %s3090_s20 }
 0x163   : > { %v1200_v19 = vpop.permute.xlu1 %1199 }
 0x164   : > { %v1202_v18 = vpop.permute.xlu0 %1201  ;;  %v1647_v13 = vsel %vm1640_vm9, %v1614_v21, %v1200_v19  ;;  %v5332_v21 = vld [vmem:[#allocation5_spill] sm:$0xff] }
 0x165   : > { %1315 = vrot.lane.b32.xlu1 %v5324_v23, %s3091_s23  ;;  %v1648_v40 = vsel %vm1640_vm9, %v1615_v35, %v1202_v18  ;;  %v5338_v35 = vld [vmem:[#allocation35_spill] sm:$0xff] }
 0x166   : > { %926 = vrot.lane.b32.xlu0 %v5323_v59, %s3087_s9 }
 0x167   : > { %v1296_v38 = vpop.permute.xlu1 %1295 }
 0x168   : > { %v1007_v3 = vpop.permute.xlu0 %1006  ;;  %v1680_v1 = vsel %vm1673_vm10, %v1647_v13, %v1296_v38  ;;  %v5334_v13 = vld [vmem:[#allocation80_spill] sm:$0xff] }
 0x169   : > { %1026 = vrot.lane.b32.xlu1 %v5324_v23, %s3088_s14 }
 0x16a   : > { %1317 = vrot.lane.b32.xlu0 %v5325_v41, %s3091_s23 }
 0x16b   : > { %v1298_v45 = vpop.permute.xlu1 %1297 }
 0x16c   : > { %v1392_v15 = vpop.permute.xlu0 %1391  ;;  %v1681_v55 = vsel %vm1673_vm10, %v1648_v40, %v1298_v45  ;;  %v5335_v45 = vld [vmem:[#allocation14_spill] sm:$0xff]  ;;  %v5339_v40 = vld [vmem:[#allocation81_spill] sm:$0xff] }
 0x16d   : > { %v1713_v50 = vsel %vm1706_vm11, %v1680_v1, %v1392_v15  ;;  %1411 = vrot.lane.b32.xlu1 %v3660_v27, %s3092_s27 }
 0x16e   : > { %1028 = vrot.lane.b32.xlu0 %v5325_v41, %s3088_s14  ;;  %2907 = vmatprep.mubr.msk.f32.mxu0 %vm1751_vm12, %v1713_v50  ;;  %v1486_v41 = vsel %vm1475_vm2, %v5332_v21, %v5331_v7  ;;  %v5350_v7 = vld [vmem:[#allocation61_spill] sm:$0xff] }
 0x16f   : > { %v1009_v6 = vpop.permute.xlu1 %1008  ;;  %v1519_v1 = vsel %vm1508_vm6, %v1486_v41, %v5334_v13  ;;  %v5351_v21 = vld [vmem:[#allocation9_spill] sm:$0xff] }
 0x170   : > { %v1108_v9 = vpop.permute.xlu0 %1107  ;;  %v1584_v22 = vsel %vm1574_vm7, %v1551_v5, %v1009_v6  ;;  %v1552_v15 = vsel %vm1541_vm5, %v1519_v1, %v5335_v45  ;;  %v5337_v6 = vld [vmem:[#allocation6_spill] sm:$0xff]  ;;  %v5344_v5 = vld [vmem:[#allocation33_spill] sm:$0xff]  ;;  %v1489_v41 = vsel %vm1475_vm2, %v5351_v21, %v5350_v7  ;;  %v5352_v1 = vld [vmem:[#allocation39_spill] sm:$0xff] }
 0x171   : > { %1127 = vrot.lane.b32.xlu1 %v3660_v27, %s3089_s15  ;;  %v5353_v45 = vld [vmem:[#allocation83_spill] sm:$0xff] }
 0x172   : > { %1413 = vrot.lane.b32.xlu0 %v3669_v54, %s3092_s27 }
 0x173   : > { %v1394_v28 = vpop.permute.xlu1 %1393 }
 0x174   : > { %v1110_v25 = vpop.permute.xlu0 %1109  ;;  %v1714_v53 = vsel %vm1706_vm11, %v1681_v55, %v1394_v28 }
 0x175   : > { %1129 = vrot.lane.b32.xlu1 %v3669_v54, %s3089_s15  ;;  %2908 = vmatmul.mubr.msk.f32.gmra.mrb[6].mxu0 %vm1751_vm12, %v1714_v53  ;;  %v1517_v54 = vsel %vm1508_vm6, %v1484_v12, %v3895_v44  ;;  %v1617_v51 = vsel %vm1607_vm8, %v1584_v22, %v1110_v25  ;;  %v5340_v25 = vld [vmem:[#allocation15_spill] sm:$0xff]  ;;  %v5345_v22 = vld [vmem:[#allocation60_spill] sm:$0xff] }
 0x176   : > { %1223 = vrot.lane.b32.xlu0 %v3408_v26, %s3090_s20  ;;  %v1550_v29 = vsel %vm1541_vm5, %v1517_v54, %v4021_v34 }
 0x177   : > { %v1204_v27 = vpop.permute.xlu1 %1203  ;;  %v1583_v42 = vsel %vm1574_vm7, %v1550_v29, %v1007_v3 }
 0x178   : > { %v1206_v32 = vpop.permute.xlu0 %1205  ;;  %v1616_v16 = vsel %vm1607_vm8, %v1583_v42, %v1108_v9  ;;  %v1487_v9 = vsel %vm1475_vm2, %v5337_v6, %v5336_v57 }
 0x179   : > { %928 = vrot.lane.b32.xlu1 %v3408_v26, %s3087_s9  ;;  %v1649_v31 = vsel %vm1640_vm9, %v1616_v16, %v1204_v27  ;;  %v1650_v2 = vsel %vm1640_vm9, %v1617_v51, %v1206_v32  ;;  %v1520_v55 = vsel %vm1508_vm6, %v1487_v9, %v5339_v40  ;;  %v5346_v51 = vld [vmem:[#allocation7_spill] sm:$0xff]  ;;  %v5354_v40 = vld [vmem:[#allocation40_spill] sm:$0xff] }
 0x17a   : > { %1225 = vrot.lane.b32.xlu0 %v5326_v48, %s3090_s20  ;;  %v1553_v53 = vsel %vm1541_vm5, %v1520_v55, %v5340_v25 }
 0x17b   : > { %v1300_v47 = vpop.permute.xlu1 %1299 }
 0x17c   : > { %v1011_v63 = vpop.permute.xlu0 %1010  ;;  %v1682_v14 = vsel %vm1673_vm10, %v1649_v31, %v1300_v47 }
 0x17d   : > { %1319 = vrot.lane.b32.xlu1 %v5327_v52, %s3091_s23  ;;  %v1585_v10 = vsel %vm1574_vm7, %v1552_v15, %v1011_v63  ;;  %v5341_v63 = vld [vmem:[#allocation36_spill] sm:$0xff]  ;;  %v1522_v15 = vsel %vm1508_vm6, %v1489_v41, %v5353_v45 }
 0x17e   : > { %930 = vrot.lane.b32.xlu0 %v5326_v48, %s3087_s9  ;;  %v5366_v45 = vld [vmem:[#allocation44_spill] sm:$0xff] }
 0x17f   : > { %v1302_v44 = vpop.permute.xlu1 %1301 }
 0x180   : > { %v1396_v8 = vpop.permute.xlu0 %1395  ;;  %v1683_v56 = vsel %vm1673_vm10, %v1650_v2, %v1302_v44  ;;  %v5342_v44 = vld [vmem:[#allocation50_spill] sm:$0xff]  ;;  %v1488_v2 = vsel %vm1475_vm2, %v5346_v51, %v5345_v22  ;;  %v5362_v51 = vld [vmem:[#allocation63_spill] sm:$0xff] }
 0x181   : > { %v1715_v34 = vsel %vm1706_vm11, %v1682_v14, %v1396_v8  ;;  %1030 = vrot.lane.b32.xlu1 %v5327_v52, %s3088_s14 }
 0x182   : > { %1321 = vrot.lane.b32.xlu0 %v5328_v30, %s3091_s23  ;;  %2910 = vmatprep.mubr.msk.f32.mxu0 %vm1751_vm12, %v1715_v34 }
 0x183   : > { %v1013_v39 = vpop.permute.xlu1 %1012 }
 0x184   : > { %v1112_v36 = vpop.permute.xlu0 %1111  ;;  %v1586_v54 = vsel %vm1574_vm7, %v1553_v53, %v1013_v39 }
 0x185   : > { %1415 = vrot.lane.b32.xlu1 %v3672_v58, %s3092_s27  ;;  %v1618_v24 = vsel %vm1607_vm8, %v1585_v10, %v1112_v36 }
 0x186   : > { %1032 = vrot.lane.b32.xlu0 %v5328_v30, %s3088_s14 }
 0x187   : > { %v1398_v19 = vpop.permute.xlu1 %1397 }
 0x188   : > { %v1114_v18 = vpop.permute.xlu0 %1113  ;;  %v1716_v17 = vsel %vm1706_vm11, %v1683_v56, %v1398_v19  ;;  %v5347_v56 = vld [vmem:[#allocation34_spill] sm:$0xff] }
 0x189   : > { %1131 = vrot.lane.b32.xlu1 %v3672_v58, %s3089_s15  ;;  %2911 = vmatmul.mubr.msk.f32.gmra.mrb[8].mxu0 %vm1751_vm12, %v1716_v17  ;;  %v5333_v58 = vld [vmem:[#allocation29_spill] sm:$0xff]  ;;  %v1619_v47 = vsel %vm1607_vm8, %v1586_v54, %v1114_v18  ;;  %v5348_v19 = vld [vmem:[#allocation82_spill] sm:$0xff] }
 0x18a   : > { %1417 = vrot.lane.b32.xlu0 %v5329_v37, %s3092_s27  ;;  %v1521_v18 = vsel %vm1508_vm6, %v1488_v2, %v5348_v19  ;;  %v5349_v17 = vld [vmem:[#allocation97_spill] sm:$0xff]  ;;  %v5363_v2 = vld [vmem:[#allocation11_spill] sm:$0xff] }
 0x18b   : > { %v1208_v23 = vpop.permute.xlu1 %1207  ;;  %v5356_v54 = vld [vmem:[#allocation53_spill] sm:$0xff]  ;;  %v1491_v19 = vsel %vm1475_vm2, %v5363_v2, %v5362_v51  ;;  %v3049_v2 = vld [vmem:[%s3163_s29 + $0x20] sm:$0xff] }
 0x18c   : > { %v1210_v60 = vpop.permute.xlu0 %1209  ;;  %v1651_v28 = vsel %vm1640_vm9, %v1618_v24, %v1208_v23 }
 0x18d   : > { %1133 = vrot.lane.b32.xlu1 %v5329_v37, %s3089_s15  ;;  %v1652_v42 = vsel %vm1640_vm9, %v1619_v47, %v1210_v60  ;;  %v1554_v37 = vsel %vm1541_vm5, %v1521_v18, %v5349_v17  ;;  %v5364_v17 = vld [vmem:[#allocation43_spill] sm:$0xff] }
 0x18e   : > { %1227 = vrot.lane.b32.xlu0 %v5330_v46, %s3090_s20 }
 0x18f   : > { %v1304_v38 = vpop.permute.xlu1 %1303 }
 0x190   : > { %v915_v3 = vpop.permute.xlu0 %914  ;;  %v1684_v27 = vsel %vm1673_vm10, %v1651_v28, %v1304_v38 }
 0x191   : > { %932 = vrot.lane.b32.xlu1 %v5330_v46, %s3087_s9  ;;  %v1555_v10 = vsel %vm1541_vm5, %v1522_v15, %v915_v3 }
 0x192   : > { %1229 = vrot.lane.b32.xlu0 %v5333_v58, %s3090_s20 }
 0x193   : > { %v1015_v50 = vpop.permute.xlu1 %1014 }
 0x194   : > { %v1306_v20 = vpop.permute.xlu0 %1305  ;;  %v1587_v38 = vsel %vm1574_vm7, %v1554_v37, %v1015_v50  ;;  %v5365_v37 = vld [vmem:[#allocation85_spill] sm:$0xff] }
 0x195   : > { %1323 = vrot.lane.b32.xlu1 %v5338_v35, %s3091_s23  ;;  %v1685_v16 = vsel %vm1673_vm10, %v1652_v42, %v1306_v20 }
 0x196   : > { %934 = vrot.lane.b32.xlu0 %v5333_v58, %s3087_s9 }
 0x197   : > { %v1400_v32 = vpop.permute.xlu1 %1399 }
 0x198   : > { %v1017_v12 = vpop.permute.xlu0 %1016  ;;  %v1717_v29 = vsel %vm1706_vm11, %v1684_v27, %v1400_v32  ;;  %v5355_v27 = vld [vmem:[#allocation52_spill] sm:$0xff] }
 0x199   : > { %1034 = vrot.lane.b32.xlu1 %v5338_v35, %s3088_s14  ;;  %2913 = vmatprep.mubr.msk.f32.mxu0 %vm1751_vm12, %v1717_v29  ;;  %v1588_v9 = vsel %vm1574_vm7, %v1555_v10, %v1017_v12 }
 0x19a   : > { %1325 = vrot.lane.b32.xlu0 %v5341_v63, %s3091_s23 }
 0x19b   : > { %v1116_v52 = vpop.permute.xlu1 %1115 }
 0x19c   : > { %v1402_v31 = vpop.permute.xlu0 %1401  ;;  %v1620_v13 = vsel %vm1607_vm8, %v1587_v38, %v1116_v52  ;;  %v5358_v52 = vld [vmem:[#allocation62_spill] sm:$0xff] }
 0x19d   : > { %v1718_v14 = vsel %vm1706_vm11, %v1685_v16, %v1402_v31  ;;  %1419 = vrot.lane.b32.xlu1 %v5342_v44, %s3092_s27  ;;  %v5359_v31 = vld [vmem:[#allocation12_spill] sm:$0xff] }
 0x19e   : > { %1036 = vrot.lane.b32.xlu0 %v5341_v63, %s3088_s14  ;;  %2914 = vmatmul.mubr.msk.f32.gmra.mrb[10].mxu0 %vm1751_vm12, %v1718_v14  ;;  %v5357_v63 = vld [vmem:[#allocation38_spill] sm:$0xff]  ;;  %v1490_v14 = vsel %vm1475_vm2, %v5359_v31, %v5358_v52 }
 0x19f   : > { %v1118_v8 = vpop.permute.xlu1 %1117 }
 0x1a0   : > { %v1212_v34 = vpop.permute.xlu0 %1211  ;;  %v1621_v35 = vsel %vm1607_vm8, %v1588_v9, %v1118_v8  ;;  %v5361_v8 = vld [vmem:[#allocation84_spill] sm:$0xff] }
 0x1a1   : > { %1135 = vrot.lane.b32.xlu1 %v5342_v44, %s3089_s15  ;;  %v1653_v20 = vsel %vm1640_vm9, %v1620_v13, %v1212_v34  ;;  %v5360_v44 = vld [vmem:[#allocation37_spill] sm:$0xff]  ;;  %v1523_v34 = vsel %vm1508_vm6, %v1490_v14, %v5361_v8 }
 0x1a2   : > { %1421 = vrot.lane.b32.xlu0 %v5343_v0, %s3092_s27  ;;  %v3048_v8 = vld [vmem:[%s3163_s29 + $0x18] sm:$0xff] }
 0x1a3   : > { %v917_v30 = vpop.permute.xlu1 %916 }
 0x1a4   : > { %v1214_v43 = vpop.permute.xlu0 %1213 }
 0x1a5   : > { %1137 = vrot.lane.b32.xlu1 %v5343_v0, %s3089_s15  ;;  %v1654_v55 = vsel %vm1640_vm9, %v1621_v35, %v1214_v43  ;;  %v1556_v0 = vsel %vm1541_vm5, %v1523_v34, %v917_v30  ;;  %v5373_v34 = vld [vmem:[#allocation65_spill] sm:$0xff] }
 0x1a6   : > { %1231 = vrot.lane.b32.xlu0 %v5344_v5, %s3090_s20 }
 0x1a7   : > { %v1308_v39 = vpop.permute.xlu1 %1307 }
 0x1a8   : > { %v919_v36 = vpop.permute.xlu0 %918  ;;  %v1686_v50 = vsel %vm1673_vm10, %v1653_v20, %v1308_v39 }
 0x1a9   : > { %936 = vrot.lane.b32.xlu1 %v5344_v5, %s3087_s9 }
 0x1aa   : > { %1233 = vrot.lane.b32.xlu0 %v5347_v56, %s3090_s20 }
 0x1ab   : > { %v1019_v23 = vpop.permute.xlu1 %1018 }
 0x1ac   : > { %v1310_v60 = vpop.permute.xlu0 %1309  ;;  %v1589_v22 = vsel %vm1574_vm7, %v1556_v0, %v1019_v23  ;;  %v1493_v0 = vsel %vm1475_vm2, %v5317_v4, %v5373_v34  ;;  %v3058_v34 = vld [vmem:[%s3163_s29 + $0x68] sm:$0xff] }
 0x1ad   : > { %1327 = vrot.lane.b32.xlu1 %v5352_v1, %s3091_s23  ;;  %v1687_v3 = vsel %vm1673_vm10, %v1654_v55, %v1310_v60  ;;  %v1524_v60 = vsel %vm1508_vm6, %v1491_v19, %v5365_v37  ;;  %v2077_v55 = vld [vmem:[%s5091_s3] sm:$0xf] }
 0x1ae   : > { %938 = vrot.lane.b32.xlu0 %v5347_v56, %s3087_s9  ;;  %v1557_v38 = vsel %vm1541_vm5, %v1524_v60, %v919_v36  ;;  %2946 = vmatprep.subr.msk.mxu1 %vm1848_vm4, %v2077_v55 }
 0x1af   : > { %v1404_v57 = vpop.permute.xlu1 %1403  ;;  %2947 = vmatpush3.msk.msra.mxu1 %vm1848_vm4, %v2077_v55 }
 0x1b0   : > { %v1021_v6 = vpop.permute.xlu0 %1020  ;;  %v1719_v24 = vsel %vm1706_vm11, %v1686_v50, %v1404_v57  ;;  %v5367_v57 = vld [vmem:[#allocation54_spill] sm:$0xff] }
 0x1b1   : > { %1038 = vrot.lane.b32.xlu1 %v5352_v1, %s3088_s14  ;;  %2916 = vmatprep.mubr.msk.f32.mxu0 %vm1751_vm12, %v1719_v24  ;;  %v1590_v41 = vsel %vm1574_vm7, %v1557_v38, %v1021_v6  ;;  %v5368_v24 = vld [vmem:[#allocation55_spill] sm:$0xff] }
 0x1b2   : > { %1329 = vrot.lane.b32.xlu0 %v5354_v40, %s3091_s23 }
 0x1b3   : > { %v1120_v28 = vpop.permute.xlu1 %1119 }
 0x1b4   : > { %v1406_v25 = vpop.permute.xlu0 %1405  ;;  %v1622_v18 = vsel %vm1607_vm8, %v1589_v22, %v1120_v28  ;;  %v5374_v22 = vld [vmem:[#allocation45_spill] sm:$0xff] }
 0x1b5   : > { %v1720_v53 = vsel %vm1706_vm11, %v1687_v3, %v1406_v25  ;;  %1423 = vrot.lane.b32.xlu1 %v5355_v27, %s3092_s27  ;;  %v5369_v3 = vld [vmem:[#allocation41_spill] sm:$0xff] }
 0x1b6   : > { %1040 = vrot.lane.b32.xlu0 %v5354_v40, %s3088_s14  ;;  %2917 = vmatmul.mubr.msk.f32.gmra.mrb[12].mxu0 %vm1751_vm12, %v1720_v53  ;;  %v3046_v53 = vld [vmem:[%s3163_s29 + $0x8] sm:$0xff] }
 0x1b7   : > { %v1122_v32 = vpop.permute.xlu1 %1121  ;;  %2949 = vmatmul.mubr.msk.f32.vlgmr.msra.gmra.mrb[0].mxu1 %vm1475_vm2, %v3046_v53 }
 0x1b8   : > { %v1216_v12 = vpop.permute.xlu0 %1215  ;;  %v1623_v1 = vsel %vm1607_vm8, %v1590_v41, %v1122_v32 }
 0x1b9   : > { %1139 = vrot.lane.b32.xlu1 %v5355_v27, %s3089_s15  ;;  %v1655_v30 = vsel %vm1640_vm9, %v1622_v18, %v1216_v12  ;;  %v5370_v27 = vld [vmem:[#allocation64_spill] sm:$0xff]  ;;  %v5371_v12 = vld [vmem:[#allocation42_spill] sm:$0xff] }
 0x1ba   : > { %1425 = vrot.lane.b32.xlu0 %v5356_v54, %s3092_s27  ;;  %v1492_v32 = vsel %vm1475_vm2, %v3335_v61, %v5370_v27 }
 0x1bb   : > { %v921_v29 = vpop.permute.xlu1 %920 }
 0x1bc   : > { %v1218_v47 = vpop.permute.xlu0 %1217 }
 0x1bd   : > { %1141 = vrot.lane.b32.xlu1 %v5356_v54, %s3089_s15  ;;  %v1656_v15 = vsel %vm1640_vm9, %v1623_v1, %v1218_v47  ;;  %v5372_v54 = vld [vmem:[#allocation86_spill] sm:$0xff]  ;;  %v4494_v1 = vld [vmem:[%s3163_s29 + $0xf0] sm:$0xff] }
 0x1be   : > { %1235 = vrot.lane.b32.xlu0 %v5357_v63, %s3090_s20  ;;  %v1525_v47 = vsel %vm1508_vm6, %v1492_v32, %v5372_v54  ;;  %v3056_v54 = vld [vmem:[%s3163_s29 + $0x58] sm:$0xff] }
 0x1bf   : > { %v1312_v42 = vpop.permute.xlu1 %1311  ;;  %v1558_v52 = vsel %vm1541_vm5, %v1525_v47, %v921_v29  ;;  %v5375_v29 = vld [vmem:[#allocation8_spill] sm:$0xff] }
 0x1c0   : > { %v4383_v16 = vpop.permute.xlu0 %922  ;;  %v1688_v23 = vsel %vm1673_vm10, %v1655_v30, %v1312_v42  ;;  %v3047_v42 = vld [vmem:[%s3163_s29 + $0x10] sm:$0xff]  ;;  %v1526_v51 = vsel %vm1508_vm6, %v1493_v0, %v5375_v29  ;;  %v3050_v30 = vld [vmem:[%s3163_s29 + $0x28] sm:$0xff]  ;;  %v5379_v0 = vld [vmem:[#allocation66_spill] sm:$0xff] }
 0x1c1   : > { %940 = vrot.lane.b32.xlu1 %v5357_v63, %s3087_s9  ;;  %2951 = vmatprep.mubr.msk.f32.mxu1 %vm1475_vm2, %v3047_v42  ;;  %v1559_v4 = vsel %vm1541_vm5, %v1526_v51, %v4383_v16  ;;  %v5376_v16 = vld [vmem:[#allocation46_spill] sm:$0xff] }
 0x1c2   : > { %1237 = vrot.lane.b32.xlu0 %v5360_v44, %s3090_s20  ;;  %2952 = vmatmul.mubr.msk.f32.gmra.mrb[2].mxu1 %vm1475_vm2, %v3048_v8 }
 0x1c3   : > { %v1023_v43 = vpop.permute.xlu1 %1022  ;;  %2954 = vmatprep.mubr.msk.f32.mxu1 %vm1475_vm2, %v3049_v2  ;;  %v3059_v2 = vld [vmem:[%s3163_s29 + $0x70] sm:$0xff] }
 0x1c4   : > { %v1314_v39 = vpop.permute.xlu0 %1313  ;;  %v1591_v61 = vsel %vm1574_vm7, %v1558_v52, %v1023_v43  ;;  %v3057_v52 = vld [vmem:[%s3163_s29 + $0x60] sm:$0xff] }
 0x1c5   : > { %1331 = vrot.lane.b32.xlu1 %v5364_v17, %s3091_s23  ;;  %v1689_v36 = vsel %vm1673_vm10, %v1656_v15, %v1314_v39  ;;  %v4498_v15 = vld [vmem:[%s3163_s29 + $0xf8] sm:$0xff] }
 0x1c6   : > { %942 = vrot.lane.b32.xlu0 %v5360_v44, %s3087_s9  ;;  %2955 = vmatmul.mubr.msk.f32.gmra.mrb[4].mxu1 %vm1475_vm2, %v3050_v30  ;;  %v3060_v30 = vld [vmem:[%s3163_s29 + $0x78] sm:$0xff] }
 0x1c7   : > { %v1408_v7 = vpop.permute.xlu1 %1407 }
 0x1c8   : > { %v1025_v21 = vpop.permute.xlu0 %1024  ;;  %v1721_v13 = vsel %vm1706_vm11, %v1688_v23, %v1408_v7  ;;  %v3051_v7 = vld [vmem:[%s3163_s29 + $0x30] sm:$0xff] }
 0x1c9   : > { %1042 = vrot.lane.b32.xlu1 %v5364_v17, %s3088_s14  ;;  %2919 = vmatprep.mubr.msk.f32.mxu0 %vm1751_vm12, %v1721_v13  ;;  %v1592_v37 = vsel %vm1574_vm7, %v1559_v4, %v1025_v21 }
 0x1ca   : > { %1333 = vrot.lane.b32.xlu0 %v5366_v45, %s3091_s23  ;;  %2957 = vmatprep.mubr.msk.f32.mxu1 %vm1475_vm2, %v3051_v7 }
 0x1cb   : > { %v1124_v20 = vpop.permute.xlu1 %1123 }
 0x1cc   : > { %v1410_v10 = vpop.permute.xlu0 %1409  ;;  %v1624_v39 = vsel %vm1607_vm8, %v1591_v61, %v1124_v20  ;;  %v5377_v20 = vld [vmem:[#allocation56_spill] sm:$0xff] }
 0x1cd   : > { %v1722_v50 = vsel %vm1706_vm11, %v1689_v36, %v1410_v10  ;;  %1427 = vrot.lane.b32.xlu1 %v5367_v57, %s3092_s27  ;;  %v3052_v36 = vld [vmem:[%s3163_s29 + $0x38] sm:$0xff]  ;;  %v415_v10 = vrot.slane %v4494_v1, 7 }
 0x1ce   : > { %1044 = vrot.lane.b32.xlu0 %v5366_v45, %s3088_s14  ;;  %2920 = vmatmul.mubr.msk.f32.gmra.mrb[14].mxu0 %vm1751_vm12, %v1722_v50  ;;  %v3053_v50 = vld [vmem:[%s3163_s29 + $0x40] sm:$0xff] }
 0x1cf   : > { %v1126_v6 = vpop.permute.xlu1 %1125  ;;  %2958 = vmatmul.mubr.msk.f32.gmra.mrb[6].mxu1 %vm1475_vm2, %v3052_v36  ;;  %v483_v55 = vsel %vm367_vm0, 0.0, %v415_v10 }
 0x1d0   : > { %v1220_v9 = vpop.permute.xlu0 %1219  ;;  %v1625_v38 = vsel %vm1607_vm8, %v1592_v37, %v1126_v6  ;;  %2960 = vmatprep.mubr.msk.f32.mxu1 %vm1475_vm2, %v3053_v50  ;;  %v985_v47 = vrot.slane %v483_v55, 1  ;;  %v3062_v50 = vld [vmem:[%s3163_s29 + $0x88] sm:$0xff] }
 0x1d1   : > { %1143 = vrot.lane.b32.xlu1 %v5367_v57, %s3089_s15  ;;  %v1657_v43 = vsel %vm1640_vm9, %v1624_v39, %v1220_v9  ;;  %v416_v9 = vrot.slane %v4498_v15, 7  ;;  %v1494_v39 = vsel %vm1475_vm2, %v3354_v11, %v5379_v0 }
 0x1d2   : > { %1429 = vrot.lane.b32.xlu0 %v5368_v24, %s3092_s27 }
 0x1d3   : > { %v4429_v35 = vpop.permute.xlu1 %924  ;;  %v4523_v32 = vsel %vm367_vm0, %v415_v10, %v416_v9  ;;  %v500_v8 = vsel %vm367_vm0, %v416_v9, 0.0 }
 0x1d4   : > { %v1222_v40 = vpop.permute.xlu0 %1221  ;;  %v986_v42 = vrot.slane %v4523_v32, 1  ;;  %v1087_v7 = vrot.slane %v4523_v32, 2 }
 0x1d5   : > { %1145 = vrot.lane.b32.xlu1 %v5368_v24, %s3089_s15  ;;  %v1658_v23 = vsel %vm1640_vm9, %v1625_v38, %v1222_v40  ;;  %v3054_v24 = vld [vmem:[%s3163_s29 + $0x48] sm:$0xff]  ;;  %v5378_v40 = vld [vmem:[#allocation57_spill] sm:$0xff] }
 0x1d6   : > { %1239 = vrot.lane.b32.xlu0 %v5369_v3, %s3090_s20  ;;  %2961 = vmatmul.mubr.msk.f32.gmra.mrb[8].mxu1 %vm1475_vm2, %v3054_v24  ;;  %v987_v51 = vsel %vm533_vm1, %v985_v47, %v986_v42  ;;  %v5382_v38 = vld [vmem:[#allocation87_spill] sm:$0xff]  ;;  %v3063_v24 = vld [vmem:[%s3163_s29 + $0x90] sm:$0xff] }
 0x1d7   : > { %v1316_v28 = vpop.permute.xlu1 %1315 }
 0x1d8   : > { %v4439_v25 = vpop.permute.xlu0 %926  ;;  %v1690_v19 = vsel %vm1673_vm10, %v1657_v43, %v1316_v28  ;;  %v3055_v28 = vld [vmem:[%s3163_s29 + $0x50] sm:$0xff]  ;;  %v988_v43 = vrot.slane %v500_v8, 1 }
 0x1d9   : > { %944 = vrot.lane.b32.xlu1 %v5369_v3, %s3087_s9  ;;  %2963 = vmatprep.mubr.msk.f32.mxu1 %vm1475_vm2, %v3055_v28 }
 0x1da   : > { %1241 = vrot.lane.b32.xlu0 %v5371_v12, %s3090_s20  ;;  %2964 = vmatmul.mubr.msk.f32.gmra.mrb[10].mxu1 %vm1475_vm2, %v3056_v54  ;;  %v3065_v54 = vld [vmem:[%s3163_s29 + $0xa0] sm:$0xff] }
 0x1db   : > { %v4456_v31 = vpop.permute.xlu1 %1026  ;;  %2966 = vmatprep.mubr.msk.f32.mxu1 %vm1475_vm2, %v3057_v52  ;;  %v3066_v52 = vld [vmem:[%s3163_s29 + $0xa8] sm:$0xff] }
 0x1dc   : > { %v1318_v14 = vpop.permute.xlu0 %1317 }
 0x1dd   : > { %1335 = vrot.lane.b32.xlu1 %v5374_v22, %s3091_s23  ;;  %v1691_v21 = vsel %vm1673_vm10, %v1658_v23, %v1318_v14 }
 0x1de   : > { %946 = vrot.lane.b32.xlu0 %v5371_v12, %s3087_s9  ;;  %2967 = vmatmul.mubr.msk.f32.gmra.mrb[12].mxu1 %vm1475_vm2, %v3058_v34  ;;  %v3067_v34 = vld [vmem:[%s3163_s29 + $0xb0] sm:$0xff] }
 0x1df   : > { %v1412_v18 = vpop.permute.xlu1 %1411  ;;  %2969 = vmatprep.mubr.msk.f32.mxu1 %vm1475_vm2, %v3059_v2  ;;  %v5384_v2 = vld [vmem:[#allocation68_spill] sm:$0xff] }
 0x1e0   : > { %v4477_v17 = vpop.permute.xlu0 %1028  ;;  %v1723_v60 = vsel %vm1706_vm11, %v1690_v19, %v1412_v18  ;;  %v5381_v18 = vld [vmem:[#allocation67_spill] sm:$0xff] }
 0x1e1   : > { %1046 = vrot.lane.b32.xlu1 %v5374_v22, %s3088_s14  ;;  %2922 = vmatprep.mubr.msk.f32.mxu0 %vm1751_vm12, %v1723_v60  ;;  %v5380_v22 = vld [vmem:[#allocation47_spill] sm:$0xff]  ;;  %v1495_v37 = vsel %vm1475_vm2, %v5320_v62, %v5381_v18  ;;  %v1086_v62 = vrot.slane %v483_v55, 2  ;;  %v5386_v18 = vld [vmem:[#allocation26_spill] sm:$0xff] }
 0x1e2   : > { %1337 = vrot.lane.b32.xlu0 %v5376_v16, %s3091_s23  ;;  %v1527_v29 = vsel %vm1508_vm6, %v1494_v39, %v5380_v22  ;;  %2970 = vmatmul.mubr.msk.f32.gmra.mrb[14].mxu1 %vm1475_vm2, %v3060_v30  ;;  %v3068_v22 = vld [vmem:[%s3163_s29 + $0xb8] sm:$0xff]  ;;  %v3071_v30 = vld [vmem:[%s3163_s29 + $0xd0] sm:$0xff] }
 0x1e3   : > { %v1128_v41 = vpop.permute.xlu1 %1127  ;;  %v1560_v4 = vsel %vm1541_vm5, %v1527_v29, %v4429_v35  ;;  %v1088_v9 = vsel %vm710_vm3, %v1086_v62, %v1087_v7  ;;  %v3069_v29 = vld [vmem:[%s3163_s29 + $0xc0] sm:$0xff]  ;;  %v3072_v62 = vld [vmem:[%s3163_s29 + $0xd8] sm:$0xff] }
 0x1e4   : > { %v1414_v13 = vpop.permute.xlu0 %1413  ;;  %v1593_v60 = vsel %vm1574_vm7, %v1560_v4, %v4456_v31  ;;  %v989_v31 = vsel %vm533_vm1, %v986_v42, %v988_v43  ;;  %v3070_v43 = vld [vmem:[%s3163_s29 + $0xc8] sm:$0xff]  ;;  %v1496_v4 = vsel %vm1475_vm2, %v3379_v49, %v5384_v2  ;;  %v4635_v49 = vld [vmem:[%s5090_s2] ss:$0 sm:$0xff] }
 0x1e5   : > { %v1724_v45 = vsel %vm1706_vm11, %v1691_v21, %v1414_v13  ;;  %1431 = vrot.lane.b32.xlu1 %v5377_v20, %s3092_s27  ;;  %v1626_v23 = vsel %vm1607_vm8, %v1593_v60, %v1128_v41  ;;  %v3061_v21 = vld [vmem:[%s3163_s29 + $0x80] sm:$0xff] }
 0x1e6   : > { %1048 = vrot.lane.b32.xlu0 %v5376_v16, %s3088_s14  ;;  %2923 = vmatmul.mubr.msk.f32.gmra.mrb[16].mxu0 %vm1751_vm12, %v1724_v45  ;;  %v1528_v16 = vsel %vm1508_vm6, %v1495_v37, %v5382_v38  ;;  %v5387_v37 = vld [vmem:[#allocation88_spill] sm:$0xff]  ;;  %v5390_v2 = vld [vmem:[#allocation70_spill] sm:$0xff] }
 0x1e7   : > { %v1130_v57 = vpop.permute.xlu1 %1129  ;;  %2972 = vmatprep.mubr.msk.f32.mxu1 %vm1475_vm2, %v3061_v21  ;;  %v1561_v13 = vsel %vm1541_vm5, %v1528_v16, %v4439_v25  ;;  %v1529_v60 = vsel %vm1508_vm6, %v1496_v4, %v5387_v37  ;;  %v1498_v4 = vsel %vm1475_vm2, %v3408_v26, %v5390_v2 }
 0x1e8   : > { %v1224_v6 = vpop.permute.xlu0 %1223  ;;  %2973 = vmatmul.mubr.msk.f32.gmra.mrb[16].mxu1 %vm1475_vm2, %v3062_v50 }
 0x1e9   : > { %1147 = vrot.lane.b32.xlu1 %v5377_v20, %s3089_s15  ;;  %v1659_v35 = vsel %vm1640_vm9, %v1626_v23, %v1224_v6  ;;  %v1594_v20 = vsel %vm1574_vm7, %v1561_v13, %v4477_v17  ;;  %v1089_v17 = vrot.slane %v500_v8, 2  ;;  %2975 = vmatprep.mubr.msk.f32.mxu1 %vm1475_vm2, %v3063_v24  ;;  %v3073_v13 = vld [vmem:[%s3163_s29 + $0xe0] sm:$0xff] }
 0x1ea   : > { %1433 = vrot.lane.b32.xlu0 %v5378_v40, %s3092_s27  ;;  %v1627_v6 = vsel %vm1607_vm8, %v1594_v20, %v1130_v57 }
 0x1eb   : > { %v4520_v53 = vpop.permute.xlu1 %928 }
 0x1ec   : > { %v1226_v27 = vpop.permute.xlu0 %1225  ;;  %v1562_v38 = vsel %vm1541_vm5, %v1529_v60, %v4520_v53 }
 0x1ed   : > { %1149 = vrot.lane.b32.xlu1 %v5378_v40, %s3089_s15  ;;  %v1660_v25 = vsel %vm1640_vm9, %v1627_v6, %v1226_v27  ;;  %v1090_v27 = vsel %vm710_vm3, %v1087_v7, %v1089_v17  ;;  %v5388_v7 = vld [vmem:[#allocation69_spill] sm:$0xff] }
 0x1ee   : > { %1243 = vrot.lane.b32.xlu0 %v483_v55, %s3090_s20 }
 0x1ef   : > { %v1320_v14 = vpop.permute.xlu1 %1319 }
 0x1f0   : > { %v4533_v61 = vpop.permute.xlu0 %930  ;;  %v1692_v41 = vsel %vm1673_vm10, %v1659_v35, %v1320_v14  ;;  %v5383_v14 = vld [vmem:[#allocation3_spill] sm:$0xff] }
 0x1f1   : > { %948 = vrot.lane.b32.xlu1 %v483_v55, %s3087_s9  ;;  %v3031_v8 = vpack.i.bf16 %v5316_v33, %v5383_v14 }
 0x1f2   : > { %1245 = vrot.lane.b32.xlu0 %v4523_v32, %s3090_s20 }
 0x1f3   : > { %v4551_v19 = vpop.permute.xlu1 %1030 }
 0x1f4   : > { %v1322_v11 = vpop.permute.xlu0 %1321  ;;  %v1595_v35 = vsel %vm1574_vm7, %v1562_v38, %v4551_v19  ;;  %v5389_v19 = vld [vmem:[#allocation89_spill] sm:$0xff] }
 0x1f5   : > { %1339 = vrot.lane.b32.xlu1 %v987_v51, %s3091_s23  ;;  %v1693_v40 = vsel %vm1673_vm10, %v1660_v25, %v1322_v11  ;;  %v5385_v11 = vld [vmem:[#allocation4_spill] sm:$0xff] }
 0x1f6   : > { %950 = vrot.lane.b32.xlu0 %v4523_v32, %s3087_s9  ;;  %v3064_v32 = vld [vmem:[%s3163_s29 + $0x98] sm:$0xff] }
 0x1f7   : > { %v1416_v45 = vpop.permute.xlu1 %1415  ;;  %2976 = vmatmul.mubr.msk.f32.gmra.mrb[18].mxu1 %vm1475_vm2, %v3064_v32 }
 0x1f8   : > { %v4574_v36 = vpop.permute.xlu0 %1032  ;;  %v1725_v10 = vsel %vm1706_vm11, %v1692_v41, %v1416_v45  ;;  %2978 = vmatprep.mubr.msk.f32.mxu1 %vm1475_vm2, %v3065_v54 }
 0x1f9   : > { %1050 = vrot.lane.b32.xlu1 %v987_v51, %s3088_s14  ;;  %2925 = vmatprep.mubr.msk.f32.mxu0 %vm1751_vm12, %v1725_v10 }
 0x1fa   : > { %1341 = vrot.lane.b32.xlu0 %v989_v31, %s3091_s23 }
 0x1fb   : > { %v1132_v55 = vpop.permute.xlu1 %1131  ;;  %2979 = vmatmul.mubr.msk.f32.gmra.mrb[20].mxu1 %vm1475_vm2, %v3066_v52 }
 0x1fc   : > { %v1418_v57 = vpop.permute.xlu0 %1417  ;;  %2981 = vmatprep.mubr.msk.f32.mxu1 %vm1475_vm2, %v3067_v34  ;;  %v1628_v21 = vsel %vm1607_vm8, %v1595_v35, %v1132_v55 }
 0x1fd   : > { %v1726_v28 = vsel %vm1706_vm11, %v1693_v40, %v1418_v57  ;;  %1435 = vrot.lane.b32.xlu1 %v1088_v9, %s3092_s27  ;;  %v3074_v57 = vld [vmem:[%s3163_s29 + $0xe8] sm:$0xff] }
 0x1fe   : > { %1052 = vrot.lane.b32.xlu0 %v989_v31, %s3088_s14  ;;  %2926 = vmatmul.mubr.msk.f32.gmra.mrb[18].mxu0 %vm1751_vm12, %v1726_v28  ;;  %v1497_v31 = vsel %vm1475_vm2, %v5323_v59, %v5388_v7 }
 0x1ff   : > { %v1134_v47 = vpop.permute.xlu1 %1133  ;;  %2982 = vmatmul.mubr.msk.f32.gmra.mrb[22].mxu1 %vm1475_vm2, %v3068_v22  ;;  %v1530_v41 = vsel %vm1508_vm6, %v1497_v31, %v5389_v19 }
 0x200   : > { %v1228_v42 = vpop.permute.xlu0 %1227  ;;  %2984 = vmatprep.mubr.msk.f32.mxu1 %vm1475_vm2, %v3069_v29  ;;  %v1563_v10 = vsel %vm1541_vm5, %v1530_v41, %v4533_v61 }
 0x201   : > { %1151 = vrot.lane.b32.xlu1 %v1088_v9, %s3089_s15  ;;  %v1661_v45 = vsel %vm1640_vm9, %v1628_v21, %v1228_v42  ;;  %v1596_v17 = vsel %vm1574_vm7, %v1563_v10, %v4574_v36 }
 0x202   : > { %1437 = vrot.lane.b32.xlu0 %v1090_v27, %s3092_s27  ;;  %v1629_v61 = vsel %vm1607_vm8, %v1596_v17, %v1134_v47 }
 0x203   : > { %v4607_v0 = vpop.permute.xlu1 %932  ;;  %2985 = vmatmul.mubr.msk.f32.gmra.mrb[24].mxu1 %vm1475_vm2, %v3070_v43 }
 0x204   : > { %v1230_v39 = vpop.permute.xlu0 %1229  ;;  %2987 = vmatprep.mubr.msk.f32.mxu1 %vm1475_vm2, %v3071_v30 }
 0x205   : > { %1153 = vrot.lane.b32.xlu1 %v1090_v27, %s3089_s15  ;;  %v1662_v36 = vsel %vm1640_vm9, %v1629_v61, %v1230_v39 }
 0x206   : > { %3032 = vrot.lane.b32.xlu0 %v3031_v8, %s3090_s20 }
 0x207   : > { %v1324_v51 = vpop.permute.xlu1 %1323  ;;  %2988 = vmatmul.mubr.msk.f32.gmra.mrb[26].mxu1 %vm1475_vm2, %v3072_v62  ;;  %v5392_v62 = vld [vmem:[#allocation71_spill] sm:$0xff] }
 0x208   : > { %v4615_v33 = vpop.permute.xlu0 %934  ;;  %2990 = vmatprep.mubr.msk.f32.mxu1 %vm1475_vm2, %v3073_v13  ;;  %v1694_v50 = vsel %vm1673_vm10, %v1661_v45, %v1324_v51  ;;  %v1499_v7 = vsel %vm1475_vm2, %v5326_v48, %v5392_v62  ;;  %v5393_v13 = vld [vmem:[#allocation91_spill] sm:$0xff] }
 0x209   : > { %3037 = vrot.lane.b32.xlu1 %v5385_v11, %s3091_s23  ;;  %v1532_v19 = vsel %vm1508_vm6, %v1499_v7, %v5393_v13 }
 0x20a   : > { %3042 = vrot.lane.b32.xlu0 %v5386_v18, %s3092_s27  ;;  %v5391_v18 = vld [vmem:[#allocation90_spill] sm:$0xff]  ;;  %v1565_v48 = vsel %vm1541_vm5, %v1532_v19, %v4615_v33 }
 0x20b   : > { %v1035_v16 = vpop.permute.xlu1 %1034  ;;  %2991 = vmatmul.mubr.msk.f32.gmra.mrb[28].mxu1 %vm1475_vm2, %v3074_v57 }
 0x20c   : > { %v1326_v23 = vpop.permute.xlu0 %1325  ;;  %v2900_v53 = vpop.f32.mrb[0].mxu0  ;;  %2993 = vmatprep.mubr.msk.f32.mxu1 %vm1475_vm2, %v4494_v1 }
 0x20d   : > { %v1924_v59 = vadd.f32 %v2900_v53, %v4635_v49  ;;  %v1918_v20 = vpop.f32.mrb[1].mxu0  ;;  %v1695_v42 = vsel %vm1673_vm10, %v1662_v36, %v1326_v23 }
 0x20e   : > { %v1919_v6 = vadd.f32 %v4635_v49, %v1918_v20 }
 0x20f   : > { %v1420_v25 = vpop.permute.xlu1 %1419  ;;  %2378 = vst.msk [vmem:[%s4649_s12 + $0x8] sm:$0xff] %vm1508_vm6, %v1924_v59  ;;  %v2442_v24 = vsel %vm1508_vm6, %v1924_v59, 0.0  ;;  %v2511_v40 = vmul.f32 %v1924_v59, %v1924_v59  ;;  %2994 = vmatmul.mubr.msk.f32.gmra.mrb[30].mxu1 %vm1475_vm2, %v4498_v15  ;;  %v1531_v15 = vsel %vm1508_vm6, %v1498_v4, %v5391_v18 }
 0x210   : > { %v1037_v9 = vpop.permute.xlu0 %1036  ;;  %v1727_v55 = vsel %vm1706_vm11, %v1694_v50, %v1420_v25  ;;  %2377 = vst.msk [vmem:[%s4649_s12] sm:$0xff] %vm1508_vm6, %v1919_v6  ;;  %v2441_v28 = vsel %vm1508_vm6, %v1919_v6, 0.0  ;;  %v2510_v32 = vmul.f32 %v1919_v6, %v1919_v6  ;;  %v1564_v30 = vsel %vm1541_vm5, %v1531_v15, %v4607_v0 }
 0x211   : > { %2928 = vmatprep.mubr.msk.f32.mxu0 %vm1751_vm12, %v1727_v55  ;;  %v2543_v27 = vsel %vm1508_vm6, %v2511_v40, 0.0  ;;  %v2443_v54 = vadd.f32 %v2442_v24, %v2441_v28  ;;  %v1597_v26 = vsel %vm1574_vm7, %v1564_v30, %v1035_v16  ;;  %v1598_v6 = vsel %vm1574_vm7, %v1565_v48, %v1037_v9 }
 0x212   : > { %v2542_v52 = vsel %vm1508_vm6, %v2510_v32, 0.0 }
 0x213   : > { %v1136_v47 = vpop.permute.xlu1 %1135  ;;  %v2544_v8 = vadd.f32 %v2543_v27, %v2542_v52 }
 0x214   : > { %v1422_v14 = vpop.permute.xlu0 %1421  ;;  %v1630_v31 = vsel %vm1607_vm8, %v1597_v26, %v1136_v47  ;;  %v5396_v26 = vld [vmem:[#allocation73_spill] sm:$0xff] }
 0x215   : > { %v1728_v34 = vsel %vm1706_vm11, %v1695_v42, %v1422_v14 }
 0x216   : > { %2929 = vmatmul.mubr.msk.f32.gmra.mrb[20].mxu0 %vm1751_vm12, %v1728_v34 }
 0x217   : > { %v1138_v1 = vpop.permute.xlu1 %1137 }
 0x218   : > { %v1232_v22 = vpop.permute.xlu0 %1231  ;;  %v1631_v40 = vsel %vm1607_vm8, %v1598_v6, %v1138_v1 }
 0x219   : > { %v1663_v41 = vsel %vm1640_vm9, %v1630_v31, %v1232_v22  ;;  %v5394_v22 = vld [vmem:[#allocation72_spill] sm:$0xff]  ;;  %v1501_v31 = vsel %vm1475_vm2, %v5333_v58, %v5396_v26 }
 0x21b   : > { %v4684_v39 = vpop.permute.xlu1 %936 }
 0x21c   : > { %v1234_v29 = vpop.permute.xlu0 %1233 }
 0x21d   : > { %v1664_v33 = vsel %vm1640_vm9, %v1631_v40, %v1234_v29  ;;  %v1500_v29 = vsel %vm1475_vm2, %v5330_v46, %v5394_v22 }
 0x21f   : > { %v1328_v51 = vpop.permute.xlu1 %1327 }
 0x220   : > { %v4686_v43 = vpop.permute.xlu0 %938  ;;  %v2903_v11 = vpop.f32.mrb[2].mxu0  ;;  %v1696_v16 = vsel %vm1673_vm10, %v1663_v41, %v1328_v51 }
 0x221   : > { %v1934_v37 = vadd.f32 %v2903_v11, %v4635_v49  ;;  %v1928_v60 = vpop.f32.mrb[3].mxu0  ;;  %v5395_v11 = vld [vmem:[#allocation92_spill] sm:$0xff] }
 0x222   : > { %v1929_v38 = vadd.f32 %v4635_v49, %v1928_v60  ;;  %v1533_v18 = vsel %vm1508_vm6, %v1500_v29, %v5395_v11 }
 0x223   : > { %v1039_v23 = vpop.permute.xlu1 %1038  ;;  %2380 = vst.msk [vmem:[%s4649_s12 + $0x18] sm:$0xff] %vm1508_vm6, %v1934_v37  ;;  %v2513_v21 = vmul.f32 %v1934_v37, %v1934_v37  ;;  %v2446_v59 = vsel %vm1508_vm6, %v1934_v37, 0.0  ;;  %v1566_v37 = vsel %vm1541_vm5, %v1533_v18, %v4684_v39 }
 0x224   : > { %v1330_v35 = vpop.permute.xlu0 %1329  ;;  %2379 = vst.msk [vmem:[%s4649_s12 + $0x10] sm:$0xff] %vm1508_vm6, %v1929_v38  ;;  %v2444_v53 = vsel %vm1508_vm6, %v1929_v38, 0.0  ;;  %v2512_v0 = vmul.f32 %v1929_v38, %v1929_v38  ;;  %v1599_v46 = vsel %vm1574_vm7, %v1566_v37, %v1039_v23 }
 0x225   : > { %v2445_v45 = vadd.f32 %v2444_v53, %v2443_v54  ;;  %v2547_v55 = vsel %vm1508_vm6, %v2513_v21, 0.0  ;;  %v1697_v61 = vsel %vm1673_vm10, %v1664_v33, %v1330_v35 }
 0x226   : > { %v2545_v20 = vsel %vm1508_vm6, %v2512_v0, 0.0  ;;  %v5397_v0 = vld [vmem:[#allocation10_spill] sm:$0xff] }
 0x227   : > { %v1424_v10 = vpop.permute.xlu1 %1423  ;;  %v2546_v25 = vadd.f32 %v2545_v20, %v2544_v8  ;;  %v2447_v24 = vadd.f32 %v2446_v59, %v2445_v45  ;;  %v1534_v39 = vsel %vm1508_vm6, %v1501_v31, %v5397_v0 }
 0x228   : > { %v1041_v50 = vpop.permute.xlu0 %1040  ;;  %v1729_v17 = vsel %vm1706_vm11, %v1696_v16, %v1424_v10  ;;  %v1567_v41 = vsel %vm1541_vm5, %v1534_v39, %v4686_v43 }
 0x229   : > { %2931 = vmatprep.mubr.msk.f32.mxu0 %vm1751_vm12, %v1729_v17  ;;  %v2548_v57 = vadd.f32 %v2547_v55, %v2546_v25  ;;  %v1600_v16 = vsel %vm1574_vm7, %v1567_v41, %v1041_v50 }
 0x22b   : > { %v1140_v28 = vpop.permute.xlu1 %1139 }
 0x22c   : > { %v1426_v32 = vpop.permute.xlu0 %1425  ;;  %v1632_v21 = vsel %vm1607_vm8, %v1599_v46, %v1140_v28 }
 0x22d   : > { %v1730_v9 = vsel %vm1706_vm11, %v1697_v61, %v1426_v32 }
 0x22e   : > { %2932 = vmatmul.mubr.msk.f32.gmra.mrb[22].mxu0 %vm1751_vm12, %v1730_v9 }
 0x22f   : > { %v1142_v36 = vpop.permute.xlu1 %1141 }
 0x230   : > { %v1236_v27 = vpop.permute.xlu0 %1235  ;;  %v1633_v59 = vsel %vm1607_vm8, %v1600_v16, %v1142_v36 }
 0x231   : > { %v1665_v13 = vsel %vm1640_vm9, %v1632_v21, %v1236_v27 }
 0x233   : > { %v4724_v54 = vpop.permute.xlu1 %940 }
 0x234   : > { %v1238_v42 = vpop.permute.xlu0 %1237  ;;  %v2906_v52 = vpop.f32.mrb[4].mxu0 }
 0x235   : > { %v1944_v47 = vadd.f32 %v2906_v52, %v4635_v49  ;;  %v1938_v14 = vpop.f32.mrb[5].mxu0  ;;  %v1666_v20 = vsel %vm1640_vm9, %v1633_v59, %v1238_v42 }
 0x236   : > { %v1939_v8 = vadd.f32 %v4635_v49, %v1938_v14 }
 0x237   : > { %v1332_v34 = vpop.permute.xlu1 %1331  ;;  %2382 = vst.msk [vmem:[%s4649_s12 + $0x28] sm:$0xff] %vm1508_vm6, %v1944_v47  ;;  %v2515_v51 = vmul.f32 %v1944_v47, %v1944_v47  ;;  %v2450_v60 = vsel %vm1508_vm6, %v1944_v47, 0.0 }
 0x238   : > { %v4728_v1 = vpop.permute.xlu0 %942  ;;  %2381 = vst.msk [vmem:[%s4649_s12 + $0x20] sm:$0xff] %vm1508_vm6, %v1939_v8  ;;  %v2448_v2 = vsel %vm1508_vm6, %v1939_v8, 0.0  ;;  %v2514_v4 = vmul.f32 %v1939_v8, %v1939_v8  ;;  %v1698_v23 = vsel %vm1673_vm10, %v1665_v13, %v1332_v34  ;;  %v5398_v34 = vld [vmem:[#allocation74_spill] sm:$0xff] }
 0x239   : > { %v2449_v15 = vadd.f32 %v2448_v2, %v2447_v24  ;;  %v2551_v53 = vsel %vm1508_vm6, %v2515_v51, 0.0  ;;  %v1502_v22 = vsel %vm1475_vm2, %v5344_v5, %v5398_v34  ;;  %v5399_v51 = vld [vmem:[#allocation93_spill] sm:$0xff] }
 0x23a   : > { %v2549_v30 = vsel %vm1508_vm6, %v2514_v4, 0.0  ;;  %v1535_v2 = vsel %vm1508_vm6, %v1502_v22, %v5399_v51  ;;  %v5401_v5 = vld [vmem:[#allocation13_spill] sm:$0xff] }
 0x23b   : > { %v1043_v38 = vpop.permute.xlu1 %1042  ;;  %v2550_v62 = vadd.f32 %v2549_v30, %v2548_v57  ;;  %v2451_v7 = vadd.f32 %v2450_v60, %v2449_v15  ;;  %v1568_v11 = vsel %vm1541_vm5, %v1535_v2, %v4724_v54  ;;  %v5400_v60 = vld [vmem:[#allocation75_spill] sm:$0xff] }
 0x23c   : > { %v1334_v35 = vpop.permute.xlu0 %1333  ;;  %v1601_v37 = vsel %vm1574_vm7, %v1568_v11, %v1043_v38  ;;  %v1503_v30 = vsel %vm1475_vm2, %v5347_v56, %v5400_v60 }
 0x23d   : > { %v2552_v19 = vadd.f32 %v2551_v53, %v2550_v62  ;;  %v1699_v10 = vsel %vm1673_vm10, %v1666_v20, %v1334_v35  ;;  %v1536_v46 = vsel %vm1508_vm6, %v1503_v30, %v5401_v5 }
 0x23f   : > { %v1428_v45 = vpop.permute.xlu1 %1427 }
 0x240   : > { %v1045_v48 = vpop.permute.xlu0 %1044  ;;  %v1731_v58 = vsel %vm1706_vm11, %v1698_v23, %v1428_v45 }
 0x241   : > { %2934 = vmatprep.mubr.msk.f32.mxu0 %vm1751_vm12, %v1731_v58 }
 0x243   : > { %v1144_v6 = vpop.permute.xlu1 %1143 }
 0x244   : > { %v1430_v43 = vpop.permute.xlu0 %1429  ;;  %v1634_v35 = vsel %vm1607_vm8, %v1601_v37, %v1144_v6 }
 0x245   : > { %v1732_v25 = vsel %vm1706_vm11, %v1699_v10, %v1430_v43 }
 0x246   : > { %2935 = vmatmul.mubr.msk.f32.gmra.mrb[24].mxu0 %vm1751_vm12, %v1732_v25 }
 0x247   : > { %v1146_v17 = vpop.permute.xlu1 %1145 }
 0x248   : > { %v1240_v50 = vpop.permute.xlu0 %1239  ;;  %v2909_v24 = vpop.f32.mrb[6].mxu0 }
 0x249   : > { %v1954_v40 = vadd.f32 %v2909_v24, %v4635_v49  ;;  %v1948_v55 = vpop.f32.mrb[7].mxu0  ;;  %v1667_v62 = vsel %vm1640_vm9, %v1634_v35, %v1240_v50 }
 0x24a   : > { %v1949_v33 = vadd.f32 %v4635_v49, %v1948_v55 }
 0x24b   : > { %v4766_v57 = vpop.permute.xlu1 %944  ;;  %2384 = vst.msk [vmem:[%s4649_s12 + $0x38] sm:$0xff] %vm1508_vm6, %v1954_v40  ;;  %v2517_v28 = vmul.f32 %v1954_v40, %v1954_v40  ;;  %v2454_v27 = vsel %vm1508_vm6, %v1954_v40, 0.0 }
 0x24c   : > { %v1242_v61 = vpop.permute.xlu0 %1241  ;;  %2383 = vst.msk [vmem:[%s4649_s12 + $0x30] sm:$0xff] %vm1508_vm6, %v1949_v33  ;;  %v2452_v32 = vsel %vm1508_vm6, %v1949_v33, 0.0  ;;  %v2516_v9 = vmul.f32 %v1949_v33, %v1949_v33 }
 0x24d   : > { %v2453_v36 = vadd.f32 %v2452_v32, %v2451_v7  ;;  %v2555_v29 = vsel %vm1508_vm6, %v2517_v28, 0.0  ;;  %v1569_v7 = vsel %vm1541_vm5, %v1536_v46, %v4728_v1  ;;  %v5402_v28 = vld [vmem:[#allocation76_spill] sm:$0xff] }
 0x24e   : > { %v2553_v42 = vsel %vm1508_vm6, %v2516_v9, 0.0  ;;  %v1602_v38 = vsel %vm1574_vm7, %v1569_v7, %v1045_v48  ;;  %v1504_v32 = vsel %vm1475_vm2, %v5357_v63, %v5402_v28  ;;  %v5403_v9 = vld [vmem:[#allocation48_spill] sm:$0xff] }
 0x24f   : > { %v1336_v52 = vpop.permute.xlu1 %1335  ;;  %v2554_v14 = vadd.f32 %v2553_v42, %v2552_v19  ;;  %v2455_v8 = vadd.f32 %v2454_v27, %v2453_v36  ;;  %v1635_v56 = vsel %vm1607_vm8, %v1602_v38, %v1146_v17  ;;  %v1537_v36 = vsel %vm1508_vm6, %v1504_v32, %v5403_v9 }
 0x250   : > { %v947_v47 = vpop.permute.xlu0 %946  ;;  %v1700_v54 = vsel %vm1673_vm10, %v1667_v62, %v1336_v52  ;;  %v1668_v53 = vsel %vm1640_vm9, %v1635_v56, %v1242_v61  ;;  %v1570_v27 = vsel %vm1541_vm5, %v1537_v36, %v4766_v57  ;;  %v5407_v56 = vld [vmem:[#allocation78_spill] sm:$0xff] }
 0x251   : > { %v2556_v4 = vadd.f32 %v2555_v29, %v2554_v14  ;;  %v5405_v29 = vld [vmem:[#allocation94_spill] sm:$0xff] }
 0x253   : > { %v1047_v18 = vpop.permute.xlu1 %1046 }
 0x254   : > { %v1338_v15 = vpop.permute.xlu0 %1337  ;;  %v1603_v14 = vsel %vm1574_vm7, %v1570_v27, %v1047_v18 }
 0x255   : > { %v1701_v0 = vsel %vm1673_vm10, %v1668_v53, %v1338_v15  ;;  %v1506_v53 = vsel %vm1475_vm2, %v5369_v3, %v5407_v56 }
 0x257   : > { %v1432_v26 = vpop.permute.xlu1 %1431 }
 0x258   : > { %v1049_v31 = vpop.permute.xlu0 %1048  ;;  %v1733_v21 = vsel %vm1706_vm11, %v1700_v54, %v1432_v26  ;;  %v5406_v54 = vld [vmem:[#allocation79_spill] sm:$0xff] }
 0x259   : > { %2937 = vmatprep.mubr.msk.f32.mxu0 %vm1751_vm12, %v1733_v21  ;;  %v1507_v26 = vsel %vm1475_vm2, %v5371_v12, %v5406_v54 }
 0x25b   : > { %v1148_v39 = vpop.permute.xlu1 %1147 }
 0x25c   : > { %v1434_v1 = vpop.permute.xlu0 %1433  ;;  %v2912_v19 = vpop.f32.mrb[8].mxu0  ;;  %v1636_v22 = vsel %vm1607_vm8, %v1603_v14, %v1148_v39 }
 0x25d   : > { %v1734_v13 = vsel %vm1706_vm11, %v1701_v0, %v1434_v1  ;;  %v1964_v41 = vadd.f32 %v2912_v19, %v4635_v49  ;;  %v1958_v23 = vpop.f32.mrb[9].mxu0  ;;  %v5408_v0 = vld [vmem:[#allocation96_spill] sm:$0xff] }
 0x25e   : > { %2938 = vmatmul.mubr.msk.f32.gmra.mrb[26].mxu0 %vm1751_vm12, %v1734_v13  ;;  %v1959_v45 = vadd.f32 %v4635_v49, %v1958_v23  ;;  %v1540_v39 = vsel %vm1508_vm6, %v1507_v26, %v5408_v0  ;;  %v5409_v13 = vld [vmem:[#allocation95_spill] sm:$0xff] }
 0x25f   : > { %v1150_v48 = vpop.permute.xlu1 %1149  ;;  %2386 = vst.msk [vmem:[%s4649_s12 + $0x48] sm:$0xff] %vm1508_vm6, %v1964_v41  ;;  %v2519_v58 = vmul.f32 %v1964_v41, %v1964_v41  ;;  %v2458_v6 = vsel %vm1508_vm6, %v1964_v41, 0.0  ;;  %v1539_v19 = vsel %vm1508_vm6, %v1506_v53, %v5409_v13 }
 0x260   : > { %v1244_v16 = vpop.permute.xlu0 %1243  ;;  %2385 = vst.msk [vmem:[%s4649_s12 + $0x40] sm:$0xff] %vm1508_vm6, %v1959_v45  ;;  %v2456_v59 = vsel %vm1508_vm6, %v1959_v45, 0.0  ;;  %v2518_v20 = vmul.f32 %v1959_v45, %v1959_v45 }
 0x261   : > { %v2457_v10 = vadd.f32 %v2456_v59, %v2455_v8  ;;  %v2559_v40 = vsel %vm1508_vm6, %v2519_v58, 0.0  ;;  %v5404_v8 = vld [vmem:[#allocation77_spill] sm:$0xff]  ;;  %v1669_v63 = vsel %vm1640_vm9, %v1636_v22, %v1244_v16 }
 0x262   : > { %v2557_v43 = vsel %vm1508_vm6, %v2518_v20, 0.0  ;;  %v1505_v34 = vsel %vm1475_vm2, %v5360_v44, %v5404_v8 }
 0x263   : > { %v949_v25 = vpop.permute.xlu1 %948  ;;  %v2558_v50 = vadd.f32 %v2557_v43, %v2556_v4  ;;  %v2459_v24 = vadd.f32 %v2458_v6, %v2457_v10  ;;  %v1538_v51 = vsel %vm1508_vm6, %v1505_v34, %v5405_v29 }
 0x264   : > { %v1246_v17 = vpop.permute.xlu0 %1245  ;;  %v1571_v2 = vsel %vm1541_vm5, %v1538_v51, %v947_v47 }
 0x265   : > { %v2560_v55 = vadd.f32 %v2559_v40, %v2558_v50  ;;  %v1604_v18 = vsel %vm1574_vm7, %v1571_v2, %v1049_v31 }
 0x266   : > { %v1637_v44 = vsel %vm1607_vm8, %v1604_v18, %v1150_v48  ;;  %v1572_v48 = vsel %vm1541_vm5, %v1539_v19, %v949_v25 }
 0x267   : > { %v1340_v33 = vpop.permute.xlu1 %1339  ;;  %v1670_v60 = vsel %vm1640_vm9, %v1637_v44, %v1246_v17 }
 0x268   : > { %v951_v61 = vpop.permute.xlu0 %950  ;;  %v1702_v57 = vsel %vm1673_vm10, %v1669_v63, %v1340_v33 }
 0x269   : > { %v1573_v12 = vsel %vm1541_vm5, %v1540_v39, %v951_v61 }
 0x26b   : > { %v1051_v42 = vpop.permute.xlu1 %1050 }
 0x26c   : > { %v1342_v52 = vpop.permute.xlu0 %1341  ;;  %v1605_v43 = vsel %vm1574_vm7, %v1572_v48, %v1051_v42 }
 0x26d   : > { %v1703_v35 = vsel %vm1673_vm10, %v1670_v60, %v1342_v52 }
 0x26f   : > { %v1436_v4 = vpop.permute.xlu1 %1435 }
 0x270   : > { %v1053_v11 = vpop.permute.xlu0 %1052  ;;  %v1735_v15 = vsel %vm1706_vm11, %v1702_v57, %v1436_v4 }
 0x271   : > { %v2915_v37 = vpop.f32.mrb[10].mxu0  ;;  %2940 = vmatprep.mubr.msk.f32.mxu0 %vm1751_vm12, %v1735_v15  ;;  %v1606_v16 = vsel %vm1574_vm7, %v1573_v12, %v1053_v11 }
 0x272   : > { %v1974_v30 = vadd.f32 %v2915_v37, %v4635_v49  ;;  %v1968_v47 = vpop.f32.mrb[11].mxu0 }
 0x273   : > { %v1969_v5 = vadd.f32 %v4635_v49, %v1968_v47  ;;  %v1152_v46 = vpop.permute.xlu1 %1151 }
 0x274   : > { %v1438_v62 = vpop.permute.xlu0 %1437  ;;  %2388 = vst.msk [vmem:[%s4649_s12 + $0x58] sm:$0xff] %vm1508_vm6, %v1974_v30  ;;  %v2521_v31 = vmul.f32 %v1974_v30, %v1974_v30  ;;  %v2462_v58 = vsel %vm1508_vm6, %v1974_v30, 0.0 }
 0x275   : > { %v1736_v7 = vsel %vm1706_vm11, %v1703_v35, %v1438_v62  ;;  %2387 = vst.msk [vmem:[%s4649_s12 + $0x50] sm:$0xff] %vm1508_vm6, %v1969_v5  ;;  %v2460_v38 = vsel %vm1508_vm6, %v1969_v5, 0.0  ;;  %v2520_v21 = vmul.f32 %v1969_v5, %v1969_v5 }
 0x276   : > { %2941 = vmatmul.mubr.msk.f32.gmra.mrb[28].mxu0 %vm1751_vm12, %v1736_v7  ;;  %v2461_v1 = vadd.f32 %v2460_v38, %v2459_v24  ;;  %v2563_v59 = vsel %vm1508_vm6, %v2521_v31, 0.0  ;;  %v1638_v24 = vsel %vm1607_vm8, %v1605_v43, %v1152_v46 }
 0x277   : > { %v2561_v41 = vsel %vm1508_vm6, %v2520_v21, 0.0  ;;  %v1154_v23 = vpop.permute.xlu1 %1153  ;;  %v4894_v21 = vld [vmem:[%s5092_s4] ss:$0 sm:$0xff] }
 0x278   : > { %v3033_v45 = vpop.permute.xlu0 %3032  ;;  %v2562_v3 = vadd.f32 %v2561_v41, %v2560_v55  ;;  %v2463_v6 = vadd.f32 %v2462_v58, %v2461_v1  ;;  %v1639_v17 = vsel %vm1607_vm8, %v1606_v16, %v1154_v23 }
 0x279   : > { %v3035_v20 = vunpack.i.h.bf16 %v3033_v45  ;;  %v3034_v10 = vunpack.i.l.bf16 %v3033_v45 }
 0x27a   : > { %v2564_v50 = vadd.f32 %v2563_v59, %v2562_v3 }
 0x27b   : > { %v3038_v40 = vpop.permute.xlu1 %3037  ;;  %v1672_v32 = vsel %vm1640_vm9, %v1639_v17, %v3035_v20  ;;  %v1671_v9 = vsel %vm1640_vm9, %v1638_v24, %v3034_v10 }
 0x27c   : > { %v3043_v33 = vpop.permute.xlu0 %3042  ;;  %v3040_v25 = vunpack.i.h.bf16 %v3038_v40  ;;  %v3039_v61 = vunpack.i.l.bf16 %v3038_v40 }
 0x27d   : > { %v3045_v28 = vunpack.i.h.bf16 %v3043_v33  ;;  %v3044_v55 = vunpack.i.l.bf16 %v3043_v33 }
 0x27e   : > { %v1704_v36 = vsel %vm1673_vm10, %v1671_v9, %v3039_v61  ;;  %v1705_v27 = vsel %vm1673_vm10, %v1672_v32, %v3040_v25 }
 0x27f   : > { %v1737_v42 = vsel %vm1706_vm11, %v1704_v36, %v3044_v55  ;;  %v1738_v52 = vsel %vm1706_vm11, %v1705_v27, %v3045_v28 }
 0x280   : > { %2943 = vmatprep.mubr.msk.f32.mxu0 %vm1751_vm12, %v1737_v42 }
 0x281   : > { %2944 = vmatmul.mubr.msk.f32.gmra.mrb[30].mxu0 %vm1751_vm12, %v1738_v52 }
 0x289   : > { %v2918_v14 = vpop.f32.mrb[12].mxu0 }
 0x28a   : > { %v1984_v8 = vadd.f32 %v2918_v14, %v4635_v49  ;;  %v1978_v34 = vpop.f32.mrb[13].mxu0  ;;  %v2950_v53 = vpop.f32.mrb[0].mxu1 }
 0x28b   : > { %v1979_v22 = vadd.f32 %v4635_v49, %v1978_v34  ;;  %v2224_v0 = vadd.f32 %v2950_v53, %v4894_v21  ;;  %v2218_v39 = vpop.f32.mrb[1].mxu1 }
 0x28c   : > { %2390 = vst.msk [vmem:[%s4649_s12 + $0x68] sm:$0xff] %vm1508_vm6, %v1984_v8  ;;  %v2523_v29 = vmul.f32 %v1984_v8, %v1984_v8  ;;  %v2466_v57 = vsel %vm1508_vm6, %v1984_v8, 0.0  ;;  %v2219_v1 = vadd.f32 %v4894_v21, %v2218_v39 }
 0x28d   : > { %2389 = vst.msk [vmem:[%s4649_s12 + $0x60] sm:$0xff] %vm1508_vm6, %v1979_v22  ;;  %v2464_v51 = vsel %vm1508_vm6, %v1979_v22, 0.0  ;;  %v2522_v63 = vmul.f32 %v1979_v22, %v1979_v22  ;;  %2410 = vst.msk [vmem:[%s4900_s16 + $0x8] sm:$0xff] %vm1508_vm6, %v2224_v0 }
 0x28e   : > { %v2465_v2 = vadd.f32 %v2464_v51, %v2463_v6  ;;  %v2567_v15 = vsel %vm1508_vm6, %v2523_v29, 0.0  ;;  %2409 = vst.msk [vmem:[%s4900_s16] sm:$0xff] %vm1508_vm6, %v2219_v1 }
 0x28f   : > { %v2565_v4 = vsel %vm1508_vm6, %v2522_v63, 0.0 }
 0x290   : > { %v2566_v11 = vadd.f32 %v2565_v4, %v2564_v50  ;;  %v2467_v18 = vadd.f32 %v2466_v57, %v2465_v2 }
 0x292   : > { %v2568_v44 = vadd.f32 %v2567_v15, %v2566_v11 }
 0x295   : > { %v2953_v13 = vpop.f32.mrb[2].mxu1 }
 0x296   : > { %v2234_v19 = vadd.f32 %v2953_v13, %v4894_v21  ;;  %v2228_v12 = vpop.f32.mrb[3].mxu1 }
 0x297   : > { %v2229_v41 = vadd.f32 %v4894_v21, %v2228_v12 }
 0x298   : > { %2412 = vst.msk [vmem:[%s4900_s16 + $0x18] sm:$0xff] %vm1508_vm6, %v2234_v19 }
 0x299   : > { %2411 = vst.msk [vmem:[%s4900_s16 + $0x10] sm:$0xff] %vm1508_vm6, %v2229_v41  ;;  %v2956_v23 = vpop.f32.mrb[4].mxu1 }
 0x29a   : > { %v2238_v45 = vpop.f32.mrb[5].mxu1  ;;  %v2244_v48 = vadd.f32 %v2956_v23, %v4894_v21 }
 0x29b   : > { %v2239_v16 = vadd.f32 %v4894_v21, %v2238_v45 }
 0x29c   : > { %2414 = vst.msk [vmem:[%s4900_s16 + $0x28] sm:$0xff] %vm1508_vm6, %v2244_v48 }
 0x29d   : > { %2413 = vst.msk [vmem:[%s4900_s16 + $0x20] sm:$0xff] %vm1508_vm6, %v2239_v16 }
 0x2a1   : > { %v2921_v37 = vpop.f32.mrb[14].mxu0 }
 0x2a2   : > { %v1994_v60 = vadd.f32 %v2921_v37, %v4635_v49  ;;  %v1988_v30 = vpop.f32.mrb[15].mxu0  ;;  %v2959_v58 = vpop.f32.mrb[6].mxu1 }
 0x2a3   : > { %v1989_v47 = vadd.f32 %v4635_v49, %v1988_v30  ;;  %v2254_v3 = vadd.f32 %v2959_v58, %v4894_v21  ;;  %v2248_v59 = vpop.f32.mrb[7].mxu1 }
 0x2a4   : > { %2392 = vst.msk [vmem:[%s4649_s12 + $0x78] sm:$0xff] %vm1508_vm6, %v1994_v60  ;;  %v2525_v35 = vmul.f32 %v1994_v60, %v1994_v60  ;;  %v2470_v7 = vsel %vm1508_vm6, %v1994_v60, 0.0  ;;  %v2249_v10 = vadd.f32 %v4894_v21, %v2248_v59 }
 0x2a5   : > { %2391 = vst.msk [vmem:[%s4649_s12 + $0x70] sm:$0xff] %vm1508_vm6, %v1989_v47  ;;  %v2468_v5 = vsel %vm1508_vm6, %v1989_v47, 0.0  ;;  %v2524_v46 = vmul.f32 %v1989_v47, %v1989_v47  ;;  %2416 = vst.msk [vmem:[%s4900_s16 + $0x38] sm:$0xff] %vm1508_vm6, %v2254_v3 }
 0x2a6   : > { %v2469_v62 = vadd.f32 %v2468_v5, %v2467_v18  ;;  %v2571_v38 = vsel %vm1508_vm6, %v2525_v35, 0.0  ;;  %2415 = vst.msk [vmem:[%s4900_s16 + $0x30] sm:$0xff] %vm1508_vm6, %v2249_v10 }
 0x2a7   : > { %v2569_v54 = vsel %vm1508_vm6, %v2524_v46, 0.0 }
 0x2a8   : > { %v2570_v26 = vadd.f32 %v2569_v54, %v2568_v44  ;;  %v2471_v31 = vadd.f32 %v2470_v7, %v2469_v62 }
 0x2a9   : > { %v2962_v50 = vpop.f32.mrb[8].mxu1 }
 0x2aa   : > { %v2572_v56 = vadd.f32 %v2571_v38, %v2570_v26  ;;  %v2264_v24 = vadd.f32 %v2962_v50, %v4894_v21  ;;  %v2258_v40 = vpop.f32.mrb[9].mxu1 }
 0x2ab   : > { %v2259_v28 = vadd.f32 %v4894_v21, %v2258_v40 }
 0x2ac   : > { %2418 = vst.msk [vmem:[%s4900_s16 + $0x48] sm:$0xff] %vm1508_vm6, %v2264_v24 }
 0x2ad   : > { %2417 = vst.msk [vmem:[%s4900_s16 + $0x40] sm:$0xff] %vm1508_vm6, %v2259_v28  ;;  %v2965_v36 = vpop.f32.mrb[10].mxu1 }
 0x2ae   : > { %v2274_v52 = vadd.f32 %v2965_v36, %v4894_v21  ;;  %v2268_v14 = vpop.f32.mrb[11].mxu1 }
 0x2af   : > { %v2269_v34 = vadd.f32 %v4894_v21, %v2268_v14 }
 0x2b0   : > { %2420 = vst.msk [vmem:[%s4900_s16 + $0x58] sm:$0xff] %vm1508_vm6, %v2274_v52 }
 0x2b1   : > { %2419 = vst.msk [vmem:[%s4900_s16 + $0x50] sm:$0xff] %vm1508_vm6, %v2269_v34  ;;  %v2968_v29 = vpop.f32.mrb[12].mxu1 }
 0x2b2   : > { %v2284_v51 = vadd.f32 %v2968_v29, %v4894_v21  ;;  %v2278_v63 = vpop.f32.mrb[13].mxu1 }
 0x2b3   : > { %v2279_v2 = vadd.f32 %v4894_v21, %v2278_v63 }
 0x2b4   : > { %2422 = vst.msk [vmem:[%s4900_s16 + $0x68] sm:$0xff] %vm1508_vm6, %v2284_v51 }
 0x2b5   : > { %2421 = vst.msk [vmem:[%s4900_s16 + $0x60] sm:$0xff] %vm1508_vm6, %v2279_v2  ;;  %v2971_v57 = vpop.f32.mrb[14].mxu1 }
 0x2b6   : > { %v2294_v4 = vadd.f32 %v2971_v57, %v4894_v21  ;;  %v2288_v11 = vpop.f32.mrb[15].mxu1 }
 0x2b7   : > { %v2289_v18 = vadd.f32 %v4894_v21, %v2288_v11 }
 0x2b8   : > { %2424 = vst.msk [vmem:[%s4900_s16 + $0x78] sm:$0xff] %vm1508_vm6, %v2294_v4 }
 0x2b9   : > { %v2924_v20 = vpop.f32.mrb[16].mxu0  ;;  %2423 = vst.msk [vmem:[%s4900_s16 + $0x70] sm:$0xff] %vm1508_vm6, %v2289_v18 }
 0x2ba   : > { %v2004_v6 = vadd.f32 %v2924_v20, %v4635_v49  ;;  %v1998_v43 = vpop.f32.mrb[17].mxu0 }
 0x2bb   : > { %v1999_v17 = vadd.f32 %v4635_v49, %v1998_v43  ;;  %v2974_v15 = vpop.f32.mrb[16].mxu1 }
 0x2bc   : > { %2394 = vst.msk [vmem:[%s4649_s12 + $0x88] sm:$0xff] %vm1508_vm6, %v2004_v6  ;;  %v2527_v33 = vmul.f32 %v2004_v6, %v2004_v6  ;;  %v2474_v32 = vsel %vm1508_vm6, %v2004_v6, 0.0  ;;  %v2298_v44 = vpop.f32.mrb[17].mxu1  ;;  %v2304_v37 = vadd.f32 %v2974_v15, %v4894_v21 }
 0x2bd   : > { %2393 = vst.msk [vmem:[%s4649_s12 + $0x80] sm:$0xff] %vm1508_vm6, %v1999_v17  ;;  %v2472_v25 = vsel %vm1508_vm6, %v1999_v17, 0.0  ;;  %v2526_v61 = vmul.f32 %v1999_v17, %v1999_v17  ;;  %v2299_v60 = vadd.f32 %v4894_v21, %v2298_v44 }
 0x2be   : > { %v2473_v55 = vadd.f32 %v2472_v25, %v2471_v31  ;;  %v2575_v8 = vsel %vm1508_vm6, %v2527_v33, 0.0  ;;  %2426 = vst.msk [vmem:[%s4900_s16 + $0x88] sm:$0xff] %vm1508_vm6, %v2304_v37 }
 0x2bf   : > { %v2573_v9 = vsel %vm1508_vm6, %v2526_v61, 0.0  ;;  %2425 = vst.msk [vmem:[%s4900_s16 + $0x80] sm:$0xff] %vm1508_vm6, %v2299_v60 }
 0x2c0   : > { %v2574_v27 = vadd.f32 %v2573_v9, %v2572_v56  ;;  %v2475_v42 = vadd.f32 %v2474_v32, %v2473_v55 }
 0x2c2   : > { %v2576_v22 = vadd.f32 %v2575_v8, %v2574_v27 }
 0x2ca   : > { %v2977_v30 = vpop.f32.mrb[18].mxu1 }
 0x2cb   : > { %v2314_v47 = vadd.f32 %v2977_v30, %v4894_v21  ;;  %v2308_v35 = vpop.f32.mrb[19].mxu1 }
 0x2cc   : > { %v2309_v46 = vadd.f32 %v4894_v21, %v2308_v35 }
 0x2cd   : > { %2428 = vst.msk [vmem:[%s4900_s16 + $0x98] sm:$0xff] %vm1508_vm6, %v2314_v47 }
 0x2ce   : > { %2427 = vst.msk [vmem:[%s4900_s16 + $0x90] sm:$0xff] %vm1508_vm6, %v2309_v46  ;;  %v2980_v26 = vpop.f32.mrb[20].mxu1 }
 0x2cf   : > { %v2324_v31 = vadd.f32 %v2980_v26, %v4894_v21  ;;  %v2318_v39 = vpop.f32.mrb[21].mxu1 }
 0x2d0   : > { %v2319_v19 = vadd.f32 %v4894_v21, %v2318_v39 }
 0x2d1   : > { %v2927_v5 = vpop.f32.mrb[18].mxu0  ;;  %2430 = vst.msk [vmem:[%s4900_s16 + $0xa8] sm:$0xff] %vm1508_vm6, %v2324_v31 }
 0x2d2   : > { %v2014_v62 = vadd.f32 %v2927_v5, %v4635_v49  ;;  %v2008_v7 = vpop.f32.mrb[19].mxu0  ;;  %2429 = vst.msk [vmem:[%s4900_s16 + $0xa0] sm:$0xff] %vm1508_vm6, %v2319_v19  ;;  %v2983_v45 = vpop.f32.mrb[22].mxu1 }
 0x2d3   : > { %v2009_v54 = vadd.f32 %v4635_v49, %v2008_v7  ;;  %v2328_v16 = vpop.f32.mrb[23].mxu1  ;;  %v2334_v58 = vadd.f32 %v2983_v45, %v4894_v21 }
 0x2d4   : > { %2396 = vst.msk [vmem:[%s4649_s12 + $0x98] sm:$0xff] %vm1508_vm6, %v2014_v62  ;;  %v2529_v38 = vmul.f32 %v2014_v62, %v2014_v62  ;;  %v2478_v1 = vsel %vm1508_vm6, %v2014_v62, 0.0  ;;  %v2329_v3 = vadd.f32 %v4894_v21, %v2328_v16 }
 0x2d5   : > { %2395 = vst.msk [vmem:[%s4649_s12 + $0x90] sm:$0xff] %vm1508_vm6, %v2009_v54  ;;  %v2476_v56 = vsel %vm1508_vm6, %v2009_v54, 0.0  ;;  %v2528_v53 = vmul.f32 %v2009_v54, %v2009_v54  ;;  %2432 = vst.msk [vmem:[%s4900_s16 + $0xb8] sm:$0xff] %vm1508_vm6, %v2334_v58 }
 0x2d6   : > { %v2477_v0 = vadd.f32 %v2476_v56, %v2475_v42  ;;  %v2579_v23 = vsel %vm1508_vm6, %v2529_v38, 0.0  ;;  %2431 = vst.msk [vmem:[%s4900_s16 + $0xb0] sm:$0xff] %vm1508_vm6, %v2329_v3  ;;  %v2986_v59 = vpop.f32.mrb[24].mxu1 }
 0x2d7   : > { %v2577_v13 = vsel %vm1508_vm6, %v2528_v53, 0.0  ;;  %v2338_v20 = vpop.f32.mrb[25].mxu1  ;;  %v2344_v10 = vadd.f32 %v2986_v59, %v4894_v21 }
 0x2d8   : > { %v2578_v12 = vadd.f32 %v2577_v13, %v2576_v22  ;;  %v2479_v41 = vadd.f32 %v2478_v1, %v2477_v0  ;;  %v2339_v6 = vadd.f32 %v4894_v21, %v2338_v20 }
 0x2d9   : > { %2434 = vst.msk [vmem:[%s4900_s16 + $0xc8] sm:$0xff] %vm1508_vm6, %v2344_v10 }
 0x2da   : > { %v2580_v48 = vadd.f32 %v2579_v23, %v2578_v12  ;;  %2433 = vst.msk [vmem:[%s4900_s16 + $0xc0] sm:$0xff] %vm1508_vm6, %v2339_v6  ;;  %v2989_v43 = vpop.f32.mrb[26].mxu1 }
 0x2db   : > { %v2348_v17 = vpop.f32.mrb[27].mxu1  ;;  %v2354_v50 = vadd.f32 %v2989_v43, %v4894_v21 }
 0x2dc   : > { %v2349_v24 = vadd.f32 %v4894_v21, %v2348_v17 }
 0x2dd   : > { %2436 = vst.msk [vmem:[%s4900_s16 + $0xd8] sm:$0xff] %vm1508_vm6, %v2354_v50 }
 0x2de   : > { %2435 = vst.msk [vmem:[%s4900_s16 + $0xd0] sm:$0xff] %vm1508_vm6, %v2349_v24  ;;  %v2992_v40 = vpop.f32.mrb[28].mxu1 }
 0x2df   : > { %v2358_v33 = vpop.f32.mrb[29].mxu1  ;;  %v2364_v25 = vadd.f32 %v2992_v40, %v4894_v21 }
 0x2e0   : > { %v2359_v61 = vadd.f32 %v4894_v21, %v2358_v33 }
 0x2e1   : > { %2438 = vst.msk [vmem:[%s4900_s16 + $0xe8] sm:$0xff] %vm1508_vm6, %v2364_v25 }
 0x2e2   : > { %2437 = vst.msk [vmem:[%s4900_s16 + $0xe0] sm:$0xff] %vm1508_vm6, %v2359_v61  ;;  %v2995_v9 = vpop.f32.mrb[30].mxu1 }
 0x2e3   : > { %v2368_v27 = vpop.f32.mrb[31].mxu1  ;;  %v2374_v42 = vadd.f32 %v2995_v9, %v4894_v21 }
 0x2e4   : > { %v2369_v34 = vadd.f32 %v4894_v21, %v2368_v27 }
 0x2e5   : > { %2440 = vst.msk [vmem:[%s4900_s16 + $0xf8] sm:$0xff] %vm1508_vm6, %v2374_v42 }
 0x2e6   : > { %2439 = vst.msk [vmem:[%s4900_s16 + $0xf0] sm:$0xff] %vm1508_vm6, %v2369_v34 }
 0x2e9   : > { %v2930_v28 = vpop.f32.mrb[20].mxu0 }
 0x2ea   : > { %v2024_v55 = vadd.f32 %v2930_v28, %v4635_v49  ;;  %v2018_v32 = vpop.f32.mrb[21].mxu0 }
 0x2eb   : > { %v2019_v36 = vadd.f32 %v4635_v49, %v2018_v32 }
 0x2ec   : > { %2398 = vst.msk [vmem:[%s4649_s12 + $0xa8] sm:$0xff] %vm1508_vm6, %v2024_v55  ;;  %v2531_v52 = vmul.f32 %v2024_v55, %v2024_v55  ;;  %v2482_v29 = vsel %vm1508_vm6, %v2024_v55, 0.0 }
 0x2ed   : > { %2397 = vst.msk [vmem:[%s4649_s12 + $0xa0] sm:$0xff] %vm1508_vm6, %v2019_v36  ;;  %v2480_v14 = vsel %vm1508_vm6, %v2019_v36, 0.0  ;;  %v2530_v8 = vmul.f32 %v2019_v36, %v2019_v36 }
 0x2ee   : > { %v2481_v22 = vadd.f32 %v2480_v14, %v2479_v41  ;;  %v2583_v57 = vsel %vm1508_vm6, %v2531_v52, 0.0 }
 0x2ef   : > { %v2581_v51 = vsel %vm1508_vm6, %v2530_v8, 0.0 }
 0x2f0   : > { %v2582_v63 = vadd.f32 %v2581_v51, %v2580_v48  ;;  %v2483_v2 = vadd.f32 %v2482_v29, %v2481_v22 }
 0x2f2   : > { %v2584_v4 = vadd.f32 %v2583_v57, %v2582_v63  ;;  %v3075_v63 = vld [vmem:[%s5090_s2] ss:$0 sm:$0xff] }
 0x301   : > { %v2933_v11 = vpop.f32.mrb[22].mxu0 }
 0x302   : > { %v2034_v18 = vadd.f32 %v2933_v11, %v4635_v49  ;;  %v2028_v15 = vpop.f32.mrb[23].mxu0 }
 0x303   : > { %v2029_v21 = vadd.f32 %v4635_v49, %v2028_v15 }
 0x304   : > { %2400 = vst.msk [vmem:[%s4649_s12 + $0xb8] sm:$0xff] %vm1508_vm6, %v2034_v18  ;;  %v2533_v44 = vmul.f32 %v2034_v18, %v2034_v18  ;;  %v2486_v47 = vsel %vm1508_vm6, %v2034_v18, 0.0 }
 0x305   : > { %2399 = vst.msk [vmem:[%s4649_s12 + $0xb0] sm:$0xff] %vm1508_vm6, %v2029_v21  ;;  %v2484_v37 = vsel %vm1508_vm6, %v2029_v21, 0.0  ;;  %v2532_v60 = vmul.f32 %v2029_v21, %v2029_v21 }
 0x306   : > { %v2485_v30 = vadd.f32 %v2484_v37, %v2483_v2  ;;  %v2587_v62 = vsel %vm1508_vm6, %v2533_v44, 0.0 }
 0x307   : > { %v2585_v35 = vsel %vm1508_vm6, %v2532_v60, 0.0 }
 0x308   : > { %v2586_v5 = vadd.f32 %v2585_v35, %v2584_v4  ;;  %v2487_v46 = vadd.f32 %v2486_v47, %v2485_v30 }
 0x30a   : > { %v2588_v7 = vadd.f32 %v2587_v62, %v2586_v5 }
 0x319   : > { %v2936_v54 = vpop.f32.mrb[24].mxu0 }
 0x31a   : > { %v2044_v26 = vadd.f32 %v2936_v54, %v4635_v49  ;;  %v2038_v31 = vpop.f32.mrb[25].mxu0 }
 0x31b   : > { %v2039_v38 = vadd.f32 %v4635_v49, %v2038_v31 }
 0x31c   : > { %2402 = vst.msk [vmem:[%s4649_s12 + $0xc8] sm:$0xff] %vm1508_vm6, %v2044_v26  ;;  %v2535_v56 = vmul.f32 %v2044_v26, %v2044_v26  ;;  %v2490_v1 = vsel %vm1508_vm6, %v2044_v26, 0.0 }
 0x31d   : > { %2401 = vst.msk [vmem:[%s4649_s12 + $0xc0] sm:$0xff] %vm1508_vm6, %v2039_v38  ;;  %v2488_v53 = vsel %vm1508_vm6, %v2039_v38, 0.0  ;;  %v2534_v0 = vmul.f32 %v2039_v38, %v2039_v38 }
 0x31e   : > { %v2489_v39 = vadd.f32 %v2488_v53, %v2487_v46  ;;  %v2591_v41 = vsel %vm1508_vm6, %v2535_v56, 0.0 }
 0x31f   : > { %v2589_v13 = vsel %vm1508_vm6, %v2534_v0, 0.0 }
 0x320   : > { %v2590_v19 = vadd.f32 %v2589_v13, %v2588_v7  ;;  %v2491_v12 = vadd.f32 %v2490_v1, %v2489_v39 }
 0x322   : > { %v2592_v23 = vadd.f32 %v2591_v41, %v2590_v19 }
 0x331   : > { %v2939_v45 = vpop.f32.mrb[26].mxu0 }
 0x332   : > { %v2054_v48 = vadd.f32 %v2939_v45, %v4635_v49  ;;  %v2048_v16 = vpop.f32.mrb[27].mxu0 }
 0x333   : > { %v2049_v58 = vadd.f32 %v4635_v49, %v2048_v16 }
 0x334   : > { %2404 = vst.msk [vmem:[%s4649_s12 + $0xd8] sm:$0xff] %vm1508_vm6, %v2054_v48  ;;  %v2537_v3 = vmul.f32 %v2054_v48, %v2054_v48  ;;  %v2494_v6 = vsel %vm1508_vm6, %v2054_v48, 0.0 }
 0x335   : > { %2403 = vst.msk [vmem:[%s4649_s12 + $0xd0] sm:$0xff] %vm1508_vm6, %v2049_v58  ;;  %v2492_v59 = vsel %vm1508_vm6, %v2049_v58, 0.0  ;;  %v2536_v20 = vmul.f32 %v2049_v58, %v2049_v58 }
 0x336   : > { %v2493_v10 = vadd.f32 %v2492_v59, %v2491_v12  ;;  %v2595_v24 = vsel %vm1508_vm6, %v2537_v3, 0.0 }
 0x337   : > { %v2593_v43 = vsel %vm1508_vm6, %v2536_v20, 0.0 }
 0x338   : > { %v2594_v17 = vadd.f32 %v2593_v43, %v2592_v23  ;;  %v2495_v50 = vadd.f32 %v2494_v6, %v2493_v10 }
 0x33a   : > { %v2596_v40 = vadd.f32 %v2595_v24, %v2594_v17 }
 0x349   : > { %v2942_v33 = vpop.f32.mrb[28].mxu0 }
 0x34a   : > { %v2064_v25 = vadd.f32 %v2942_v33, %v4635_v49  ;;  %v2058_v61 = vpop.f32.mrb[29].mxu0 }
 0x34b   : > { %v2059_v28 = vadd.f32 %v4635_v49, %v2058_v61 }
 0x34c   : > { %2406 = vst.msk [vmem:[%s4649_s12 + $0xe8] sm:$0xff] %vm1508_vm6, %v2064_v25  ;;  %v2539_v55 = vmul.f32 %v2064_v25, %v2064_v25  ;;  %v2498_v27 = vsel %vm1508_vm6, %v2064_v25, 0.0 }
 0x34d   : > { %2405 = vst.msk [vmem:[%s4649_s12 + $0xe0] sm:$0xff] %vm1508_vm6, %v2059_v28  ;;  %v2496_v32 = vsel %vm1508_vm6, %v2059_v28, 0.0  ;;  %v2538_v9 = vmul.f32 %v2059_v28, %v2059_v28 }
 0x34e   : > { %v2497_v36 = vadd.f32 %v2496_v32, %v2495_v50  ;;  %v2599_v8 = vsel %vm1508_vm6, %v2539_v55, 0.0 }
 0x34f   : > { %v2597_v42 = vsel %vm1508_vm6, %v2538_v9, 0.0 }
 0x350   : > { %v2598_v52 = vadd.f32 %v2597_v42, %v2596_v40  ;;  %v2499_v14 = vadd.f32 %v2498_v27, %v2497_v36 }
 0x352   : > { %v2600_v34 = vadd.f32 %v2599_v8, %v2598_v52 }
 0x354   : > { %v2945_v22 = vpop.f32.mrb[30].mxu0 }
 0x355   : > { %v2074_v29 = vadd.f32 %v2945_v22, %v4635_v49  ;;  %v2068_v51 = vpop.f32.mrb[31].mxu0 }
 0x356   : > { %v2069_v2 = vadd.f32 %v3075_v63, %v2068_v51 }
 0x357   : > { %2408 = vst.msk [vmem:[%s4649_s12 + $0xf8] sm:$0xff] %vm1508_vm6, %v2074_v29  ;;  %v2541_v57 = vmul.f32 %v2074_v29, %v2074_v29  ;;  %v2502_v15 = vsel %vm1508_vm6, %v2074_v29, 0.0 }
 0x358   : > { %2407 = vst.msk [vmem:[%s4649_s12 + $0xf0] sm:$0xff] %vm1508_vm6, %v2069_v2  ;;  %v2500_v4 = vsel %vm1508_vm6, %v2069_v2, 0.0  ;;  %v2540_v11 = vmul.f32 %v2069_v2, %v2069_v2 }
 0x359   : > { %v2501_v18 = vadd.f32 %v2500_v4, %v2499_v14  ;;  %v2603_v37 = vsel %vm1508_vm6, %v2541_v57, 0.0 }
 0x35a   : > { %v2601_v49 = vsel %vm1508_vm6, %v2540_v11, 0.0 }
 0x35b   : > { %v2503_v21 = vadd.f32 %v2502_v15, %v2501_v18  ;;  %v2602_v44 = vadd.f32 %v2601_v49, %v2600_v34 }
 0x35d   : > { %v2504_v60 = vrot.slane %v2503_v21, 4  ;;  %v2604_v30 = vadd.f32 %v2603_v37, %v2602_v44 }
 0x35f   : > { %v2505_v47 = vadd.f32 %v2504_v60, %v2503_v21  ;;  %v2605_v35 = vrot.slane %v2604_v30, 4 }
 0x361   : > { %v2506_v5 = vrot.slane %v2505_v47, 2  ;;  %v2606_v46 = vadd.f32 %v2605_v35, %v2604_v30 }
 0x363   : > { %v2507_v62 = vadd.f32 %v2506_v5, %v2505_v47  ;;  %v2607_v7 = vrot.slane %v2606_v46, 2 }
 0x365   : > { %v2508_v54 = vrot.slane %v2507_v62, 1  ;;  %v2608_v26 = vadd.f32 %v2607_v7, %v2606_v46 }
 0x367   : > { %v2609_v31 = vrot.slane %v2608_v26, 1  ;;  %v2509_v38 = vadd.f32 %v2508_v54, %v2507_v62 }
 0x369   : > { %v2610_v56 = vadd.f32 %v2609_v31, %v2608_v26 }
 0x36b   : > { %v2611_v53 = vsel %vm367_vm0, %v2509_v38, %v2610_v56 }
 0x36c   : > { %2613 = vst.msk [vmem:[%s301_s21] sm:$0x3] %vm2612_vm13, %v2611_v53 }
 0x36d PF: > { %s18_s24 = sadd.s32 1, %s3082_s24  }
 0x36e   : > { %p15_p4 = scmp.ge.s32.totalorder %s18_s24, 4  }
 0x370   :  { %17 = sbr.rel (!%p15_p4) target bundleno = 1 (0x1), region = 94 }

// kernel: residual_block.3
= control target key start
LH: loop header
LB: loop body
LE: loop exit
PB: predicated region body
PF: predicated region fallthrough
CT: control target
= control target key end

     0   :  { %s2777_s21 = smov 0   ;;  %s4656_s0 = inlined_call_operand.vmem [shape: f32[2,256,8], index: 0, kind: input, shape index: {}]   ;;  %s4657_s1 = inlined_call_operand.vmem [shape: f32[2,1,8], index: 1, kind: input, shape index: {}]   ;;  %s4658_s2 = inlined_call_operand.vmem [shape: f32[2,8], index: 2, kind: input, shape index: {}]   ;;  %s4659_s3 = inlined_call_operand.vmem [shape: f32[72,8], index: 3, kind: input, shape index: {}]   ;;  %s4660_s4 = inlined_call_operand.vmem [shape: f32[1,8], index: 4, kind: input, shape index: {}]   ;;  %s4661_s5 = inlined_call_operand.vmem [shape: f32[2,256,8], index: 5, kind: output, shape index: {0}]   ;;  %s4662_s6 = inlined_call_operand.vmem [shape: f32[2,2,8], index: 6, kind: output, shape index: {1}]  }
   0x1 LB: > { %s2497_s22 = sadd.s32 4294967295, %s2731_s21   ;;  %p2501_p0 = scmp.ge.s32.totalorder %s2731_s21, 1  ;;  %s2731_s21 = sphi %s2777_s21, %s17_s21  }
   0x2   : > { %p223_p1 = scmp.lt.s32.totalorder %s2731_s21, 3 }
   0x4   : > { %p224_p2 = pnand %p2501_p0, %p223_p1 }
   0x6   : > { %227 = sbr.rel (%p224_p2) target bundleno = 891 (0x37b), region = 40 }
   0xd   : > { %vm487_vm0 = vcmask 1040384   ;;  %p260_p3 = scmp.lt.s32.totalorder %s2497_s22, 1  ;;  %v2733_v0 = vmov 0.0   ;;  %vm653_vm1 = vcmask 1046528   ;;  %vm830_vm2 = vcmask 1045504   ;;  %s2734_s10 = smov 8  }
   0xe   : > { %v2785_v1 = vrot.slane %v2733_v0, 7  ;;  %v2799_v5 = vld [vmem:[%s4658_s2] ss:$0 sm:$0xff]  ;;  %v2815_v11 = vld [vmem:[%s4658_s2 + $0x1] ss:$0 sm:$0xff]  ;;  %s2735_s11 = smov 16  }
   0xf   : > { %s4983_s22 = smov (!%p260_p3, %s2497_s22), 1  ;;  %s2736_s12 = smov 24   ;;  %vm1595_vm3 = vcmask 64512   ;;  %vm1661_vm4 = vcmask 195584   ;;  %vm1628_vm5 = vcmask 130048   ;;  %vm1694_vm6 = vcmask 261120  }
  0x10   : > { %4771 = vst [vmem:[#allocation2_spill] sm:$0xff] %v2785_v1  ;;  %v2791_v2 = vsel %vm487_vm0, 0.0, %v2785_v1  ;;  %v604_v3 = vsel %vm487_vm0, %v2785_v1, 0.0  ;;  %v655_v4 = vrot.slane %v2785_v1, 1  ;;  %v832_v6 = vrot.slane %v2785_v1, 2  ;;  %s2545_s25 = sshll.u32 %s4983_s22, 8  ;;  %s2834_s9 = scalar_lea.vmem %s4657_s1, %s4983_s22 }
  0x11   : > { %4772 = vst [vmem:[#allocation3_spill] sm:$0xff] %v2791_v2  ;;  %v654_v7 = vrot.slane %v2791_v2, 1  ;;  %v657_v8 = vrot.slane %v604_v3, 1  ;;  %v834_v9 = vrot.slane %v604_v3, 2  ;;  %v831_v10 = vrot.slane %v2791_v2, 2  ;;  %s2810_s28 = scalar_lea.vmem %s4656_s0, %s2545_s25  ;;  %s2737_s29 = smov 32  }
  0x12   : > { %v277_v14 = vld [vmem:[%s2810_s28] sm:$0xff]  ;;  %v278_v15 = vld [vmem:[%s2810_s28 + $0x8] sm:$0xff]  ;;  %v279_v16 = vld [vmem:[%s2810_s28 + $0x10] sm:$0xff]  ;;  %s2738_s30 = smov 40   ;;  %s2739_s13 = smov 48   ;;  %vm1727_vm7 = vcmask 326656  }
  0x13   : > { %v656_v12 = vsel %vm653_vm1, %v654_v7, %v655_v4  ;;  %v658_v13 = vsel %vm653_vm1, %v655_v4, %v657_v8  ;;  %v2823_v17 = vsel %vm830_vm2, %v831_v10, %v832_v6  ;;  %v2826_v18 = vsel %vm830_vm2, %v832_v6, %v834_v9  ;;  %v280_v22 = vld [vmem:[%s2810_s28 + $0x18] sm:$0xff]  ;;  %v281_v23 = vld [vmem:[%s2810_s28 + $0x20] sm:$0xff]  ;;  %v282_v24 = vld [vmem:[%s2810_s28 + $0x28] sm:$0xff]  ;;  %s2740_s16 = smov 56   ;;  %s2741_s17 = smov 64  }
  0x14   : > { %v2828_v19 = vpack.i.bf16 %v658_v13, %v656_v12  ;;  %v314_v20 = vmul.f32 %v2799_v5, %v277_v14  ;;  %v315_v21 = vmul.f32 %v2799_v5, %v278_v15  ;;  %v316_v25 = vmul.f32 %v2799_v5, %v279_v16  ;;  %v283_v29 = vld [vmem:[%s2810_s28 + $0x30] sm:$0xff]  ;;  %v284_v30 = vld [vmem:[%s2810_s28 + $0x38] sm:$0xff]  ;;  %v2854_v35 = vld [vmem:[%s2834_s9] ss:$0 sm:$0xff]  ;;  %s4336_s26 = scalar_lea.vmem %s4661_s5, %s2545_s25  ;;  %s2506_s25 = sshll.u32 %s4983_s22, 1 }
  0x15   : > { %v317_v26 = vmul.f32 %v2799_v5, %v280_v22  ;;  %v318_v27 = vmul.f32 %v2799_v5, %v281_v23  ;;  %v319_v28 = vmul.f32 %v2799_v5, %v282_v24  ;;  %v320_v33 = vmul.f32 %v2799_v5, %v283_v29  ;;  %v285_v23 = vld [vmem:[%s2810_s28 + $0x40] sm:$0xff] }
  0x16   : > { %4773 = vst [vmem:[#allocation4_spill] sm:$0xff] %v2828_v19  ;;  %2698 = vrot.lane.b32.xlu0 %v2828_v19, %s2734_s10  ;;  %v351_v31 = vadd.f32 %v2815_v11, %v314_v20  ;;  %v352_v32 = vadd.f32 %v2815_v11, %v315_v21  ;;  %v321_v34 = vmul.f32 %v2799_v5, %v284_v30  ;;  %v300_v19 = vld [vmem:[%s2810_s28 + $0xb8] sm:$0xff]  ;;  %vm1760_vm8 = vcmask 392192  }
  0x17   : > { %v353_v36 = vadd.f32 %v2815_v11, %v316_v25  ;;  %v354_v37 = vadd.f32 %v2815_v11, %v317_v26  ;;  %v355_v38 = vadd.f32 %v2815_v11, %v318_v27  ;;  %v356_v39 = vadd.f32 %v2815_v11, %v319_v28 }
  0x18   : > { %v383_v40 = vmax.f32 %v351_v31, 0.0  ;;  %v384_v41 = vmax.f32 %v352_v32, 0.0  ;;  %v357_v42 = vadd.f32 %v2815_v11, %v320_v33  ;;  %v358_v43 = vadd.f32 %v2815_v11, %v321_v34  ;;  %v286_v32 = vld [vmem:[%s2810_s28 + $0x48] sm:$0xff]  ;;  %v287_v33 = vld [vmem:[%s2810_s28 + $0x50] sm:$0xff] }
  0x19   : > { %v385_v44 = vmax.f32 %v353_v36, 0.0  ;;  %v386_v45 = vmax.f32 %v354_v37, 0.0  ;;  %v387_v46 = vmax.f32 %v355_v38, 0.0  ;;  %v388_v47 = vmax.f32 %v356_v39, 0.0  ;;  %v288_v39 = vld [vmem:[%s2810_s28 + $0x58] sm:$0xff] }
  0x1a   : > { %v422_v48 = vadd.f32 %v2854_v35, %v383_v40  ;;  %v423_v49 = vadd.f32 %v2854_v35, %v384_v41  ;;  %v389_v50 = vmax.f32 %v357_v42, 0.0  ;;  %v390_v51 = vmax.f32 %v358_v43, 0.0  ;;  %v289_v40 = vld [vmem:[%s2810_s28 + $0x60] sm:$0xff]  ;;  %v290_v41 = vld [vmem:[%s2810_s28 + $0x68] sm:$0xff] }
  0x1b   : > { %v424_v52 = vadd.f32 %v2854_v35, %v385_v44  ;;  %v425_v53 = vadd.f32 %v2854_v35, %v386_v45  ;;  %v426_v54 = vadd.f32 %v2854_v35, %v387_v46  ;;  %v427_v55 = vadd.f32 %v2854_v35, %v388_v47 }
  0x1c   : > { %v490_v56 = vrot.slane %v422_v48, 7  ;;  %v491_v57 = vrot.slane %v423_v49, 7  ;;  %v428_v58 = vadd.f32 %v2854_v35, %v389_v50  ;;  %v429_v59 = vadd.f32 %v2854_v35, %v390_v51  ;;  %v291_v50 = vld [vmem:[%s2810_s28 + $0x70] sm:$0xff] }
  0x1d   : > { %v493_v60 = vrot.slane %v424_v52, 7  ;;  %v494_v61 = vrot.slane %v425_v53, 7  ;;  %v496_v62 = vrot.slane %v426_v54, 7  ;;  %v497_v63 = vrot.slane %v427_v55, 7  ;;  %v292_v55 = vld [vmem:[%s2810_s28 + $0x78] sm:$0xff] }
  0x1e   : > { %v2871_v0 = vsel %vm487_vm0, %v490_v56, %v491_v57  ;;  %v2874_v3 = vsel %vm487_vm0, %v491_v57, 0.0  ;;  %v2877_v4 = vsel %vm487_vm0, 0.0, %v490_v56  ;;  %v499_v6 = vrot.slane %v428_v58, 7 }
  0x1f   : > { %v660_v7 = vrot.slane %v2871_v0, 1  ;;  %v662_v8 = vrot.slane %v2874_v3, 1  ;;  %v659_v9 = vrot.slane %v2877_v4, 1  ;;  %v2883_v10 = vsel %vm487_vm0, %v493_v60, %v494_v61 }
  0x20   : > { %v2886_v12 = vsel %vm487_vm0, 0.0, %v493_v60  ;;  %v665_v13 = vrot.slane %v2883_v10, 1  ;;  %v2890_v14 = vsel %vm487_vm0, %v494_v61, 0.0  ;;  %v2893_v15 = vsel %vm487_vm0, %v496_v62, %v497_v63 }
  0x21   : > { %v2896_v16 = vsel %vm653_vm1, %v660_v7, %v662_v8  ;;  %v2899_v20 = vsel %vm653_vm1, %v659_v9, %v660_v7  ;;  %v664_v21 = vrot.slane %v2886_v12, 1  ;;  %v667_v22 = vrot.slane %v2890_v14, 1 }
  0x22   : > { %740 = vrot.lane.b32.xlu1 %v2896_v16, %s2734_s10  ;;  %738 = vrot.lane.b32.xlu0 %v2899_v20, %s2734_s10  ;;  %v2909_v24 = vsel %vm487_vm0, 0.0, %v496_v62  ;;  %v670_v25 = vrot.slane %v2893_v15, 1  ;;  %v2913_v26 = vsel %vm487_vm0, %v497_v63, 0.0  ;;  %v500_v27 = vrot.slane %v429_v59, 7 }
  0x23   : > { %v2916_v28 = vsel %vm653_vm1, %v664_v21, %v665_v13  ;;  %v2919_v29 = vsel %vm653_vm1, %v665_v13, %v667_v22  ;;  %v669_v30 = vrot.slane %v2909_v24, 1  ;;  %v672_v31 = vrot.slane %v2913_v26, 1 }
  0x24   : > { %4774 = vst [vmem:[#allocation5_spill] sm:$0xff] %v2919_v29  ;;  %v2926_v34 = vsel %vm487_vm0, %v499_v6, %v500_v27  ;;  %v2929_v36 = vsel %vm487_vm0, 0.0, %v499_v6  ;;  %v2932_v37 = vsel %vm487_vm0, %v500_v27, 0.0  ;;  %v322_v38 = vmul.f32 %v2799_v5, %v285_v23 }
  0x25   : > { %v2939_v42 = vsel %vm653_vm1, %v669_v30, %v670_v25  ;;  %v2942_v43 = vsel %vm653_vm1, %v670_v25, %v672_v31  ;;  %v674_v44 = vrot.slane %v2929_v36, 1  ;;  %v675_v45 = vrot.slane %v2926_v34, 1 }
  0x26   : > { %4775 = vst [vmem:[#allocation6_spill] sm:$0xff] %v2939_v42  ;;  %4776 = vst [vmem:[#allocation7_spill] sm:$0xff] %v2942_v43  ;;  %742 = vrot.lane.b32.xlu1 %v2916_v28, %s2734_s10  ;;  %744 = vrot.lane.b32.xlu0 %v2919_v29, %s2734_s10  ;;  %v677_v46 = vrot.slane %v2932_v37, 1  ;;  %v323_v47 = vmul.f32 %v2799_v5, %v286_v32  ;;  %v359_v48 = vadd.f32 %v2815_v11, %v322_v38  ;;  %vm1793_vm9 = vcmask 457728  }
  0x27   : > { %v324_v49 = vmul.f32 %v2799_v5, %v287_v33  ;;  %v2956_v51 = vsel %vm653_vm1, %v674_v44, %v675_v45  ;;  %v325_v52 = vmul.f32 %v2799_v5, %v288_v39  ;;  %v326_v53 = vmul.f32 %v2799_v5, %v289_v40 }
  0x28   : > { %4777 = vst [vmem:[#allocation8_spill] sm:$0xff] %v2956_v51  ;;  %v327_v54 = vmul.f32 %v2799_v5, %v290_v41  ;;  %v2963_v56 = vsel %vm653_vm1, %v675_v45, %v677_v46  ;;  %v360_v57 = vadd.f32 %v2815_v11, %v323_v47  ;;  %v391_v58 = vmax.f32 %v359_v48, 0.0 }
  0x29   : > { %4778 = vst [vmem:[#allocation9_spill] sm:$0xff] %v2963_v56  ;;  %v361_v59 = vadd.f32 %v2815_v11, %v324_v49  ;;  %v362_v60 = vadd.f32 %v2815_v11, %v325_v52  ;;  %v363_v61 = vadd.f32 %v2815_v11, %v326_v53  ;;  %v328_v63 = vmul.f32 %v2799_v5, %v291_v50 }
  0x2a   : > { %v364_v62 = vadd.f32 %v2815_v11, %v327_v54  ;;  %746 = vrot.lane.b32.xlu1 %v2939_v42, %s2734_s10  ;;  %748 = vrot.lane.b32.xlu0 %v2942_v43, %s2734_s10  ;;  %v392_v6 = vmax.f32 %v360_v57, 0.0  ;;  %v430_v7 = vadd.f32 %v2854_v35, %v391_v58  ;;  %v329_v9 = vmul.f32 %v2799_v5, %v292_v55 }
  0x2b   : > { %v393_v8 = vmax.f32 %v361_v59, 0.0  ;;  %v394_v13 = vmax.f32 %v362_v60, 0.0  ;;  %v395_v21 = vmax.f32 %v363_v61, 0.0  ;;  %v365_v23 = vadd.f32 %v2815_v11, %v328_v63 }
  0x2c   : > { %v396_v22 = vmax.f32 %v364_v62, 0.0  ;;  %v431_v25 = vadd.f32 %v2854_v35, %v392_v6  ;;  %v502_v27 = vrot.slane %v430_v7, 7  ;;  %v366_v31 = vadd.f32 %v2815_v11, %v329_v9  ;;  %v293_v6 = vld [vmem:[%s2810_s28 + $0x80] sm:$0xff] }
  0x2d   : > { %v432_v30 = vadd.f32 %v2854_v35, %v393_v8  ;;  %v433_v32 = vadd.f32 %v2854_v35, %v394_v13  ;;  %v434_v33 = vadd.f32 %v2854_v35, %v395_v21  ;;  %v397_v39 = vmax.f32 %v365_v23, 0.0  ;;  %v294_v21 = vld [vmem:[%s2810_s28 + $0x88] sm:$0xff] }
  0x2e   : > { %v435_v38 = vadd.f32 %v2854_v35, %v396_v22  ;;  %750 = vrot.lane.b32.xlu1 %v2956_v51, %s2734_s10  ;;  %752 = vrot.lane.b32.xlu0 %v2963_v56, %s2734_s10  ;;  %v503_v40 = vrot.slane %v431_v25, 7  ;;  %v2989_v41 = vsel %vm487_vm0, 0.0, %v502_v27  ;;  %v398_v45 = vmax.f32 %v366_v31, 0.0  ;;  %v295_v22 = vld [vmem:[%s2810_s28 + $0x90] sm:$0xff]  ;;  %v296_v31 = vld [vmem:[%s2810_s28 + $0x98] sm:$0xff] }
  0x2f   : > { %4779 = vst [vmem:[#allocation10_spill] sm:$0xff] %v2989_v41  ;;  %v505_v44 = vrot.slane %v432_v30, 7  ;;  %v679_v46 = vrot.slane %v2989_v41, 1  ;;  %v506_v47 = vrot.slane %v433_v32, 7  ;;  %v508_v48 = vrot.slane %v434_v33, 7  ;;  %v305_v51 = vld [vmem:[%s2810_s28 + $0xe0] sm:$0xff] }
  0x30   : > { %v509_v49 = vrot.slane %v435_v38, 7  ;;  %v2993_v50 = vsel %vm487_vm0, %v502_v27, %v503_v40  ;;  %v2996_v52 = vsel %vm487_vm0, %v503_v40, 0.0  ;;  %v436_v54 = vadd.f32 %v2854_v35, %v397_v39 }
  0x31   : > { %4780 = vst [vmem:[#allocation11_spill] sm:$0xff] %v2993_v50  ;;  %v2999_v53 = vsel %vm487_vm0, 0.0, %v505_v44  ;;  %v680_v55 = vrot.slane %v2993_v50, 1  ;;  %v682_v57 = vrot.slane %v2996_v52, 1  ;;  %v3005_v58 = vsel %vm487_vm0, %v505_v44, %v506_v47 }
  0x32   : > { %4781 = vst [vmem:[#allocation12_spill] sm:$0xff] %v2999_v53  ;;  %4782 = vst [vmem:[#allocation13_spill] sm:$0xff] %v3005_v58  ;;  %v684_v59 = vrot.slane %v2999_v53, 1  ;;  %v685_v60 = vrot.slane %v3005_v58, 1  ;;  %v3010_v61 = vsel %vm487_vm0, %v506_v47, 0.0  ;;  %v3013_v62 = vsel %vm487_vm0, %v508_v48, %v509_v49 }
  0x33   : > { %4783 = vst [vmem:[#allocation14_spill] sm:$0xff] %v3013_v62  ;;  %v3016_v63 = vsel %vm487_vm0, 0.0, %v508_v48  ;;  %v3020_v7 = vsel %vm653_vm1, %v679_v46, %v680_v55  ;;  %v3023_v8 = vsel %vm653_vm1, %v680_v55, %v682_v57  ;;  %v687_v9 = vrot.slane %v3010_v61, 1  ;;  %v297_v55 = vld [vmem:[%s2810_s28 + $0xa0] sm:$0xff]  ;;  %v298_v57 = vld [vmem:[%s2810_s28 + $0xa8] sm:$0xff] }
  0x34   : > { %4784 = vst [vmem:[#allocation15_spill] sm:$0xff] %v3016_v63  ;;  %4785 = vst [vmem:[#allocation16_spill] sm:$0xff] %v3020_v7  ;;  %v689_v13 = vrot.slane %v3016_v63, 1  ;;  %754 = vrot.lane.b32.xlu1 %v3020_v7, %s2734_s10  ;;  %756 = vrot.lane.b32.xlu0 %v3023_v8, %s2734_s10  ;;  %v3034_v23 = vsel %vm653_vm1, %v684_v59, %v685_v60  ;;  %v690_v25 = vrot.slane %v3013_v62, 1  ;;  %v3038_v27 = vsel %vm487_vm0, %v509_v49, 0.0 }
  0x35   : > { %4786 = vst [vmem:[#allocation17_spill] sm:$0xff] %v3023_v8  ;;  %4787 = vst [vmem:[#allocation18_spill] sm:$0xff] %v3034_v23  ;;  %v437_v30 = vadd.f32 %v2854_v35, %v398_v45  ;;  %v3043_v32 = vsel %vm653_vm1, %v685_v60, %v687_v9  ;;  %v692_v33 = vrot.slane %v3038_v27, 1  ;;  %v511_v38 = vrot.slane %v436_v54, 7  ;;  %v303_v8 = vld [vmem:[%s2810_s28 + $0xd0] sm:$0xff] }
  0x36   : > { %4788 = vst [vmem:[#allocation19_spill] sm:$0xff] %v3043_v32  ;;  %v330_v39 = vmul.f32 %v2799_v5, %v293_v6  ;;  %v3048_v40 = vsel %vm653_vm1, %v689_v13, %v690_v25  ;;  %v331_v46 = vmul.f32 %v2799_v5, %v294_v21  ;;  %v332_v47 = vmul.f32 %v2799_v5, %v295_v22 }
  0x37   : > { %4789 = vst [vmem:[#allocation20_spill] sm:$0xff] %v3048_v40  ;;  %v512_v44 = vrot.slane %v437_v30, 7  ;;  %v3053_v48 = vsel %vm653_vm1, %v690_v25, %v692_v33  ;;  %v3056_v45 = vsel %vm487_vm0, 0.0, %v511_v38  ;;  %v333_v54 = vmul.f32 %v2799_v5, %v296_v31 }
  0x38   : > { %4790 = vst [vmem:[#allocation21_spill] sm:$0xff] %v3053_v48  ;;  %v367_v49 = vadd.f32 %v2815_v11, %v330_v39  ;;  %758 = vrot.lane.b32.xlu1 %v3034_v23, %s2734_s10  ;;  %760 = vrot.lane.b32.xlu0 %v3043_v32, %s2734_s10  ;;  %v694_v60 = vrot.slane %v3056_v45, 1  ;;  %v368_v9 = vadd.f32 %v2815_v11, %v331_v46  ;;  %v299_v39 = vld [vmem:[%s2810_s28 + $0xb0] sm:$0xff]  ;;  %vm1826_vm10 = vcmask 523264  }
  0x39   : > { %v3067_v59 = vsel %vm487_vm0, %v511_v38, %v512_v44  ;;  %v3071_v6 = vsel %vm487_vm0, %v512_v44, 0.0  ;;  %v369_v25 = vadd.f32 %v2815_v11, %v332_v47  ;;  %v370_v31 = vadd.f32 %v2815_v11, %v333_v54 }
  0x3a   : > { %v695_v13 = vrot.slane %v3067_v59, 1  ;;  %v697_v21 = vrot.slane %v3071_v6, 1  ;;  %v399_v22 = vmax.f32 %v367_v49, 0.0  ;;  %v400_v30 = vmax.f32 %v368_v9, 0.0 }
  0x3b   : > { %v334_v33 = vmul.f32 %v2799_v5, %v297_v55  ;;  %v335_v38 = vmul.f32 %v2799_v5, %v298_v57  ;;  %v401_v49 = vmax.f32 %v369_v25, 0.0  ;;  %v402_v54 = vmax.f32 %v370_v31, 0.0 }
  0x3c   : > { %v3083_v44 = vsel %vm653_vm1, %v694_v60, %v695_v13  ;;  %v3086_v46 = vsel %vm653_vm1, %v695_v13, %v697_v21  ;;  %v438_v1 = vadd.f32 %v2854_v35, %v399_v22  ;;  %762 = vrot.lane.b32.xlu1 %v3048_v40, %s2734_s10  ;;  %764 = vrot.lane.b32.xlu0 %v3053_v48, %s2734_s10  ;;  %vm1875_vm11 = vcmask 588800  }
  0x3d   : > { %4791 = vst [vmem:[#allocation22_spill] sm:$0xff] %v3083_v44  ;;  %4792 = vst [vmem:[#allocation23_spill] sm:$0xff] %v3086_v46  ;;  %v439_v47 = vadd.f32 %v2854_v35, %v400_v30  ;;  %v371_v55 = vadd.f32 %v2815_v11, %v334_v33  ;;  %v372_v57 = vadd.f32 %v2815_v11, %v335_v38  ;;  %vm2400_vm12 = vcmask 58368  }
  0x3e   : > { %v514_v60 = vrot.slane %v438_v1, 7  ;;  %v440_v9 = vadd.f32 %v2854_v35, %v401_v49  ;;  %v336_v13 = vmul.f32 %v2799_v5, %v299_v39  ;;  %v337_v21 = vmul.f32 %v2799_v5, %v300_v19 }
  0x3f   : > { %v515_v22 = vrot.slane %v439_v47, 7  ;;  %v441_v25 = vadd.f32 %v2854_v35, %v402_v54  ;;  %v403_v2 = vmax.f32 %v371_v55, 0.0  ;;  %v404_v40 = vmax.f32 %v372_v57, 0.0 }
  0x40   : > { %v3101_v48 = vsel %vm487_vm0, 0.0, %v514_v60  ;;  %v517_v30 = vrot.slane %v440_v9, 7  ;;  %v373_v31 = vadd.f32 %v2815_v11, %v336_v13  ;;  %v374_v1 = vadd.f32 %v2815_v11, %v337_v21  ;;  %766 = vrot.lane.b32.xlu1 %v3083_v44, %s2734_s10  ;;  %768 = vrot.lane.b32.xlu0 %v3086_v46, %s2734_s10  ;;  %v301_v21 = vld [vmem:[%s2810_s28 + $0xc0] sm:$0xff] }
  0x41   : > { %v3110_v19 = vsel %vm487_vm0, %v514_v60, %v515_v22  ;;  %v699_v33 = vrot.slane %v3101_v48, 1  ;;  %v3114_v38 = vsel %vm487_vm0, %v515_v22, 0.0  ;;  %v518_v39 = vrot.slane %v441_v25, 7  ;;  %v302_v22 = vld [vmem:[%s2810_s28 + $0xc8] sm:$0xff] }
  0x42   : > { %4793 = vst [vmem:[#allocation24_spill] sm:$0xff] %v3110_v19  ;;  %v700_v49 = vrot.slane %v3110_v19, 1  ;;  %v702_v47 = vrot.slane %v3114_v38, 1  ;;  %v3119_v54 = vsel %vm487_vm0, 0.0, %v517_v30  ;;  %v442_v55 = vadd.f32 %v2854_v35, %v403_v2 }
  0x43   : > { %v3123_v57 = vsel %vm487_vm0, %v517_v30, %v518_v39  ;;  %v704_v60 = vrot.slane %v3119_v54, 1  ;;  %v3127_v9 = vsel %vm487_vm0, %v518_v39, 0.0  ;;  %v443_v13 = vadd.f32 %v2854_v35, %v404_v40 }
  0x44   : > { %4794 = vst [vmem:[#allocation25_spill] sm:$0xff] %v3123_v57  ;;  %v3133_v25 = vsel %vm653_vm1, %v699_v33, %v700_v49  ;;  %v3136_v46 = vsel %vm653_vm1, %v700_v49, %v702_v47  ;;  %v705_v2 = vrot.slane %v3123_v57, 1  ;;  %v707_v30 = vrot.slane %v3127_v9, 1 }
  0x45   : > { %4795 = vst [vmem:[#allocation26_spill] sm:$0xff] %v3133_v25  ;;  %4796 = vst [vmem:[#allocation27_spill] sm:$0xff] %v3136_v46  ;;  %770 = vrot.lane.b32.xlu1 %v3133_v25, %s2734_s10  ;;  %772 = vrot.lane.b32.xlu0 %v3136_v46, %s2734_s10  ;;  %v520_v40 = vrot.slane %v442_v55, 7  ;;  %v521_v39 = vrot.slane %v443_v13, 7  ;;  %v405_v44 = vmax.f32 %v373_v31, 0.0  ;;  %v406_v32 = vmax.f32 %v374_v1, 0.0 }
  0x46   : > { %v3145_v33 = vsel %vm653_vm1, %v704_v60, %v705_v2  ;;  %v3148_v49 = vsel %vm653_vm1, %v705_v2, %v707_v30  ;;  %v338_v47 = vmul.f32 %v2799_v5, %v301_v21  ;;  %v339_v23 = vmul.f32 %v2799_v5, %v302_v22  ;;  %v304_v55 = vld [vmem:[%s2810_s28 + $0xd8] sm:$0xff] }
  0x47   : > { %4797 = vst [vmem:[#allocation28_spill] sm:$0xff] %v3145_v33  ;;  %4798 = vst [vmem:[#allocation29_spill] sm:$0xff] %v3148_v49  ;;  %v3154_v25 = vsel %vm487_vm0, %v520_v40, %v521_v39  ;;  %v3157_v46 = vsel %vm487_vm0, 0.0, %v520_v40  ;;  %v3160_v31 = vsel %vm487_vm0, %v521_v39, 0.0  ;;  %v444_v1 = vadd.f32 %v2854_v35, %v405_v44 }
  0x48   : > { %4799 = vst [vmem:[#allocation30_spill] sm:$0xff] %v3154_v25  ;;  %v709_v60 = vrot.slane %v3157_v46, 1  ;;  %v710_v13 = vrot.slane %v3154_v25, 1  ;;  %v712_v21 = vrot.slane %v3160_v31, 1  ;;  %v445_v22 = vadd.f32 %v2854_v35, %v406_v32 }
  0x49   : > { %774 = vrot.lane.b32.xlu1 %v3145_v33, %s2734_s10  ;;  %776 = vrot.lane.b32.xlu0 %v3148_v49, %s2734_s10  ;;  %v523_v2 = vrot.slane %v444_v1, 7  ;;  %v375_v44 = vadd.f32 %v2815_v11, %v338_v47  ;;  %v376_v30 = vadd.f32 %v2815_v11, %v339_v23  ;;  %v340_v40 = vmul.f32 %v2799_v5, %v303_v8  ;;  %v306_v23 = vld [vmem:[%s2810_s28 + $0xe8] sm:$0xff] }
  0x4a   : > { %v3176_v39 = vsel %vm653_vm1, %v709_v60, %v710_v13  ;;  %v3179_v7 = vsel %vm653_vm1, %v710_v13, %v712_v21  ;;  %v524_v32 = vrot.slane %v445_v22, 7  ;;  %v341_v56 = vmul.f32 %v2799_v5, %v304_v55 }
  0x4b   : > { %4800 = vst [vmem:[#allocation31_spill] sm:$0xff] %v3176_v39  ;;  %4801 = vst [vmem:[#allocation32_spill] sm:$0xff] %v3179_v7  ;;  %v3183_v33 = vsel %vm487_vm0, 0.0, %v523_v2  ;;  %v407_v49 = vmax.f32 %v375_v44, 0.0  ;;  %v408_v1 = vmax.f32 %v376_v30, 0.0  ;;  %v377_v47 = vadd.f32 %v2815_v11, %v340_v40 }
  0x4c   : > { %4802 = vst [vmem:[#allocation33_spill] sm:$0xff] %v3183_v33  ;;  %v3189_v8 = vsel %vm487_vm0, %v523_v2, %v524_v32  ;;  %v714_v60 = vrot.slane %v3183_v33, 1  ;;  %v3193_v13 = vsel %vm487_vm0, %v524_v32, 0.0  ;;  %v378_v21 = vadd.f32 %v2815_v11, %v341_v56 }
  0x4d   : > { %4803 = vst [vmem:[#allocation34_spill] sm:$0xff] %v3189_v8  ;;  %778 = vrot.lane.b32.xlu1 %v3176_v39, %s2734_s10  ;;  %780 = vrot.lane.b32.xlu0 %v3179_v7, %s2734_s10  ;;  %v715_v55 = vrot.slane %v3189_v8, 1  ;;  %v717_v22 = vrot.slane %v3193_v13, 1  ;;  %v446_v2 = vadd.f32 %v2854_v35, %v407_v49  ;;  %v447_v44 = vadd.f32 %v2854_v35, %v408_v1 }
  0x4e   : > { %v409_v30 = vmax.f32 %v377_v47, 0.0  ;;  %v410_v40 = vmax.f32 %v378_v21, 0.0  ;;  %v342_v32 = vmul.f32 %v2799_v5, %v305_v51  ;;  %v343_v56 = vmul.f32 %v2799_v5, %v306_v23 }
  0x4f   : > { %v3207_v43 = vsel %vm653_vm1, %v714_v60, %v715_v55  ;;  %v3210_v39 = vsel %vm653_vm1, %v715_v55, %v717_v22  ;;  %v526_v7 = vrot.slane %v446_v2, 7  ;;  %v527_v42 = vrot.slane %v447_v44, 7 }
  0x50   : > { %4804 = vst [vmem:[#allocation35_spill] sm:$0xff] %v3207_v43  ;;  %4805 = vst [vmem:[#allocation36_spill] sm:$0xff] %v3210_v39  ;;  %v448_v29 = vadd.f32 %v2854_v35, %v409_v30  ;;  %v449_v49 = vadd.f32 %v2854_v35, %v410_v40  ;;  %v379_v1 = vadd.f32 %v2815_v11, %v342_v32 }
  0x51   : > { %v380_v47 = vadd.f32 %v2815_v11, %v343_v56  ;;  %782 = vrot.lane.b32.xlu1 %v3207_v43, %s2734_s10  ;;  %784 = vrot.lane.b32.xlu0 %v3210_v39, %s2734_s10  ;;  %v3221_v5 = vsel %vm487_vm0, %v526_v7, %v527_v42  ;;  %v3224_v51 = vsel %vm487_vm0, 0.0, %v526_v7  ;;  %v3227_v23 = vsel %vm487_vm0, %v527_v42, 0.0 }
  0x52   : > { %4806 = vst [vmem:[#allocation37_spill] sm:$0xff] %v3221_v5  ;;  %4807 = vst [vmem:[#allocation38_spill] sm:$0xff] %v3224_v51  ;;  %v3231_v60 = vpack.i.bf16 %v2826_v18, %v2823_v17  ;;  %v719_v11 = vrot.slane %v3224_v51, 1  ;;  %v720_v21 = vrot.slane %v3221_v5, 1  ;;  %v722_v55 = vrot.slane %v3227_v23, 1 }
  0x53   : > { %v529_v22 = vrot.slane %v448_v29, 7  ;;  %v530_v2 = vrot.slane %v449_v49, 7  ;;  %v411_v44 = vmax.f32 %v379_v1, 0.0  ;;  %v412_v30 = vmax.f32 %v380_v47, 0.0 }
  0x54   : > { %4808 = vst [vmem:[#allocation39_spill] sm:$0xff] %v3231_v60  ;;  %v3237_v7 = vsel %vm653_vm1, %v719_v11, %v720_v21  ;;  %v3240_v42 = vsel %vm653_vm1, %v720_v21, %v722_v55  ;;  %v879_v43 = vrot.slane %v3114_v38, 2 }
  0x55   : > { %4809 = vst [vmem:[#allocation40_spill] sm:$0xff] %v3237_v7  ;;  %4810 = vst [vmem:[#allocation41_spill] sm:$0xff] %v3240_v42  ;;  %v3243_v40 = vsel %vm487_vm0, 0.0, %v529_v22  ;;  %786 = vrot.lane.b32.xlu1 %v3237_v7, %s2734_s10  ;;  %788 = vrot.lane.b32.xlu0 %v3240_v42, %s2734_s10  ;;  %v3250_v17 = vsel %vm487_vm0, %v529_v22, %v530_v2  ;;  %v3254_v29 = vsel %vm487_vm0, %v530_v2, 0.0  ;;  %v864_v42 = vrot.slane %v3010_v61, 2 }
  0x56   : > { %4811 = vst [vmem:[#allocation42_spill] sm:$0xff] %v3243_v40  ;;  %4812 = vst [vmem:[#allocation43_spill] sm:$0xff] %v3250_v17  ;;  %v724_v18 = vrot.slane %v3243_v40, 1  ;;  %v450_v32 = vadd.f32 %v2854_v35, %v411_v44  ;;  %v725_v56 = vrot.slane %v3250_v17, 1  ;;  %v727_v49 = vrot.slane %v3254_v29, 1 }
  0x57   : > { %v451_v1 = vadd.f32 %v2854_v35, %v412_v30  ;;  %v869_v7 = vrot.slane %v3038_v27, 2 }
  0x58   : > { %v532_v47 = vrot.slane %v450_v32, 7  ;;  %v3261_v11 = vsel %vm653_vm1, %v724_v18, %v725_v56  ;;  %v3264_v21 = vsel %vm653_vm1, %v725_v56, %v727_v49  ;;  %v836_v32 = vrot.slane %v2877_v4, 2 }
  0x59   : > { %4813 = vst [vmem:[#allocation44_spill] sm:$0xff] %v3261_v11  ;;  %4814 = vst [vmem:[#allocation45_spill] sm:$0xff] %v3264_v21  ;;  %v533_v55 = vrot.slane %v451_v1, 7  ;;  %790 = vrot.lane.b32.xlu1 %v3261_v11, %s2734_s10  ;;  %792 = vrot.lane.b32.xlu0 %v3264_v21, %s2734_s10  ;;  %v837_v56 = vrot.slane %v2871_v0, 2  ;;  %v841_v21 = vrot.slane %v2886_v12, 2  ;;  %v842_v11 = vrot.slane %v2883_v10, 2 }
  0x5a   : > { %v3271_v22 = vsel %vm487_vm0, 0.0, %v532_v47 }
  0x5b   : > { %4815 = vst [vmem:[#allocation46_spill] sm:$0xff] %v3271_v22  ;;  %v3274_v2 = vsel %vm487_vm0, %v532_v47, %v533_v55  ;;  %v729_v35 = vrot.slane %v3271_v22, 1  ;;  %v3278_v44 = vsel %vm487_vm0, %v533_v55, 0.0  ;;  %v3295_v47 = vsel %vm830_vm2, %v836_v32, %v837_v56 }
  0x5c   : > { %4816 = vst [vmem:[#allocation47_spill] sm:$0xff] %v3274_v2  ;;  %v730_v30 = vrot.slane %v3274_v2, 1  ;;  %v732_v18 = vrot.slane %v3278_v44, 1  ;;  %v839_v55 = vrot.slane %v2874_v3, 2  ;;  %v846_v3 = vrot.slane %v2909_v24, 2 }
  0x5d   : > { %v847_v32 = vrot.slane %v2893_v15, 2 }
  0x5e   : > { %v3285_v49 = vsel %vm653_vm1, %v729_v35, %v730_v30  ;;  %v3288_v1 = vsel %vm653_vm1, %v730_v30, %v732_v18  ;;  %v844_v35 = vrot.slane %v2890_v14, 2  ;;  %v3306_v30 = vsel %vm830_vm2, %v837_v56, %v839_v55 }
  0x5f   : > { %4817 = vst [vmem:[#allocation48_spill] sm:$0xff] %v3285_v49  ;;  %4818 = vst [vmem:[#allocation49_spill] sm:$0xff] %v3288_v1  ;;  %794 = vrot.lane.b32.xlu1 %v3285_v49, %s2734_s10  ;;  %796 = vrot.lane.b32.xlu0 %v3288_v1, %s2734_s10  ;;  %v3309_v18 = vsel %vm830_vm2, %v841_v21, %v842_v11  ;;  %v3321_v14 = vsel %vm830_vm2, %v846_v3, %v847_v32  ;;  %v849_v56 = vrot.slane %v2913_v26, 2 }
  0x60   : > { %v851_v21 = vrot.slane %v2929_v36, 2  ;;  %v852_v55 = vrot.slane %v2926_v34, 2  ;;  %v854_v1 = vrot.slane %v2932_v37, 2  ;;  %v856_v26 = vrot.slane %v2989_v41, 2 }
  0x61   : > { %v857_v3 = vrot.slane %v2993_v50, 2 }
  0x62   : > { %v3344_v49 = vsel %vm830_vm2, %v852_v55, %v854_v1 }
  0x63   : > { %2703 = vrot.lane.b32.xlu1 %v3231_v60, %s2735_s11  ;;  %915 = vrot.lane.b32.xlu0 %v3295_v47, %s2735_s11  ;;  %v3318_v60 = vsel %vm830_vm2, %v842_v11, %v844_v35  ;;  %v3332_v11 = vsel %vm830_vm2, %v847_v32, %v849_v56  ;;  %v3335_v35 = vsel %vm830_vm2, %v851_v21, %v852_v55  ;;  %v859_v32 = vrot.slane %v2996_v52, 2 }
  0x64   : > { %v3347_v37 = vsel %vm830_vm2, %v856_v26, %v857_v3  ;;  %v861_v56 = vrot.slane %v2999_v53, 2  ;;  %v862_v21 = vrot.slane %v3005_v58, 2  ;;  %v866_v52 = vrot.slane %v3016_v63, 2 }
  0x65   : > { %v3358_v1 = vsel %vm830_vm2, %v857_v3, %v859_v32  ;;  %v867_v26 = vrot.slane %v3013_v62, 2  ;;  %v871_v32 = vrot.slane %v3056_v45, 2 }
  0x66   : > { %v3361_v55 = vsel %vm830_vm2, %v861_v56, %v862_v21  ;;  %v3371_v61 = vsel %vm830_vm2, %v862_v21, %v864_v42  ;;  %v872_v56 = vrot.slane %v3067_v59, 2  ;;  %v874_v42 = vrot.slane %v3071_v6, 2 }
  0x67   : > { %917 = vrot.lane.b32.xlu1 %v3306_v30, %s2735_s11  ;;  %919 = vrot.lane.b32.xlu0 %v3309_v18, %s2735_s11  ;;  %v3374_v3 = vsel %vm830_vm2, %v866_v52, %v867_v26  ;;  %v3383_v39 = vsel %vm830_vm2, %v867_v26, %v869_v7  ;;  %v876_v21 = vrot.slane %v3101_v48, 2  ;;  %v877_v52 = vrot.slane %v3110_v19, 2 }
  0x68   : > { %v3386_v27 = vsel %vm830_vm2, %v871_v32, %v872_v56  ;;  %v3397_v7 = vsel %vm830_vm2, %v872_v56, %v874_v42  ;;  %v881_v6 = vrot.slane %v3119_v54, 2  ;;  %v882_v32 = vrot.slane %v3123_v57, 2 }
  0x69   : > { %v3400_v26 = vsel %vm830_vm2, %v876_v21, %v877_v52  ;;  %v884_v19 = vrot.slane %v3127_v9, 2  ;;  %v3410_v38 = vsel %vm830_vm2, %v877_v52, %v879_v43  ;;  %v886_v42 = vrot.slane %v3157_v46, 2 }
  0x6a   : > { %v3413_v56 = vsel %vm830_vm2, %v881_v6, %v882_v32  ;;  %v887_v21 = vrot.slane %v3154_v25, 2  ;;  %v889_v43 = vrot.slane %v3160_v31, 2  ;;  %v891_v52 = vrot.slane %v3183_v33, 2 }
  0x6b   : > { %921 = vrot.lane.b32.xlu1 %v3318_v60, %s2735_s11  ;;  %923 = vrot.lane.b32.xlu0 %v3321_v14, %s2735_s11  ;;  %v3422_v57 = vsel %vm830_vm2, %v882_v32, %v884_v19  ;;  %v892_v6 = vrot.slane %v3189_v8, 2  ;;  %v894_v25 = vrot.slane %v3193_v13, 2  ;;  %v896_v31 = vrot.slane %v3224_v51, 2 }
  0x6c   : > { %v3425_v9 = vsel %vm830_vm2, %v886_v42, %v887_v21  ;;  %v3436_v19 = vsel %vm830_vm2, %v887_v21, %v889_v43  ;;  %v897_v42 = vrot.slane %v3221_v5, 2  ;;  %v899_v8 = vrot.slane %v3227_v23, 2 }
  0x6d   : > { %4819 = vst [vmem:[#allocation50_spill] sm:$0xff] %v3425_v9  ;;  %4820 = vst [vmem:[#allocation51_spill] sm:$0xff] %v3436_v19  ;;  %v3439_v32 = vsel %vm830_vm2, %v891_v52, %v892_v6  ;;  %v3449_v13 = vsel %vm830_vm2, %v892_v6, %v894_v25  ;;  %v901_v52 = vrot.slane %v3243_v40, 2  ;;  %v902_v5 = vrot.slane %v3250_v17, 2 }
  0x6e   : > { %4821 = vst [vmem:[#allocation52_spill] sm:$0xff] %v3439_v32  ;;  %4822 = vst [vmem:[#allocation53_spill] sm:$0xff] %v3449_v13  ;;  %v3452_v21 = vsel %vm830_vm2, %v896_v31, %v897_v42  ;;  %v3463_v23 = vsel %vm830_vm2, %v897_v42, %v899_v8  ;;  %v904_v6 = vrot.slane %v3254_v29, 2  ;;  %v906_v31 = vrot.slane %v3271_v22, 2 }
  0x6f   : > { %925 = vrot.lane.b32.xlu1 %v3332_v11, %s2735_s11  ;;  %927 = vrot.lane.b32.xlu0 %v3335_v35, %s2735_s11  ;;  %4823 = vst [vmem:[#allocation54_spill] sm:$0xff] %v3452_v21  ;;  %4824 = vst [vmem:[#allocation55_spill] sm:$0xff] %v3463_v23  ;;  %v3466_v25 = vsel %vm830_vm2, %v901_v52, %v902_v5  ;;  %v907_v40 = vrot.slane %v3274_v2, 2  ;;  %v909_v29 = vrot.slane %v3278_v44, 2 }
  0x70   : > { %4825 = vst [vmem:[#allocation56_spill] sm:$0xff] %v3466_v25  ;;  %v3480_v8 = vsel %vm830_vm2, %v902_v5, %v904_v6 }
  0x71   : > { %4826 = vst [vmem:[#allocation57_spill] sm:$0xff] %v3480_v8  ;;  %v3483_v42 = vsel %vm830_vm2, %v906_v31, %v907_v40  ;;  %v3495_v22 = vsel %vm830_vm2, %v907_v40, %v909_v29 }
  0x72   : > { %4827 = vst [vmem:[#allocation58_spill] sm:$0xff] %v3483_v42  ;;  %4828 = vst [vmem:[#allocation59_spill] sm:$0xff] %v3495_v22 }
  0x73   : > { %929 = vrot.lane.b32.xlu1 %v3344_v49, %s2735_s11  ;;  %931 = vrot.lane.b32.xlu0 %v3347_v37, %s2735_s11 }
  0x77   : > { %933 = vrot.lane.b32.xlu1 %v3358_v1, %s2735_s11  ;;  %935 = vrot.lane.b32.xlu0 %v3361_v55, %s2735_s11 }
  0x7b   : > { %937 = vrot.lane.b32.xlu1 %v3371_v61, %s2735_s11  ;;  %939 = vrot.lane.b32.xlu0 %v3374_v3, %s2735_s11 }
  0x7f   : > { %941 = vrot.lane.b32.xlu1 %v3383_v39, %s2735_s11  ;;  %943 = vrot.lane.b32.xlu0 %v3386_v27, %s2735_s11 }
  0x83   : > { %945 = vrot.lane.b32.xlu1 %v3397_v7, %s2735_s11  ;;  %947 = vrot.lane.b32.xlu0 %v3400_v26, %s2735_s11 }
  0x87   : > { %949 = vrot.lane.b32.xlu1 %v3410_v38, %s2735_s11  ;;  %951 = vrot.lane.b32.xlu0 %v3413_v56, %s2735_s11 }
  0x88   : > { %v3454_v43 = vpop.permute.xlu0 %2698 }
  0x8b   : > { %953 = vrot.lane.b32.xlu1 %v3422_v57, %s2735_s11  ;;  %955 = vrot.lane.b32.xlu0 %v3425_v9, %s2735_s11 }
  0x8f   : > { %957 = vrot.lane.b32.xlu1 %v3436_v19, %s2735_s11  ;;  %959 = vrot.lane.b32.xlu0 %v3439_v32, %s2735_s11 }
  0x93   : > { %961 = vrot.lane.b32.xlu1 %v3449_v13, %s2735_s11  ;;  %963 = vrot.lane.b32.xlu0 %v3452_v21, %s2735_s11  ;;  %v1860_v21 = vld [vmem:[%s4659_s3 + $0x8] sm:$0xff]  ;;  %v1862_v13 = vld [vmem:[%s4659_s3 + $0x18] sm:$0xff] }
  0x94   : > { %v3471_v51 = vpop.permute.xlu1 %740  ;;  %v3473_v17 = vpop.permute.xlu0 %738 }
  0x97   : > { %965 = vrot.lane.b32.xlu1 %v3463_v23, %s2735_s11  ;;  %967 = vrot.lane.b32.xlu0 %v3466_v25, %s2735_s11  ;;  %v1859_v23 = vld [vmem:[%s4659_s3] sm:$0xff] }
  0x98   : > { %v3486_v52 = vpop.permute.xlu1 %742  ;;  %v3488_v2 = vpop.permute.xlu0 %744 }
  0x9b   : > { %969 = vrot.lane.b32.xlu1 %v3480_v8, %s2735_s11  ;;  %971 = vrot.lane.b32.xlu0 %v3483_v42, %s2735_s11 }
  0x9c   : > { %v3497_v5 = vpop.permute.xlu1 %746  ;;  %v3499_v6 = vpop.permute.xlu0 %748 }
  0x9f   : > { %973 = vrot.lane.b32.xlu1 %v3495_v22, %s2735_s11  ;;  %1008 = vrot.lane.b32.xlu0 %v2877_v4, %s2736_s12 }
  0xa0   : > { %v3505_v44 = vpop.permute.xlu1 %750  ;;  %v3507_v31 = vpop.permute.xlu0 %752 }
  0xa3   : > { %1010 = vrot.lane.b32.xlu1 %v2871_v0, %s2736_s12  ;;  %1012 = vrot.lane.b32.xlu0 %v2886_v12, %s2736_s12 }
  0xa6   : > { %v3517_v40 = vpop.permute.xlu1 %754  ;;  %v3519_v29 = vpop.permute.xlu0 %756 }
  0xa7   : > { %1014 = vrot.lane.b32.xlu1 %v2883_v10, %s2736_s12  ;;  %1016 = vrot.lane.b32.xlu0 %v2909_v24, %s2736_s12  ;;  %4829 = vst [vmem:[#allocation60_spill] sm:$0xff] %v3517_v40  ;;  %4830 = vst [vmem:[#allocation61_spill] sm:$0xff] %v3519_v29 }
  0xaa   : > { %v3525_v22 = vpop.permute.xlu1 %758  ;;  %v3527_v42 = vpop.permute.xlu0 %760 }
  0xab   : > { %1018 = vrot.lane.b32.xlu1 %v2893_v15, %s2736_s12  ;;  %1020 = vrot.lane.b32.xlu0 %v2929_v36, %s2736_s12  ;;  %4831 = vst [vmem:[#allocation62_spill] sm:$0xff] %v3525_v22  ;;  %4832 = vst [vmem:[#allocation63_spill] sm:$0xff] %v3527_v42  ;;  %v2654_v42 = vpack.c.bf16 %v1860_v21, %v1859_v23 }
  0xad   : > { %2655 = vmatprep.subr.bf16.mxu0 %v2654_v42  ;;  %2670 = vmatprep.subr.bf16.mxu1 %v2654_v42 }
  0xae   : > { %v3533_v8 = vpop.permute.xlu1 %762  ;;  %v3535_v25 = vpop.permute.xlu0 %764  ;;  %2657 = vmatpush3.bf16.msra.mxu0 %v2654_v42  ;;  %2675 = vmatpush3.bf16.msra.mxu1 %v2654_v42  ;;  %v1864_v42 = vld [vmem:[%s4659_s3 + $0x28] sm:$0xff] }
  0xaf   : > { %1022 = vrot.lane.b32.xlu1 %v2926_v34, %s2736_s12  ;;  %1024 = vrot.lane.b32.xlu0 %v2989_v41, %s2736_s12  ;;  %4833 = vst [vmem:[#allocation64_spill] sm:$0xff] %v3533_v8  ;;  %4834 = vst [vmem:[#allocation65_spill] sm:$0xff] %v3535_v25  ;;  %v1861_v25 = vld [vmem:[%s4659_s3 + $0x10] sm:$0xff] }
  0xb0   : > { %v2658_v21 = vpack.c.bf16 %v1862_v13, %v1861_v25 }
  0xb2   : > { %v3547_v22 = vpop.permute.xlu1 %766  ;;  %v3549_v8 = vpop.permute.xlu0 %768  ;;  %2659 = vmatprep.subr.bf16.mxu0 %v2658_v21  ;;  %2671 = vmatprep.subr.bf16.mxu1 %v2658_v21 }
  0xb3   : > { %1026 = vrot.lane.b32.xlu1 %v2993_v50, %s2736_s12  ;;  %1028 = vrot.lane.b32.xlu0 %v2999_v53, %s2736_s12  ;;  %4835 = vst [vmem:[#allocation66_spill] sm:$0xff] %v3547_v22  ;;  %4836 = vst [vmem:[#allocation67_spill] sm:$0xff] %v3549_v8  ;;  %v1863_v22 = vld [vmem:[%s4659_s3 + $0x20] sm:$0xff] }
  0xb4   : > { %2661 = vmatpush3.bf16.msra.mxu0 %v2658_v21  ;;  %2676 = vmatpush3.bf16.msra.mxu1 %v2658_v21  ;;  %v2662_v13 = vpack.c.bf16 %v1864_v42, %v1863_v22 }
  0xb6   : > { %2663 = vmatprep.subr.bf16.mxu0 %v2662_v13  ;;  %2672 = vmatprep.subr.bf16.mxu1 %v2662_v13 }
  0xb7   : > { %1030 = vrot.lane.b32.xlu1 %v3005_v58, %s2736_s12  ;;  %1032 = vrot.lane.b32.xlu0 %v3016_v63, %s2736_s12  ;;  %v3561_v23 = vpop.permute.xlu1 %770  ;;  %v3563_v8 = vpop.permute.xlu0 %772 }
  0xb8   : > { %4837 = vst [vmem:[#allocation68_spill] sm:$0xff] %v3561_v23  ;;  %4838 = vst [vmem:[#allocation69_spill] sm:$0xff] %v3563_v8  ;;  %2665 = vmatpush3.bf16.msra.mxu0 %v2662_v13  ;;  %2677 = vmatpush3.bf16.msra.mxu1 %v2662_v13  ;;  %v4859_v23 = vld [vmem:[#allocation8_spill] sm:$0xff] }
  0xbb   : > { %1110 = vrot.lane.b32.xlu1 %v2899_v20, %s2737_s29  ;;  %1112 = vrot.lane.b32.xlu0 %v2896_v16, %s2737_s29  ;;  %v3575_v25 = vpop.permute.xlu1 %774  ;;  %v3577_v8 = vpop.permute.xlu0 %776  ;;  %v1865_v16 = vld [vmem:[%s4659_s3 + $0x30] sm:$0xff]  ;;  %v1866_v20 = vld [vmem:[%s4659_s3 + $0x38] sm:$0xff] }
  0xbc   : > { %4839 = vst [vmem:[#allocation70_spill] sm:$0xff] %v3575_v25  ;;  %4840 = vst [vmem:[#allocation71_spill] sm:$0xff] %v3577_v8  ;;  %v2666_v42 = vpack.c.bf16 %v1866_v20, %v1865_v16 }
  0xbe   : > { %2667 = vmatprep.subr.bf16.mxu0 %v2666_v42  ;;  %2673 = vmatprep.subr.bf16.mxu1 %v2666_v42 }
  0xbf   : > { %1211 = vrot.lane.b32.xlu1 %v3295_v47, %s2738_s30  ;;  %1213 = vrot.lane.b32.xlu0 %v3306_v30, %s2738_s30  ;;  %v3589_v22 = vpop.permute.xlu1 %778  ;;  %v3591_v21 = vpop.permute.xlu0 %780  ;;  %v1867_v47 = vld [vmem:[%s4659_s3 + $0x40] sm:$0xff] }
  0xc0   : > { %4841 = vst [vmem:[#allocation72_spill] sm:$0xff] %v3589_v22  ;;  %4842 = vst [vmem:[#allocation73_spill] sm:$0xff] %v3591_v21  ;;  %2669 = vmatpush3.bf16.msra.mxu0 %v2666_v42  ;;  %2678 = vmatpush3.bf16.msra.mxu1 %v2666_v42 }
  0xc1   : > { %2604 = vmatprep.subr.mxu0 %v1867_v47  ;;  %2674 = vmatprep.subr.mxu1 %v1867_v47 }
  0xc3   : > { %1307 = vrot.lane.b32.xlu1 %v2886_v12, %s2739_s13  ;;  %1309 = vrot.lane.b32.xlu0 %v2883_v10, %s2739_s13  ;;  %v3600_v30 = vpop.permute.xlu1 %782  ;;  %v3602_v13 = vpop.permute.xlu0 %784 }
  0xc4   : > { %4843 = vst [vmem:[#allocation74_spill] sm:$0xff] %v3600_v30  ;;  %4844 = vst [vmem:[#allocation75_spill] sm:$0xff] %v3602_v13  ;;  %2605 = vmatpush3.msra.mxu0 %v1867_v47  ;;  %2679 = vmatpush3.msra.mxu1 %v1867_v47  ;;  %v4847_v30 = vld [vmem:[#allocation5_spill] sm:$0xff] }
  0xc7   : > { %1403 = vrot.lane.b32.xlu1 %v2916_v28, %s2740_s16  ;;  %1114 = vrot.lane.b32.xlu0 %v2916_v28, %s2737_s29  ;;  %v3608_v16 = vpop.permute.xlu1 %786  ;;  %v3610_v20 = vpop.permute.xlu0 %788 }
  0xc8   : > { %4845 = vst [vmem:[#allocation76_spill] sm:$0xff] %v3608_v16  ;;  %4846 = vst [vmem:[#allocation77_spill] sm:$0xff] %v3610_v20 }
  0xcb   : > { %1405 = vrot.lane.b32.xlu1 %v4847_v30, %s2740_s16  ;;  %1499 = vrot.lane.b32.xlu0 %v3309_v18, %s2741_s17  ;;  %v3616_v42 = vpop.permute.xlu1 %790  ;;  %v3618_v13 = vpop.permute.xlu0 %792 }
  0xcc   : > { %4848 = vst [vmem:[#allocation5_spill] sm:$0xff] %v3616_v42  ;;  %4849 = vst [vmem:[#allocation78_spill] sm:$0xff] %v3618_v13  ;;  %v4853_v13 = vld [vmem:[#allocation7_spill] sm:$0xff] }
  0xcf   : > { %1116 = vrot.lane.b32.xlu1 %v4847_v30, %s2737_s29  ;;  %1215 = vrot.lane.b32.xlu0 %v3309_v18, %s2738_s30 }
  0xd1   : > { %v3624_v28 = vpop.permute.xlu1 %794  ;;  %v3626_v47 = vpop.permute.xlu0 %796 }
  0xd2   : > { %4850 = vst [vmem:[#allocation79_spill] sm:$0xff] %v3624_v28  ;;  %4851 = vst [vmem:[#allocation80_spill] sm:$0xff] %v3626_v47  ;;  %v4852_v28 = vld [vmem:[#allocation6_spill] sm:$0xff] }
  0xd3   : > { %1501 = vrot.lane.b32.xlu1 %v3318_v60, %s2741_s17  ;;  %1217 = vrot.lane.b32.xlu0 %v3318_v60, %s2738_s30 }
  0xd5   : > { %v3632_v20 = vpop.permute.xlu1 %2703  ;;  %v3634_v42 = vpop.permute.xlu0 %915 }
  0xd7   : > { %1311 = vrot.lane.b32.xlu1 %v2909_v24, %s2739_s13  ;;  %1313 = vrot.lane.b32.xlu0 %v2893_v15, %s2739_s13 }
  0xd9   : > { %v3640_v18 = vpop.permute.xlu1 %917  ;;  %v3642_v30 = vpop.permute.xlu0 %919 }
  0xdb   : > { %1407 = vrot.lane.b32.xlu1 %v4852_v28, %s2740_s16  ;;  %1118 = vrot.lane.b32.xlu0 %v4852_v28, %s2737_s29 }
  0xdd   : > { %v3648_v60 = vpop.permute.xlu1 %921  ;;  %v3650_v47 = vpop.permute.xlu0 %923 }
  0xdf   : > { %1409 = vrot.lane.b32.xlu1 %v4853_v13, %s2740_s16  ;;  %1503 = vrot.lane.b32.xlu0 %v3321_v14, %s2741_s17 }
  0xe1   : > { %v3656_v16 = vpop.permute.xlu1 %925  ;;  %v3658_v21 = vpop.permute.xlu0 %927 }
  0xe3   : > { %1120 = vrot.lane.b32.xlu1 %v4853_v13, %s2737_s29  ;;  %1219 = vrot.lane.b32.xlu0 %v3321_v14, %s2738_s30 }
  0xe5   : > { %v3664_v28 = vpop.permute.xlu1 %929  ;;  %v3666_v22 = vpop.permute.xlu0 %931 }
  0xe6   : > { %4854 = vst [vmem:[#allocation6_spill] sm:$0xff] %v3666_v22 }
  0xe7   : > { %1505 = vrot.lane.b32.xlu1 %v3332_v11, %s2741_s17  ;;  %1221 = vrot.lane.b32.xlu0 %v3332_v11, %s2738_s30 }
  0xe9   : > { %v3672_v8 = vpop.permute.xlu1 %933  ;;  %v3674_v25 = vpop.permute.xlu0 %935 }
  0xea   : > { %4855 = vst [vmem:[#allocation7_spill] sm:$0xff] %v3672_v8  ;;  %4856 = vst [vmem:[#allocation81_spill] sm:$0xff] %v3674_v25  ;;  %v4862_v25 = vld [vmem:[#allocation9_spill] sm:$0xff] }
  0xeb   : > { %1315 = vrot.lane.b32.xlu1 %v2929_v36, %s2739_s13  ;;  %1317 = vrot.lane.b32.xlu0 %v2926_v34, %s2739_s13 }
  0xed   : > { %v3680_v14 = vpop.permute.xlu1 %937  ;;  %v3682_v13 = vpop.permute.xlu0 %939 }
  0xee   : > { %4857 = vst [vmem:[#allocation82_spill] sm:$0xff] %v3680_v14  ;;  %4858 = vst [vmem:[#allocation83_spill] sm:$0xff] %v3682_v13 }
  0xef   : > { %1411 = vrot.lane.b32.xlu1 %v4859_v23, %s2740_s16  ;;  %1122 = vrot.lane.b32.xlu0 %v4859_v23, %s2737_s29 }
  0xf1   : > { %v3688_v11 = vpop.permute.xlu1 %941  ;;  %v3690_v32 = vpop.permute.xlu0 %943 }
  0xf2   : > { %4860 = vst [vmem:[#allocation8_spill] sm:$0xff] %v3688_v11  ;;  %4861 = vst [vmem:[#allocation84_spill] sm:$0xff] %v3690_v32 }
  0xf3   : > { %1413 = vrot.lane.b32.xlu1 %v4862_v25, %s2740_s16  ;;  %1507 = vrot.lane.b32.xlu0 %v3335_v35, %s2741_s17 }
  0xf5   : > { %v3696_v8 = vpop.permute.xlu1 %945  ;;  %v3698_v14 = vpop.permute.xlu0 %947 }
  0xf6   : > { %4863 = vst [vmem:[#allocation9_spill] sm:$0xff] %v3696_v8  ;;  %4864 = vst [vmem:[#allocation85_spill] sm:$0xff] %v3698_v14 }
  0xf7   : > { %1124 = vrot.lane.b32.xlu1 %v4862_v25, %s2737_s29  ;;  %1223 = vrot.lane.b32.xlu0 %v3335_v35, %s2738_s30 }
  0xf9   : > { %v3704_v23 = vpop.permute.xlu1 %949  ;;  %v3706_v11 = vpop.permute.xlu0 %951 }
  0xfa   : > { %4865 = vst [vmem:[#allocation86_spill] sm:$0xff] %v3704_v23  ;;  %4866 = vst [vmem:[#allocation87_spill] sm:$0xff] %v3706_v11  ;;  %v4871_v11 = vld [vmem:[#allocation16_spill] sm:$0xff] }
  0xfb   : > { %1509 = vrot.lane.b32.xlu1 %v3344_v49, %s2741_s17  ;;  %1225 = vrot.lane.b32.xlu0 %v3344_v49, %s2738_s30 }
  0xfd   : > { %v3712_v32 = vpop.permute.xlu1 %953  ;;  %v3714_v8 = vpop.permute.xlu0 %955 }
  0xfe   : > { %4867 = vst [vmem:[#allocation88_spill] sm:$0xff] %v3712_v32  ;;  %4868 = vst [vmem:[#allocation89_spill] sm:$0xff] %v3714_v8  ;;  %v4874_v8 = vld [vmem:[#allocation17_spill] sm:$0xff] }
  0xff   : > { %1319 = vrot.lane.b32.xlu1 %v2989_v41, %s2739_s13  ;;  %1321 = vrot.lane.b32.xlu0 %v2993_v50, %s2739_s13 }
 0x101   : > { %v3720_v35 = vpop.permute.xlu1 %957  ;;  %v3722_v25 = vpop.permute.xlu0 %959 }
 0x102   : > { %4869 = vst [vmem:[#allocation90_spill] sm:$0xff] %v3720_v35  ;;  %4870 = vst [vmem:[#allocation91_spill] sm:$0xff] %v3722_v25 }
 0x103   : > { %1415 = vrot.lane.b32.xlu1 %v4871_v11, %s2740_s16  ;;  %1126 = vrot.lane.b32.xlu0 %v4871_v11, %s2737_s29 }
 0x105   : > { %v3728_v49 = vpop.permute.xlu1 %961  ;;  %v3730_v32 = vpop.permute.xlu0 %963 }
 0x106   : > { %4872 = vst [vmem:[#allocation16_spill] sm:$0xff] %v3728_v49  ;;  %4873 = vst [vmem:[#allocation92_spill] sm:$0xff] %v3730_v32 }
 0x107   : > { %1417 = vrot.lane.b32.xlu1 %v4874_v8, %s2740_s16  ;;  %1511 = vrot.lane.b32.xlu0 %v3347_v37, %s2741_s17 }
 0x109   : > { %v3736_v23 = vpop.permute.xlu1 %965  ;;  %v3738_v35 = vpop.permute.xlu0 %967 }
 0x10a   : > { %4875 = vst [vmem:[#allocation17_spill] sm:$0xff] %v3736_v23  ;;  %4876 = vst [vmem:[#allocation93_spill] sm:$0xff] %v3738_v35 }
 0x10b   : > { %1128 = vrot.lane.b32.xlu1 %v4874_v8, %s2737_s29  ;;  %1227 = vrot.lane.b32.xlu0 %v3347_v37, %s2738_s30 }
 0x10d   : > { %v3744_v11 = vpop.permute.xlu1 %969  ;;  %v3746_v49 = vpop.permute.xlu0 %971 }
 0x10e   : > { %4877 = vst [vmem:[#allocation94_spill] sm:$0xff] %v3744_v11  ;;  %4878 = vst [vmem:[#allocation95_spill] sm:$0xff] %v3746_v49  ;;  %v4880_v49 = vld [vmem:[#allocation18_spill] sm:$0xff]  ;;  %v4881_v11 = vld [vmem:[#allocation19_spill] sm:$0xff] }
 0x10f   : > { %1513 = vrot.lane.b32.xlu1 %v3358_v1, %s2741_s17  ;;  %1229 = vrot.lane.b32.xlu0 %v3358_v1, %s2738_s30 }
 0x111   : > { %v3752_v32 = vpop.permute.xlu1 %973  ;;  %v1009_v23 = vpop.permute.xlu0 %1008 }
 0x112   : > { %4879 = vst [vmem:[#allocation96_spill] sm:$0xff] %v3752_v32 }
 0x113   : > { %1323 = vrot.lane.b32.xlu1 %v2999_v53, %s2739_s13  ;;  %1325 = vrot.lane.b32.xlu0 %v3005_v58, %s2739_s13  ;;  %v4885_v53 = vld [vmem:[#allocation20_spill] sm:$0xff] }
 0x115   : > { %v3758_v37 = vpop.permute.xlu1 %1010  ;;  %v3760_v8 = vpop.permute.xlu0 %1012 }
 0x117   : > { %1419 = vrot.lane.b32.xlu1 %v4880_v49, %s2740_s16  ;;  %1130 = vrot.lane.b32.xlu0 %v4880_v49, %s2737_s29 }
 0x119   : > { %v3766_v1 = vpop.permute.xlu1 %1014  ;;  %v3768_v32 = vpop.permute.xlu0 %1016 }
 0x11b   : > { %1421 = vrot.lane.b32.xlu1 %v4881_v11, %s2740_s16  ;;  %1515 = vrot.lane.b32.xlu0 %v3361_v55, %s2741_s17 }
 0x11d   : > { %v3774_v35 = vpop.permute.xlu1 %1018  ;;  %v3776_v25 = vpop.permute.xlu0 %1020 }
 0x11f   : > { %1132 = vrot.lane.b32.xlu1 %v4881_v11, %s2737_s29  ;;  %1231 = vrot.lane.b32.xlu0 %v3361_v55, %s2738_s30 }
 0x121   : > { %v3782_v49 = vpop.permute.xlu1 %1022  ;;  %v3784_v14 = vpop.permute.xlu0 %1024 }
 0x123   : > { %1517 = vrot.lane.b32.xlu1 %v3371_v61, %s2741_s17  ;;  %1233 = vrot.lane.b32.xlu0 %v3371_v61, %s2738_s30 }
 0x125   : > { %v3790_v13 = vpop.permute.xlu1 %1026  ;;  %v3792_v58 = vpop.permute.xlu0 %1028 }
 0x126   : > { %4882 = vst [vmem:[#allocation18_spill] sm:$0xff] %v3792_v58 }
 0x127   : > { %1327 = vrot.lane.b32.xlu1 %v3016_v63, %s2739_s13  ;;  %1329 = vrot.lane.b32.xlu0 %v3013_v62, %s2739_s13  ;;  %v4886_v63 = vld [vmem:[#allocation21_spill] sm:$0xff] }
 0x129   : > { %v3798_v55 = vpop.permute.xlu1 %1030  ;;  %v3800_v11 = vpop.permute.xlu0 %1032 }
 0x12a   : > { %4883 = vst [vmem:[#allocation19_spill] sm:$0xff] %v3798_v55  ;;  %4884 = vst [vmem:[#allocation97_spill] sm:$0xff] %v3800_v11  ;;  %v2700_v55 = vunpack.i.l.bf16 %v3454_v43 }
 0x12b   : > { %1423 = vrot.lane.b32.xlu1 %v4885_v53, %s2740_s16  ;;  %1034 = vrot.lane.b32.xlu0 %v3013_v62, %s2736_s12  ;;  %v2705_v62 = vunpack.i.l.bf16 %v3632_v20 }
 0x12d   : > { %v1111_v61 = vpop.permute.xlu1 %1110  ;;  %v1113_v50 = vpop.permute.xlu0 %1112 }
 0x12f   : > { %1134 = vrot.lane.b32.xlu1 %v4885_v53, %s2737_s29  ;;  %1425 = vrot.lane.b32.xlu0 %v4886_v63, %s2740_s16  ;;  %v4887_v53 = vld [vmem:[#allocation3_spill] sm:$0xff] }
 0x130   : > { %v1596_v41 = vsel %vm1595_vm3, %v4887_v53, %v2700_v55  ;;  %v2701_v55 = vunpack.i.h.bf16 %v3454_v43 }
 0x131   : > { %v1212_v29 = vpop.permute.xlu1 %1211  ;;  %v1214_v58 = vpop.permute.xlu0 %1213  ;;  %v1629_v40 = vsel %vm1628_vm5, %v1596_v41, %v2705_v62  ;;  %v2706_v41 = vunpack.i.h.bf16 %v3632_v20 }
 0x133   : > { %1519 = vrot.lane.b32.xlu1 %v3374_v3, %s2741_s17  ;;  %1136 = vrot.lane.b32.xlu0 %v4886_v63, %s2737_s29  ;;  %v1662_v63 = vsel %vm1661_vm4, %v1629_v40, %v1009_v23 }
 0x134   : > { %v1695_v9 = vsel %vm1694_vm6, %v1662_v63, %v1111_v61  ;;  %v4888_v61 = vld [vmem:[#allocation2_spill] sm:$0xff] }
 0x135   : > { %v1308_v11 = vpop.permute.xlu1 %1307  ;;  %v1310_v22 = vpop.permute.xlu0 %1309  ;;  %v1728_v53 = vsel %vm1727_vm7, %v1695_v9, %v1212_v29  ;;  %v1597_v9 = vsel %vm1595_vm3, %v4888_v61, %v2701_v55  ;;  %v4889_v63 = vld [vmem:[#allocation22_spill] sm:$0xff] }
 0x136   : > { %v1761_v62 = vsel %vm1760_vm8, %v1728_v53, %v1308_v11 }
 0x137   : > { %1235 = vrot.lane.b32.xlu1 %v3374_v3, %s2738_s30  ;;  %1521 = vrot.lane.b32.xlu0 %v3383_v39, %s2741_s17 }
 0x139   : > { %v1404_v33 = vpop.permute.xlu1 %1403  ;;  %v1115_v19 = vpop.permute.xlu0 %1114 }
 0x13a   : > { %v1794_v3 = vsel %vm1793_vm9, %v1761_v62, %v1404_v33 }
 0x13b   : > { %1237 = vrot.lane.b32.xlu1 %v3383_v39, %s2738_s30  ;;  %1331 = vrot.lane.b32.xlu0 %v3056_v45, %s2739_s13  ;;  %v1630_v39 = vsel %vm1628_vm5, %v1597_v9, %v2706_v41 }
 0x13c   : > { %v1663_v33 = vsel %vm1661_vm4, %v1630_v39, %v3758_v37 }
 0x13d   : > { %v1406_v40 = vpop.permute.xlu1 %1405  ;;  %v1500_v23 = vpop.permute.xlu0 %1499  ;;  %v1696_v11 = vsel %vm1694_vm6, %v1663_v33, %v1113_v50  ;;  %v4890_v50 = vld [vmem:[#allocation23_spill] sm:$0xff] }
 0x13e   : > { %v1827_v43 = vsel %vm1826_vm10, %v1794_v3, %v1500_v23  ;;  %v1729_v53 = vsel %vm1727_vm7, %v1696_v11, %v1214_v58 }
 0x13f   : > { %1036 = vrot.lane.b32.xlu1 %v3056_v45, %s2736_s12  ;;  %1333 = vrot.lane.b32.xlu0 %v3067_v59, %s2739_s13  ;;  %v1762_v55 = vsel %vm1760_vm8, %v1729_v53, %v1310_v22  ;;  %v1598_v22 = vsel %vm1595_vm3, %v2877_v4, %v3473_v17 }
 0x140   : > { %2606 = vmatprep.mubr.msk.f32.mxu0 %vm1875_vm11, %v1827_v43  ;;  %v1795_v41 = vsel %vm1793_vm9, %v1762_v55, %v1406_v40  ;;  %v1631_v40 = vsel %vm1628_vm5, %v1598_v22, %v3634_v42 }
 0x141   : > { %v1117_v29 = vpop.permute.xlu1 %1116  ;;  %v1216_v20 = vpop.permute.xlu0 %1215  ;;  %v1664_v43 = vsel %vm1661_vm4, %v1631_v40, %v3760_v8 }
 0x142   : > { %v1697_v33 = vsel %vm1694_vm6, %v1664_v43, %v1115_v19  ;;  %v1599_v19 = vsel %vm1595_vm3, %v2871_v0, %v3471_v51  ;;  %v4891_v51 = vld [vmem:[#allocation24_spill] sm:$0xff] }
 0x143   : > { %1427 = vrot.lane.b32.xlu1 %v4889_v63, %s2740_s16  ;;  %1038 = vrot.lane.b32.xlu0 %v3067_v59, %s2736_s12  ;;  %v1730_v11 = vsel %vm1727_vm7, %v1697_v33, %v1216_v20 }
 0x145   : > { %v1502_v62 = vpop.permute.xlu1 %1501  ;;  %v1218_v3 = vpop.permute.xlu0 %1217 }
 0x146   : > { %v1828_v37 = vsel %vm1826_vm10, %v1795_v41, %v1502_v62 }
 0x147   : > { %1138 = vrot.lane.b32.xlu1 %v4889_v63, %s2737_s29  ;;  %1429 = vrot.lane.b32.xlu0 %v4890_v50, %s2740_s16 }
 0x148   : > { %2607 = vmatmul.mubr.msk.f32.vlgmr.msra.gmra.mrb[0].mxu0 %vm1875_vm11, %v1828_v37 }
 0x149   : > { %v1312_v58 = vpop.permute.xlu1 %1311  ;;  %v1314_v23 = vpop.permute.xlu0 %1313 }
 0x14a   : > { %v1763_v4 = vsel %vm1760_vm8, %v1730_v11, %v1312_v58  ;;  %v1600_v58 = vsel %vm1595_vm3, %v2886_v12, %v3486_v52 }
 0x14b   : > { %1523 = vrot.lane.b32.xlu1 %v3386_v27, %s2741_s17  ;;  %1140 = vrot.lane.b32.xlu0 %v4890_v50, %s2737_s29  ;;  %v4892_v50 = vld [vmem:[#allocation26_spill] sm:$0xff]  ;;  %v1633_v22 = vsel %vm1628_vm5, %v1600_v58, %v3642_v30 }
 0x14c   : > { %v1666_v40 = vsel %vm1661_vm4, %v1633_v22, %v3768_v32 }
 0x14d   : > { %v1408_v9 = vpop.permute.xlu1 %1407  ;;  %v1119_v39 = vpop.permute.xlu0 %1118 }
 0x14e   : > { %v1796_v17 = vsel %vm1793_vm9, %v1763_v4, %v1408_v9  ;;  %v1699_v33 = vsel %vm1694_vm6, %v1666_v40, %v1119_v39  ;;  %v1601_v39 = vsel %vm1595_vm3, %v2883_v10, %v3488_v2 }
 0x14f   : > { %1239 = vrot.lane.b32.xlu1 %v3386_v27, %s2738_s30  ;;  %1525 = vrot.lane.b32.xlu0 %v3397_v7, %s2741_s17  ;;  %v1632_v27 = vsel %vm1628_vm5, %v1599_v19, %v3640_v18 }
 0x150   : > { %v1665_v20 = vsel %vm1661_vm4, %v1632_v27, %v3766_v1 }
 0x151   : > { %v1410_v42 = vpop.permute.xlu1 %1409  ;;  %v1504_v53 = vpop.permute.xlu0 %1503  ;;  %v1698_v41 = vsel %vm1694_vm6, %v1665_v20, %v1117_v29  ;;  %v4894_v20 = vld [vmem:[#allocation25_spill] sm:$0xff] }
 0x152   : > { %v1829_v8 = vsel %vm1826_vm10, %v1796_v17, %v1504_v53  ;;  %v1731_v0 = vsel %vm1727_vm7, %v1698_v41, %v1218_v3  ;;  %v1634_v17 = vsel %vm1628_vm5, %v1601_v39, %v3648_v60  ;;  %v4895_v41 = vld [vmem:[#allocation28_spill] sm:$0xff] }
 0x153   : > { %1241 = vrot.lane.b32.xlu1 %v3397_v7, %s2738_s30  ;;  %1335 = vrot.lane.b32.xlu0 %v3101_v48, %s2739_s13  ;;  %v1764_v7 = vsel %vm1760_vm8, %v1731_v0, %v1314_v23  ;;  %v4893_v23 = vld [vmem:[#allocation27_spill] sm:$0xff] }
 0x154   : > { %2609 = vmatprep.mubr.msk.f32.mxu0 %vm1875_vm11, %v1829_v8  ;;  %v1797_v18 = vsel %vm1793_vm9, %v1764_v7, %v1410_v42  ;;  %v1667_v42 = vsel %vm1661_vm4, %v1634_v17, %v3774_v35 }
 0x155   : > { %v1121_v63 = vpop.permute.xlu1 %1120  ;;  %v1220_v55 = vpop.permute.xlu0 %1219 }
 0x156   : > { %v1732_v11 = vsel %vm1727_vm7, %v1699_v33, %v1220_v55  ;;  %v1700_v19 = vsel %vm1694_vm6, %v1667_v42, %v1121_v63  ;;  %v1602_v55 = vsel %vm1595_vm3, %v2909_v24, %v3497_v5  ;;  %v4896_v24 = vld [vmem:[#allocation29_spill] sm:$0xff] }
 0x157   : > { %1040 = vrot.lane.b32.xlu1 %v3101_v48, %s2736_s12  ;;  %1337 = vrot.lane.b32.xlu0 %v4891_v51, %s2739_s13  ;;  %v1635_v0 = vsel %vm1628_vm5, %v1602_v55, %v3650_v47  ;;  %v4901_v55 = vld [vmem:[#allocation51_spill] sm:$0xff] }
 0x158   : > { %v1668_v7 = vsel %vm1661_vm4, %v1635_v0, %v3776_v25 }
 0x159   : > { %v1506_v62 = vpop.permute.xlu1 %1505  ;;  %v1222_v37 = vpop.permute.xlu0 %1221 }
 0x15a   : > { %v1830_v1 = vsel %vm1826_vm10, %v1797_v18, %v1506_v62  ;;  %v1733_v10 = vsel %vm1727_vm7, %v1700_v19, %v1222_v37  ;;  %v4899_v19 = vld [vmem:[#allocation32_spill] sm:$0xff] }
 0x15b   : > { %1431 = vrot.lane.b32.xlu1 %v4892_v50, %s2740_s16  ;;  %1042 = vrot.lane.b32.xlu0 %v4891_v51, %s2736_s12 }
 0x15c   : > { %2610 = vmatmul.mubr.msk.f32.gmra.mrb[2].mxu0 %vm1875_vm11, %v1830_v1 }
 0x15d   : > { %v1316_v29 = vpop.permute.xlu1 %1315  ;;  %v1318_v3 = vpop.permute.xlu0 %1317 }
 0x15e   : > { %v1765_v12 = vsel %vm1760_vm8, %v1732_v11, %v1316_v29  ;;  %v1766_v2 = vsel %vm1760_vm8, %v1733_v10, %v1318_v3  ;;  %v1603_v3 = vsel %vm1595_vm3, %v2893_v15, %v3499_v6 }
 0x15f   : > { %1142 = vrot.lane.b32.xlu1 %v4892_v50, %s2737_s29  ;;  %1433 = vrot.lane.b32.xlu0 %v4893_v23, %s2740_s16  ;;  %v1636_v58 = vsel %vm1628_vm5, %v1603_v3, %v3656_v16 }
 0x161   : > { %v1412_v43 = vpop.permute.xlu1 %1411  ;;  %v1123_v9 = vpop.permute.xlu0 %1122 }
 0x162   : > { %v1798_v52 = vsel %vm1793_vm9, %v1765_v12, %v1412_v43  ;;  %v1701_v37 = vsel %vm1694_vm6, %v1668_v7, %v1123_v9  ;;  %v1604_v12 = vsel %vm1595_vm3, %v2929_v36, %v3505_v44  ;;  %v4898_v36 = vld [vmem:[#allocation31_spill] sm:$0xff]  ;;  %v4902_v7 = vld [vmem:[#allocation33_spill] sm:$0xff] }
 0x163   : > { %1527 = vrot.lane.b32.xlu1 %v3400_v26, %s2741_s17  ;;  %1144 = vrot.lane.b32.xlu0 %v4893_v23, %s2737_s29  ;;  %v1669_v23 = vsel %vm1661_vm4, %v1636_v58, %v3782_v49 }
 0x165   : > { %v1414_v30 = vpop.permute.xlu1 %1413  ;;  %v1508_v4 = vpop.permute.xlu0 %1507 }
 0x166   : > { %v1831_v32 = vsel %vm1826_vm10, %v1798_v52, %v1508_v4  ;;  %v4897_v52 = vld [vmem:[#allocation30_spill] sm:$0xff] }
 0x167   : > { %1243 = vrot.lane.b32.xlu1 %v3400_v26, %s2738_s30  ;;  %1529 = vrot.lane.b32.xlu0 %v3410_v38, %s2741_s17  ;;  %v1799_v26 = vsel %vm1793_vm9, %v1766_v2, %v1414_v30 }
 0x168   : > { %2612 = vmatprep.mubr.msk.f32.mxu0 %vm1875_vm11, %v1831_v32 }
 0x169   : > { %v1125_v53 = vpop.permute.xlu1 %1124  ;;  %v1224_v8 = vpop.permute.xlu0 %1223 }
 0x16a   : > { %v1734_v1 = vsel %vm1727_vm7, %v1701_v37, %v1224_v8  ;;  %v1702_v43 = vsel %vm1694_vm6, %v1669_v23, %v1125_v53  ;;  %v1605_v8 = vsel %vm1595_vm3, %v2926_v34, %v3507_v31  ;;  %v4900_v31 = vld [vmem:[#allocation50_spill] sm:$0xff]  ;;  %v4903_v37 = vld [vmem:[#allocation60_spill] sm:$0xff] }
 0x16b   : > { %1245 = vrot.lane.b32.xlu1 %v3410_v38, %s2738_s30  ;;  %1339 = vrot.lane.b32.xlu0 %v3119_v54, %s2739_s13  ;;  %v1638_v10 = vsel %vm1628_vm5, %v1605_v8, %v3664_v28 }
 0x16c   : > { %v1671_v2 = vsel %vm1661_vm4, %v1638_v10, %v3790_v13 }
 0x16d   : > { %v1510_v60 = vpop.permute.xlu1 %1509  ;;  %v1226_v27 = vpop.permute.xlu0 %1225 }
 0x16e   : > { %v1832_v35 = vsel %vm1826_vm10, %v1799_v26, %v1510_v60  ;;  %v1735_v15 = vsel %vm1727_vm7, %v1702_v43, %v1226_v27 }
 0x16f   : > { %1044 = vrot.lane.b32.xlu1 %v3119_v54, %s2736_s12  ;;  %1341 = vrot.lane.b32.xlu0 %v4894_v20, %s2739_s13 }
 0x170   : > { %2613 = vmatmul.mubr.msk.f32.gmra.mrb[4].mxu0 %vm1875_vm11, %v1832_v35 }
 0x171   : > { %v1320_v38 = vpop.permute.xlu1 %1319  ;;  %v1322_v63 = vpop.permute.xlu0 %1321 }
 0x172   : > { %v1767_v5 = vsel %vm1760_vm8, %v1734_v1, %v1320_v38  ;;  %v1768_v6 = vsel %vm1760_vm8, %v1735_v15, %v1322_v63  ;;  %v4904_v1 = vld [vmem:[#allocation10_spill] sm:$0xff] }
 0x173   : > { %1435 = vrot.lane.b32.xlu1 %v4895_v41, %s2740_s16  ;;  %1046 = vrot.lane.b32.xlu0 %v4894_v20, %s2736_s12 }
 0x175   : > { %v1416_v18 = vpop.permute.xlu1 %1415  ;;  %v1127_v62 = vpop.permute.xlu0 %1126 }
 0x176   : > { %v1800_v50 = vsel %vm1793_vm9, %v1767_v5, %v1416_v18  ;;  %v4905_v5 = vld [vmem:[#allocation34_spill] sm:$0xff] }
 0x177   : > { %1146 = vrot.lane.b32.xlu1 %v4895_v41, %s2737_s29  ;;  %1437 = vrot.lane.b32.xlu0 %v4896_v24, %s2740_s16 }
 0x179   : > { %v1418_v47 = vpop.permute.xlu1 %1417  ;;  %v1512_v29 = vpop.permute.xlu0 %1511 }
 0x17a   : > { %v1833_v25 = vsel %vm1826_vm10, %v1800_v50, %v1512_v29  ;;  %v1801_v16 = vsel %vm1793_vm9, %v1768_v6, %v1418_v47  ;;  %v4906_v50 = vld [vmem:[#allocation6_spill] sm:$0xff]  ;;  %v4910_v6 = vld [vmem:[#allocation35_spill] sm:$0xff] }
 0x17b   : > { %1531 = vrot.lane.b32.xlu1 %v3413_v56, %s2741_s17  ;;  %1148 = vrot.lane.b32.xlu0 %v4896_v24, %s2737_s29  ;;  %v1606_v24 = vsel %vm1595_vm3, %v4904_v1, %v4903_v37  ;;  %v4907_v29 = vld [vmem:[#allocation18_spill] sm:$0xff]  ;;  %v4922_v37 = vld [vmem:[#allocation63_spill] sm:$0xff]  ;;  %v4923_v1 = vld [vmem:[#allocation13_spill] sm:$0xff] }
 0x17c   : > { %2615 = vmatprep.mubr.msk.f32.mxu0 %vm1875_vm11, %v1833_v25  ;;  %v1639_v47 = vsel %vm1628_vm5, %v1606_v24, %v4906_v50  ;;  %v1609_v24 = vsel %vm1595_vm3, %v4923_v1, %v4922_v37 }
 0x17d   : > { %v1129_v22 = vpop.permute.xlu1 %1128  ;;  %v1228_v40 = vpop.permute.xlu0 %1227  ;;  %v1672_v25 = vsel %vm1661_vm4, %v1639_v47, %v4907_v29  ;;  %v4924_v47 = vld [vmem:[#allocation40_spill] sm:$0xff]  ;;  %v4925_v29 = vld [vmem:[#allocation82_spill] sm:$0xff] }
 0x17e   : > { %v1704_v27 = vsel %vm1694_vm6, %v1671_v2, %v1129_v22  ;;  %v4908_v22 = vld [vmem:[#allocation61_spill] sm:$0xff] }
 0x17f   : > { %1247 = vrot.lane.b32.xlu1 %v3413_v56, %s2738_s30  ;;  %1533 = vrot.lane.b32.xlu0 %v3422_v57, %s2741_s17 }
 0x181   : > { %v1514_v9 = vpop.permute.xlu1 %1513  ;;  %v1230_v33 = vpop.permute.xlu0 %1229 }
 0x182   : > { %v1834_v49 = vsel %vm1826_vm10, %v1801_v16, %v1514_v9  ;;  %v1737_v34 = vsel %vm1727_vm7, %v1704_v27, %v1230_v33  ;;  %v4911_v16 = vld [vmem:[#allocation7_spill] sm:$0xff] }
 0x183   : > { %1249 = vrot.lane.b32.xlu1 %v3422_v57, %s2738_s30  ;;  %1343 = vrot.lane.b32.xlu0 %v3157_v46, %s2739_s13  ;;  %v1637_v57 = vsel %vm1628_vm5, %v1604_v12, %v3658_v21 }
 0x184   : > { %2616 = vmatmul.mubr.msk.f32.gmra.mrb[6].mxu0 %vm1875_vm11, %v1834_v49  ;;  %v1670_v30 = vsel %vm1661_vm4, %v1637_v57, %v3784_v14  ;;  %v4912_v49 = vld [vmem:[#allocation19_spill] sm:$0xff] }
 0x185   : > { %v1324_v56 = vpop.permute.xlu1 %1323  ;;  %v1326_v11 = vpop.permute.xlu0 %1325  ;;  %v1703_v39 = vsel %vm1694_vm6, %v1670_v30, %v1127_v62 }
 0x186   : > { %v1736_v17 = vsel %vm1727_vm7, %v1703_v39, %v1228_v40  ;;  %v1770_v35 = vsel %vm1760_vm8, %v1737_v34, %v1326_v11  ;;  %v4909_v40 = vld [vmem:[#allocation11_spill] sm:$0xff]  ;;  %v4913_v39 = vld [vmem:[#allocation36_spill] sm:$0xff]  ;;  %v4917_v34 = vld [vmem:[#allocation62_spill] sm:$0xff] }
 0x187   : > { %1048 = vrot.lane.b32.xlu1 %v3157_v46, %s2736_s12  ;;  %1345 = vrot.lane.b32.xlu0 %v4897_v52, %s2739_s13  ;;  %v1769_v44 = vsel %vm1760_vm8, %v1736_v17, %v1324_v56  ;;  %v1607_v43 = vsel %vm1595_vm3, %v4909_v40, %v4908_v22 }
 0x188   : > { %v1640_v9 = vsel %vm1628_vm5, %v1607_v43, %v4911_v16  ;;  %v4926_v16 = vld [vmem:[#allocation41_spill] sm:$0xff] }
 0x189   : > { %v1420_v4 = vpop.permute.xlu1 %1419  ;;  %v1131_v32 = vpop.permute.xlu0 %1130  ;;  %v1673_v56 = vsel %vm1661_vm4, %v1640_v9, %v4912_v49 }
 0x18a   : > { %v1802_v42 = vsel %vm1793_vm9, %v1769_v44, %v1420_v4  ;;  %v1705_v23 = vsel %vm1694_vm6, %v1672_v25, %v1131_v32  ;;  %v1642_v25 = vsel %vm1628_vm5, %v1609_v24, %v4925_v29  ;;  %v4938_v29 = vld [vmem:[#allocation45_spill] sm:$0xff] }
 0x18b   : > { %1439 = vrot.lane.b32.xlu1 %v4898_v36, %s2740_s16  ;;  %1050 = vrot.lane.b32.xlu0 %v4897_v52, %s2736_s12 }
 0x18d   : > { %v1422_v21 = vpop.permute.xlu1 %1421  ;;  %v1516_v53 = vpop.permute.xlu0 %1515 }
 0x18e   : > { %v1835_v14 = vsel %vm1826_vm10, %v1802_v42, %v1516_v53  ;;  %v1803_v28 = vsel %vm1793_vm9, %v1770_v35, %v1422_v21  ;;  %v4914_v53 = vld [vmem:[#allocation52_spill] sm:$0xff] }
 0x18f   : > { %1150 = vrot.lane.b32.xlu1 %v4898_v36, %s2737_s29  ;;  %1441 = vrot.lane.b32.xlu0 %v4899_v19, %s2740_s16 }
 0x190   : > { %2618 = vmatprep.mubr.msk.f32.mxu0 %vm1875_vm11, %v1835_v14 }
 0x191   : > { %v1133_v26 = vpop.permute.xlu1 %1132  ;;  %v1232_v60 = vpop.permute.xlu0 %1231 }
 0x192   : > { %v1738_v15 = vsel %vm1727_vm7, %v1705_v23, %v1232_v60  ;;  %v1706_v30 = vsel %vm1694_vm6, %v1673_v56, %v1133_v26  ;;  %v4916_v26 = vld [vmem:[#allocation38_spill] sm:$0xff] }
 0x193   : > { %1535 = vrot.lane.b32.xlu1 %v4900_v31, %s2741_s17  ;;  %1152 = vrot.lane.b32.xlu0 %v4899_v19, %s2737_s29  ;;  %v4915_v19 = vld [vmem:[#allocation53_spill] sm:$0xff] }
 0x195   : > { %v1518_v38 = vpop.permute.xlu1 %1517  ;;  %v1234_v63 = vpop.permute.xlu0 %1233 }
 0x196   : > { %v1836_v13 = vsel %vm1826_vm10, %v1803_v28, %v1518_v38  ;;  %v1739_v32 = vsel %vm1727_vm7, %v1706_v30, %v1234_v63  ;;  %v4919_v28 = vld [vmem:[#allocation37_spill] sm:$0xff]  ;;  %v4928_v30 = vld [vmem:[#allocation55_spill] sm:$0xff] }
 0x197   : > { %1251 = vrot.lane.b32.xlu1 %v4900_v31, %s2738_s30  ;;  %1537 = vrot.lane.b32.xlu0 %v4901_v55, %s2741_s17  ;;  %v4918_v31 = vld [vmem:[#allocation12_spill] sm:$0xff]  ;;  %v4920_v38 = vld [vmem:[#allocation81_spill] sm:$0xff] }
 0x198   : > { %2619 = vmatmul.mubr.msk.f32.gmra.mrb[8].mxu0 %vm1875_vm11, %v1836_v13  ;;  %v1608_v35 = vsel %vm1595_vm3, %v4918_v31, %v4917_v34  ;;  %v4921_v13 = vld [vmem:[#allocation97_spill] sm:$0xff] }
 0x199   : > { %v1328_v41 = vpop.permute.xlu1 %1327  ;;  %v1330_v0 = vpop.permute.xlu0 %1329  ;;  %v1641_v63 = vsel %vm1628_vm5, %v1608_v35, %v4920_v38  ;;  %v4934_v31 = vld [vmem:[#allocation65_spill] sm:$0xff]  ;;  %v4935_v35 = vld [vmem:[#allocation14_spill] sm:$0xff] }
 0x19a   : > { %v1771_v33 = vsel %vm1760_vm8, %v1738_v15, %v1328_v41  ;;  %v1772_v17 = vsel %vm1760_vm8, %v1739_v32, %v1330_v0  ;;  %v1611_v38 = vsel %vm1595_vm3, %v4935_v35, %v4934_v31  ;;  %v4945_v31 = vld [vmem:[#allocation67_spill] sm:$0xff] }
 0x19b   : > { %1253 = vrot.lane.b32.xlu1 %v4901_v55, %s2738_s30  ;;  %1347 = vrot.lane.b32.xlu0 %v4902_v7, %s2739_s13  ;;  %v1674_v55 = vsel %vm1661_vm4, %v1641_v63, %v4921_v13  ;;  %v4936_v13 = vld [vmem:[#allocation44_spill] sm:$0xff]  ;;  %v1613_v35 = vsel %vm1595_vm3, %v3067_v59, %v4945_v31 }
 0x19d   : > { %v1424_v18 = vpop.permute.xlu1 %1423  ;;  %v1035_v62 = vpop.permute.xlu0 %1034 }
 0x19e   : > { %v1804_v11 = vsel %vm1793_vm9, %v1771_v33, %v1424_v18  ;;  %v1675_v23 = vsel %vm1661_vm4, %v1642_v25, %v1035_v62 }
 0x19f   : > { %1052 = vrot.lane.b32.xlu1 %v4902_v7, %s2736_s12  ;;  %1349 = vrot.lane.b32.xlu0 %v4905_v5, %s2739_s13 }
 0x1a1   : > { %v1135_v3 = vpop.permute.xlu1 %1134  ;;  %v1426_v58 = vpop.permute.xlu0 %1425 }
 0x1a2   : > { %v1805_v36 = vsel %vm1793_vm9, %v1772_v17, %v1426_v58  ;;  %v1707_v18 = vsel %vm1694_vm6, %v1674_v55, %v1135_v3  ;;  %v4937_v55 = vld [vmem:[#allocation8_spill] sm:$0xff] }
 0x1a3   : > { %1443 = vrot.lane.b32.xlu1 %v4910_v6, %s2740_s16  ;;  %1054 = vrot.lane.b32.xlu0 %v4905_v5, %s2736_s12 }
 0x1a5   : > { %v1520_v12 = vpop.permute.xlu1 %1519  ;;  %v1137_v57 = vpop.permute.xlu0 %1136 }
 0x1a6   : > { %v1837_v4 = vsel %vm1826_vm10, %v1804_v11, %v1520_v12  ;;  %v1708_v43 = vsel %vm1694_vm6, %v1675_v23, %v1137_v57  ;;  %v4927_v11 = vld [vmem:[#allocation54_spill] sm:$0xff] }
 0x1a7   : > { %1154 = vrot.lane.b32.xlu1 %v4910_v6, %s2737_s29  ;;  %1445 = vrot.lane.b32.xlu0 %v4913_v39, %s2740_s16 }
 0x1a8   : > { %2621 = vmatprep.mubr.msk.f32.mxu0 %vm1875_vm11, %v1837_v4 }
 0x1a9   : > { %v1236_v44 = vpop.permute.xlu1 %1235  ;;  %v1522_v42 = vpop.permute.xlu0 %1521 }
 0x1aa   : > { %v1838_v21 = vsel %vm1826_vm10, %v1805_v36, %v1522_v42  ;;  %v1740_v50 = vsel %vm1727_vm7, %v1707_v18, %v1236_v44  ;;  %v4930_v44 = vld [vmem:[#allocation64_spill] sm:$0xff]  ;;  %v4931_v42 = vld [vmem:[#allocation15_spill] sm:$0xff] }
 0x1ab   : > { %1539 = vrot.lane.b32.xlu1 %v4914_v53, %s2741_s17  ;;  %1156 = vrot.lane.b32.xlu0 %v4913_v39, %s2737_s29  ;;  %v4929_v39 = vld [vmem:[#allocation42_spill] sm:$0xff] }
 0x1ac   : > { %2622 = vmatmul.mubr.msk.f32.gmra.mrb[10].mxu0 %vm1875_vm11, %v1838_v21  ;;  %v1610_v21 = vsel %vm1595_vm3, %v4931_v42, %v4930_v44  ;;  %v4944_v44 = vld [vmem:[#allocation84_spill] sm:$0xff] }
 0x1ad   : > { %v1238_v14 = vpop.permute.xlu1 %1237  ;;  %v1332_v8 = vpop.permute.xlu0 %1331 }
 0x1ae   : > { %v1773_v58 = vsel %vm1760_vm8, %v1740_v50, %v1332_v8  ;;  %v1741_v6 = vsel %vm1727_vm7, %v1708_v43, %v1238_v14  ;;  %v4933_v14 = vld [vmem:[#allocation83_spill] sm:$0xff] }
 0x1af   : > { %1255 = vrot.lane.b32.xlu1 %v4914_v53, %s2738_s30  ;;  %1541 = vrot.lane.b32.xlu0 %v4915_v19, %s2741_s17  ;;  %v4932_v53 = vld [vmem:[#allocation43_spill] sm:$0xff]  ;;  %v1643_v8 = vsel %vm1628_vm5, %v1610_v21, %v4933_v14  ;;  %v2723_v21 = vld [vmem:[%s4658_s2 + $0x1] ss:$0 sm:$0xff] }
 0x1b1   : > { %v1037_v10 = vpop.permute.xlu1 %1036  ;;  %v1334_v2 = vpop.permute.xlu0 %1333 }
 0x1b2   : > { %v1774_v9 = vsel %vm1760_vm8, %v1741_v6, %v1334_v2 }
 0x1b3   : > { %1257 = vrot.lane.b32.xlu1 %v4915_v19, %s2738_s30  ;;  %1351 = vrot.lane.b32.xlu0 %v4916_v26, %s2739_s13  ;;  %v1676_v19 = vsel %vm1661_vm4, %v1643_v8, %v1037_v10 }
 0x1b5   : > { %v1428_v60 = vpop.permute.xlu1 %1427  ;;  %v1039_v27 = vpop.permute.xlu0 %1038 }
 0x1b6   : > { %v1806_v3 = vsel %vm1793_vm9, %v1773_v58, %v1428_v60 }
 0x1b7   : > { %1056 = vrot.lane.b32.xlu1 %v4916_v26, %s2736_s12  ;;  %1353 = vrot.lane.b32.xlu0 %v4919_v28, %s2739_s13 }
 0x1b9   : > { %v1139_v41 = vpop.permute.xlu1 %1138  ;;  %v1430_v0 = vpop.permute.xlu0 %1429 }
 0x1ba   : > { %v1807_v62 = vsel %vm1793_vm9, %v1774_v9, %v1430_v0  ;;  %v1709_v34 = vsel %vm1694_vm6, %v1676_v19, %v1139_v41  ;;  %v1644_v0 = vsel %vm1628_vm5, %v1611_v38, %v4937_v55  ;;  %v307_v9 = vld [vmem:[%s2810_s28 + $0xf0] sm:$0xff] }
 0x1bb   : > { %1447 = vrot.lane.b32.xlu1 %v4924_v47, %s2740_s16  ;;  %1058 = vrot.lane.b32.xlu0 %v4919_v28, %s2736_s12  ;;  %v1677_v18 = vsel %vm1661_vm4, %v1644_v0, %v1039_v27 }
 0x1bd   : > { %v1524_v22 = vpop.permute.xlu1 %1523  ;;  %v1141_v40 = vpop.permute.xlu0 %1140 }
 0x1be   : > { %v1839_v15 = vsel %vm1826_vm10, %v1806_v3, %v1524_v22  ;;  %v1710_v24 = vsel %vm1694_vm6, %v1677_v18, %v1141_v40  ;;  %v4939_v22 = vld [vmem:[#allocation56_spill] sm:$0xff] }
 0x1bf   : > { %1158 = vrot.lane.b32.xlu1 %v4924_v47, %s2737_s29  ;;  %1449 = vrot.lane.b32.xlu0 %v4926_v16, %s2740_s16 }
 0x1c0   : > { %2624 = vmatprep.mubr.msk.f32.mxu0 %vm1875_vm11, %v1839_v15  ;;  %v4940_v15 = vld [vmem:[#allocation57_spill] sm:$0xff] }
 0x1c1   : > { %v1240_v33 = vpop.permute.xlu1 %1239  ;;  %v1526_v49 = vpop.permute.xlu0 %1525 }
 0x1c2   : > { %v1840_v56 = vsel %vm1826_vm10, %v1807_v62, %v1526_v49  ;;  %v1742_v63 = vsel %vm1727_vm7, %v1709_v34, %v1240_v33  ;;  %v308_v62 = vld [vmem:[%s2810_s28 + $0xf8] sm:$0xff]  ;;  %v4941_v33 = vld [vmem:[#allocation46_spill] sm:$0xff] }
 0x1c3   : > { %1543 = vrot.lane.b32.xlu1 %v4927_v11, %s2741_s17  ;;  %1160 = vrot.lane.b32.xlu0 %v4926_v16, %s2737_s29  ;;  %v2722_v49 = vld [vmem:[%s4658_s2] ss:$0 sm:$0xff] }
 0x1c4   : > { %2625 = vmatmul.mubr.msk.f32.gmra.mrb[12].mxu0 %vm1875_vm11, %v1840_v56  ;;  %v344_v56 = vmul.f32 %v2722_v49, %v307_v9  ;;  %v4950_v9 = vld [vmem:[#allocation59_spill] sm:$0xff] }
 0x1c5   : > { %v1242_v12 = vpop.permute.xlu1 %1241  ;;  %v1336_v57 = vpop.permute.xlu0 %1335 }
 0x1c6   : > { %v1775_v10 = vsel %vm1760_vm8, %v1742_v63, %v1336_v57  ;;  %v1743_v47 = vsel %vm1727_vm7, %v1710_v24, %v1242_v12  ;;  %v345_v57 = vmul.f32 %v2722_v49, %v308_v62  ;;  %v381_v14 = vadd.f32 %v2723_v21, %v344_v56  ;;  %v4946_v63 = vld [vmem:[#allocation48_spill] sm:$0xff] }
 0x1c7   : > { %1259 = vrot.lane.b32.xlu1 %v4927_v11, %s2738_s30  ;;  %1545 = vrot.lane.b32.xlu0 %v4928_v30, %s2741_s17 }
 0x1c8   : > { %v382_v34 = vadd.f32 %v2723_v21, %v345_v57  ;;  %v413_v0 = vmax.f32 %v381_v14, 0.0  ;;  %v4951_v21 = vld [vmem:[#allocation68_spill] sm:$0xff] }
 0x1c9   : > { %v1041_v4 = vpop.permute.xlu1 %1040  ;;  %v1338_v32 = vpop.permute.xlu0 %1337  ;;  %v1614_v14 = vsel %vm1595_vm3, %v3101_v48, %v4951_v21 }
 0x1ca   : > { %v1776_v25 = vsel %vm1760_vm8, %v1743_v47, %v1338_v32  ;;  %v4948_v47 = vld [vmem:[#allocation49_spill] sm:$0xff] }
 0x1cb   : > { %1261 = vrot.lane.b32.xlu1 %v4928_v30, %s2738_s30  ;;  %1355 = vrot.lane.b32.xlu0 %v4929_v39, %s2739_s13  ;;  %v4942_v30 = vld [vmem:[#allocation66_spill] sm:$0xff] }
 0x1cc   : > { %v1612_v32 = vsel %vm1595_vm3, %v3056_v45, %v4942_v30 }
 0x1cd   : > { %v1432_v17 = vpop.permute.xlu1 %1431  ;;  %v4146_v36 = vpop.permute.xlu0 %1042  ;;  %v1645_v42 = vsel %vm1628_vm5, %v1612_v32, %v4944_v44 }
 0x1ce   : > { %v1808_v41 = vsel %vm1793_vm9, %v1775_v10, %v1432_v17  ;;  %v4943_v17 = vld [vmem:[#allocation47_spill] sm:$0xff]  ;;  %v1678_v8 = vsel %vm1661_vm4, %v1645_v42, %v1041_v4 }
 0x1cf   : > { %1060 = vrot.lane.b32.xlu1 %v4929_v39, %s2736_s12  ;;  %1357 = vrot.lane.b32.xlu0 %v4932_v53, %s2739_s13 }
 0x1d1   : > { %v1143_v2 = vpop.permute.xlu1 %1142  ;;  %v1434_v60 = vpop.permute.xlu0 %1433 }
 0x1d2   : > { %v1809_v27 = vsel %vm1793_vm9, %v1776_v25, %v1434_v60  ;;  %v1711_v45 = vsel %vm1694_vm6, %v1678_v8, %v1143_v2  ;;  %v4952_v8 = vld [vmem:[#allocation85_spill] sm:$0xff] }
 0x1d3   : > { %1451 = vrot.lane.b32.xlu1 %v4936_v13, %s2740_s16  ;;  %1062 = vrot.lane.b32.xlu0 %v4932_v53, %s2736_s12 }
 0x1d5   : > { %v1528_v37 = vpop.permute.xlu1 %1527  ;;  %v1145_v1 = vpop.permute.xlu0 %1144 }
 0x1d6   : > { %v1841_v50 = vsel %vm1826_vm10, %v1808_v41, %v1528_v37  ;;  %v414_v41 = vmax.f32 %v382_v34, 0.0 }
 0x1d7   : > { %1162 = vrot.lane.b32.xlu1 %v4936_v13, %s2737_s29  ;;  %1453 = vrot.lane.b32.xlu0 %v4938_v29, %s2740_s16  ;;  %v4947_v13 = vld [vmem:[#allocation9_spill] sm:$0xff] }
 0x1d8   : > { %2627 = vmatprep.mubr.msk.f32.mxu0 %vm1875_vm11, %v1841_v50  ;;  %v1646_v4 = vsel %vm1628_vm5, %v1613_v35, %v4947_v13 }
 0x1d9   : > { %v1244_v58 = vpop.permute.xlu1 %1243  ;;  %v1530_v23 = vpop.permute.xlu0 %1529  ;;  %v1679_v2 = vsel %vm1661_vm4, %v1646_v4, %v4146_v36  ;;  %v2724_v36 = vld [vmem:[%s2834_s9] ss:$0 sm:$0xff] }
 0x1da   : > { %v1842_v3 = vsel %vm1826_vm10, %v1809_v27, %v1530_v23  ;;  %v1744_v38 = vsel %vm1727_vm7, %v1711_v45, %v1244_v58  ;;  %v1712_v37 = vsel %vm1694_vm6, %v1679_v2, %v1145_v1  ;;  %v452_v25 = vadd.f32 %v2724_v36, %v413_v0  ;;  %v4954_v4 = vld [vmem:[#allocation86_spill] sm:$0xff] }
 0x1db   : > { %1547 = vrot.lane.b32.xlu1 %v4939_v22, %s2741_s17  ;;  %1164 = vrot.lane.b32.xlu0 %v4938_v29, %s2737_s29  ;;  %v453_v23 = vadd.f32 %v2724_v36, %v414_v41 }
 0x1dc   : > { %2628 = vmatmul.mubr.msk.f32.gmra.mrb[14].mxu0 %vm1875_vm11, %v1842_v3 }
 0x1dd   : > { %v1246_v40 = vpop.permute.xlu1 %1245  ;;  %v1340_v43 = vpop.permute.xlu0 %1339 }
 0x1de   : > { %v1777_v55 = vsel %vm1760_vm8, %v1744_v38, %v1340_v43  ;;  %v1745_v50 = vsel %vm1727_vm7, %v1712_v37, %v1246_v40  ;;  %v535_v40 = vrot.slane %v452_v25, 7 }
 0x1df   : > { %1263 = vrot.lane.b32.xlu1 %v4939_v22, %s2738_s30  ;;  %1549 = vrot.lane.b32.xlu0 %v4940_v15, %s2741_s17  ;;  %v4949_v22 = vld [vmem:[#allocation58_spill] sm:$0xff] }
 0x1e0   : > { %v603_v62 = vsel %vm487_vm0, 0.0, %v535_v40 }
 0x1e1   : > { %v4192_v6 = vpop.permute.xlu1 %1044  ;;  %v1342_v16 = vpop.permute.xlu0 %1341  ;;  %v1105_v57 = vrot.slane %v603_v62, 1 }
 0x1e2   : > { %v1778_v29 = vsel %vm1760_vm8, %v1745_v50, %v1342_v16  ;;  %v536_v16 = vrot.slane %v453_v23, 7 }
 0x1e3   : > { %1265 = vrot.lane.b32.xlu1 %v4940_v15, %s2738_s30  ;;  %1359 = vrot.lane.b32.xlu0 %v4941_v33, %s2739_s13 }
 0x1e4   : > { %v620_v42 = vsel %vm487_vm0, %v536_v16, 0.0 }
 0x1e5   : > { %v1436_v11 = vpop.permute.xlu1 %1435  ;;  %v4203_v12 = vpop.permute.xlu0 %1046  ;;  %v1108_v45 = vrot.slane %v620_v42, 1  ;;  %v1209_v36 = vrot.slane %v620_v42, 2 }
 0x1e6   : > { %v1810_v59 = vsel %vm1793_vm9, %v1777_v55, %v1436_v11  ;;  %v537_v11 = vsel %vm487_vm0, %v535_v40, %v536_v16 }
 0x1e7   : > { %1064 = vrot.lane.b32.xlu1 %v4941_v33, %s2736_s12  ;;  %1361 = vrot.lane.b32.xlu0 %v4943_v17, %s2739_s13  ;;  %v1106_v30 = vrot.slane %v537_v11, 1 }
 0x1e9   : > { %v1147_v19 = vpop.permute.xlu1 %1146  ;;  %v1438_v60 = vpop.permute.xlu0 %1437  ;;  %v1107_v34 = vsel %vm653_vm1, %v1105_v57, %v1106_v30  ;;  %v4958_v57 = vld [vmem:[#allocation39_spill] sm:$0xff] }
 0x1ea   : > { %v1811_v27 = vsel %vm1793_vm9, %v1778_v29, %v1438_v60  ;;  %v1647_v60 = vsel %vm1628_vm5, %v1614_v14, %v4952_v8  ;;  %v4324_v14 = vld [vmem:[%s4660_s4] ss:$0 sm:$0xff]  ;;  %v4960_v8 = vld [vmem:[#allocation71_spill] sm:$0xff] }
 0x1eb   : > { %1455 = vrot.lane.b32.xlu1 %v4946_v63, %s2740_s16  ;;  %1066 = vrot.lane.b32.xlu0 %v4943_v17, %s2736_s12  ;;  %v1680_v31 = vsel %vm1661_vm4, %v1647_v60, %v4192_v6  ;;  %v1206_v6 = vrot.slane %v603_v62, 2  ;;  %v1617_v60 = vsel %vm1595_vm3, %v4894_v20, %v4960_v8 }
 0x1ec   : > { %v1713_v48 = vsel %vm1694_vm6, %v1680_v31, %v1147_v19 }
 0x1ed   : > { %v1532_v10 = vpop.permute.xlu1 %1531  ;;  %v1149_v18 = vpop.permute.xlu0 %1148 }
 0x1ee   : > { %v1843_v24 = vsel %vm1826_vm10, %v1810_v59, %v1532_v10  ;;  %v1207_v59 = vrot.slane %v537_v11, 2  ;;  %v1109_v10 = vsel %vm653_vm1, %v1106_v30, %v1108_v45  ;;  %v4961_v45 = vld [vmem:[#allocation88_spill] sm:$0xff] }
 0x1ef   : > { %1166 = vrot.lane.b32.xlu1 %v4946_v63, %s2737_s29  ;;  %1457 = vrot.lane.b32.xlu0 %v4948_v47, %s2740_s16  ;;  %v4953_v63 = vld [vmem:[#allocation69_spill] sm:$0xff]  ;;  %v1650_v31 = vsel %vm1628_vm5, %v1617_v60, %v4961_v45 }
 0x1f0   : > { %2630 = vmatprep.mubr.msk.f32.mxu1 %vm1875_vm11, %v1843_v24  ;;  %v1615_v13 = vsel %vm1595_vm3, %v4891_v51, %v4953_v63 }
 0x1f1   : > { %v1248_v58 = vpop.permute.xlu1 %1247  ;;  %v1534_v1 = vpop.permute.xlu0 %1533  ;;  %v1648_v55 = vsel %vm1628_vm5, %v1615_v13, %v4954_v4 }
 0x1f2   : > { %v1844_v3 = vsel %vm1826_vm10, %v1811_v27, %v1534_v1  ;;  %v1746_v0 = vsel %vm1727_vm7, %v1713_v48, %v1248_v58  ;;  %v1681_v51 = vsel %vm1661_vm4, %v1648_v55, %v4203_v12  ;;  %v1208_v12 = vsel %vm830_vm2, %v1206_v6, %v1207_v59 }
 0x1f3   : > { %1551 = vrot.lane.b32.xlu1 %v4949_v22, %s2741_s17  ;;  %1168 = vrot.lane.b32.xlu0 %v4948_v47, %s2737_s29  ;;  %v1714_v24 = vsel %vm1694_vm6, %v1681_v51, %v1149_v18  ;;  %v1210_v1 = vsel %vm830_vm2, %v1207_v59, %v1209_v36 }
 0x1f4   : > { %2631 = vmatmul.mubr.msk.f32.vlgmr.msra.gmra.mrb[0].mxu1 %vm1875_vm11, %v1844_v3 }
 0x1f5   : > { %v1250_v43 = vpop.permute.xlu1 %1249  ;;  %v1344_v15 = vpop.permute.xlu0 %1343 }
 0x1f6   : > { %v1779_v2 = vsel %vm1760_vm8, %v1746_v0, %v1344_v15  ;;  %v1747_v47 = vsel %vm1727_vm7, %v1714_v24, %v1250_v43 }
 0x1f7   : > { %1267 = vrot.lane.b32.xlu1 %v4949_v22, %s2738_s30  ;;  %1553 = vrot.lane.b32.xlu0 %v4950_v9, %s2741_s17  ;;  %v4955_v22 = vld [vmem:[#allocation3_spill] sm:$0xff] }
 0x1f8   : > { %v2707_v40 = vpack.i.bf16 %v4888_v61, %v4955_v22  ;;  %v4959_v61 = vld [vmem:[#allocation87_spill] sm:$0xff] }
 0x1f9   : > { %v4255_v49 = vpop.permute.xlu1 %1048  ;;  %v1346_v56 = vpop.permute.xlu0 %1345 }
 0x1fa   : > { %v1780_v29 = vsel %vm1760_vm8, %v1747_v47, %v1346_v56 }
 0x1fb   : > { %1269 = vrot.lane.b32.xlu1 %v4950_v9, %s2738_s30  ;;  %1363 = vrot.lane.b32.xlu0 %v603_v62, %s2739_s13 }
 0x1fd   : > { %v1440_v32 = vpop.permute.xlu1 %1439  ;;  %v4261_v44 = vpop.permute.xlu0 %1050 }
 0x1fe   : > { %v1812_v19 = vsel %vm1793_vm9, %v1779_v2, %v1440_v32  ;;  %v1683_v20 = vsel %vm1661_vm4, %v1650_v31, %v4261_v44 }
 0x1ff   : > { %1068 = vrot.lane.b32.xlu1 %v603_v62, %s2736_s12  ;;  %1365 = vrot.lane.b32.xlu0 %v537_v11, %s2739_s13  ;;  %v4956_v62 = vld [vmem:[#allocation70_spill] sm:$0xff] }
 0x200   : > { %v1616_v56 = vsel %vm1595_vm3, %v3119_v54, %v4956_v62 }
 0x201   : > { %v1151_v35 = vpop.permute.xlu1 %1150  ;;  %v1442_v38 = vpop.permute.xlu0 %1441  ;;  %v1649_v30 = vsel %vm1628_vm5, %v1616_v56, %v4959_v61 }
 0x202   : > { %v1813_v25 = vsel %vm1793_vm9, %v1780_v29, %v1442_v38  ;;  %v1682_v32 = vsel %vm1661_vm4, %v1649_v30, %v4255_v49 }
 0x203   : > { %1459 = vrot.lane.b32.xlu1 %v1107_v34, %s2740_s16  ;;  %1070 = vrot.lane.b32.xlu0 %v537_v11, %s2736_s12  ;;  %v4957_v11 = vld [vmem:[#allocation4_spill] sm:$0xff]  ;;  %v1715_v54 = vsel %vm1694_vm6, %v1682_v32, %v1151_v35  ;;  %v4964_v32 = vld [vmem:[#allocation73_spill] sm:$0xff] }
 0x205   : > { %v1536_v41 = vpop.permute.xlu1 %1535  ;;  %v1153_v37 = vpop.permute.xlu0 %1152 }
 0x206   : > { %v1845_v50 = vsel %vm1826_vm10, %v1812_v19, %v1536_v41  ;;  %v1716_v0 = vsel %vm1694_vm6, %v1683_v20, %v1153_v37 }
 0x207   : > { %1170 = vrot.lane.b32.xlu1 %v1107_v34, %s2737_s29  ;;  %1461 = vrot.lane.b32.xlu0 %v1109_v10, %s2740_s16 }
 0x208   : > { %2633 = vmatprep.mubr.msk.f32.mxu1 %vm1875_vm11, %v1845_v50 }
 0x209   : > { %v1252_v27 = vpop.permute.xlu1 %1251  ;;  %v1538_v58 = vpop.permute.xlu0 %1537 }
 0x20a   : > { %v1846_v18 = vsel %vm1826_vm10, %v1813_v25, %v1538_v58  ;;  %v1748_v34 = vsel %vm1727_vm7, %v1715_v54, %v1252_v27 }
 0x20b   : > { %1555 = vrot.lane.b32.xlu1 %v1208_v12, %s2741_s17  ;;  %1172 = vrot.lane.b32.xlu0 %v1109_v10, %s2737_s29 }
 0x20c   : > { %2634 = vmatmul.mubr.msk.f32.gmra.mrb[2].mxu1 %vm1875_vm11, %v1846_v18 }
 0x20d   : > { %v1254_v23 = vpop.permute.xlu1 %1253  ;;  %v1348_v3 = vpop.permute.xlu0 %1347 }
 0x20e   : > { %v1781_v35 = vsel %vm1760_vm8, %v1748_v34, %v1348_v3  ;;  %v1749_v10 = vsel %vm1727_vm7, %v1716_v0, %v1254_v23  ;;  %v4962_v3 = vld [vmem:[#allocation72_spill] sm:$0xff]  ;;  %v4965_v34 = vld [vmem:[#allocation90_spill] sm:$0xff] }
 0x20f   : > { %1271 = vrot.lane.b32.xlu1 %v1208_v12, %s2738_s30  ;;  %1557 = vrot.lane.b32.xlu0 %v1210_v1, %s2741_s17  ;;  %v1618_v22 = vsel %vm1595_vm3, %v3157_v46, %v4962_v3 }
 0x211   : > { %v1053_v43 = vpop.permute.xlu1 %1052  ;;  %v1350_v15 = vpop.permute.xlu0 %1349 }
 0x212   : > { %v1782_v19 = vsel %vm1760_vm8, %v1749_v10, %v1350_v15  ;;  %v4963_v15 = vld [vmem:[#allocation89_spill] sm:$0xff] }
 0x213   : > { %1273 = vrot.lane.b32.xlu1 %v1210_v1, %s2738_s30  ;;  %2708 = vrot.lane.b32.xlu0 %v2707_v40, %s2739_s13  ;;  %s276_s30 = scalar_lea.vmem %s4662_s6, %s2506_s25 }
 0x215   : > { %v1444_v16 = vpop.permute.xlu1 %1443  ;;  %v4308_v9 = vpop.permute.xlu0 %1054 }
 0x216   : > { %v1814_v13 = vsel %vm1793_vm9, %v1781_v35, %v1444_v16  ;;  %v1651_v16 = vsel %vm1628_vm5, %v1618_v22, %v4963_v15 }
 0x217   : > { %2713 = vrot.lane.b32.xlu1 %v4957_v11, %s2740_s16  ;;  %2718 = vrot.lane.b32.xlu0 %v4958_v57, %s2741_s17  ;;  %v1684_v11 = vsel %vm1661_vm4, %v1651_v16, %v1053_v43 }
 0x219   : > { %v1155_v42 = vpop.permute.xlu1 %1154  ;;  %v1446_v21 = vpop.permute.xlu0 %1445 }
 0x21a   : > { %v1815_v24 = vsel %vm1793_vm9, %v1782_v19, %v1446_v21  ;;  %v1619_v21 = vsel %vm1595_vm3, %v4897_v52, %v4964_v32  ;;  %v1717_v54 = vsel %vm1694_vm6, %v1684_v11, %v1155_v42 }
 0x21b   : > { %v2608_v49 = vpop.f32.mrb[0].mxu0 }
 0x21c   : > { %v2044_v38 = vadd.f32 %v2608_v49, %v4324_v14  ;;  %v2038_v63 = vpop.f32.mrb[1].mxu0  ;;  %v1652_v49 = vsel %vm1628_vm5, %v1619_v21, %v4965_v34 }
 0x21d   : > { %v2039_v48 = vadd.f32 %v4324_v14, %v2038_v63  ;;  %v1540_v4 = vpop.permute.xlu1 %1539  ;;  %v1157_v55 = vpop.permute.xlu0 %1156  ;;  %v1685_v52 = vsel %vm1661_vm4, %v1652_v49, %v4308_v9 }
 0x21e   : > { %2198 = vst.msk [vmem:[%s4336_s26 + $0x8] sm:$0xff] %vm1595_vm3, %v2044_v38  ;;  %v2230_v2 = vsel %vm1595_vm3, %v2044_v38, 0.0  ;;  %v2299_v6 = vmul.f32 %v2044_v38, %v2044_v38  ;;  %v1847_v59 = vsel %vm1826_vm10, %v1814_v13, %v1540_v4  ;;  %v1718_v13 = vsel %vm1694_vm6, %v1685_v52, %v1157_v55 }
 0x21f   : > { %2197 = vst.msk [vmem:[%s4336_s26] sm:$0xff] %vm1595_vm3, %v2039_v48  ;;  %v2229_v44 = vsel %vm1595_vm3, %v2039_v48, 0.0  ;;  %v2298_v51 = vmul.f32 %v2039_v48, %v2039_v48  ;;  %2636 = vmatprep.mubr.msk.f32.mxu1 %vm1875_vm11, %v1847_v59 }
 0x220   : > { %v2331_v41 = vsel %vm1595_vm3, %v2299_v6, 0.0  ;;  %v2231_v37 = vadd.f32 %v2230_v2, %v2229_v44 }
 0x221   : > { %v2330_v50 = vsel %vm1595_vm3, %v2298_v51, 0.0  ;;  %v1256_v47 = vpop.permute.xlu1 %1255  ;;  %v1542_v29 = vpop.permute.xlu0 %1541 }
 0x222   : > { %v2332_v12 = vadd.f32 %v2331_v41, %v2330_v50  ;;  %v1848_v36 = vsel %vm1826_vm10, %v1815_v24, %v1542_v29  ;;  %v1750_v46 = vsel %vm1727_vm7, %v1717_v54, %v1256_v47  ;;  %v4968_v54 = vld [vmem:[#allocation75_spill] sm:$0xff] }
 0x223   : > { %2637 = vmatmul.mubr.msk.f32.gmra.mrb[4].mxu1 %vm1875_vm11, %v1848_v36 }
 0x225   : > { %v1258_v25 = vpop.permute.xlu1 %1257  ;;  %v1352_v27 = vpop.permute.xlu0 %1351 }
 0x226   : > { %v1783_v45 = vsel %vm1760_vm8, %v1750_v46, %v1352_v27  ;;  %v1751_v2 = vsel %vm1727_vm7, %v1718_v13, %v1258_v25  ;;  %v4966_v27 = vld [vmem:[#allocation74_spill] sm:$0xff]  ;;  %v1621_v46 = vsel %vm1595_vm3, %v4905_v5, %v4968_v54 }
 0x229   : > { %v4362_v58 = vpop.permute.xlu1 %1056  ;;  %v1354_v18 = vpop.permute.xlu0 %1353 }
 0x22a   : > { %v1784_v9 = vsel %vm1760_vm8, %v1751_v2, %v1354_v18  ;;  %v1620_v18 = vsel %vm1595_vm3, %v4902_v7, %v4966_v27 }
 0x22d   : > { %v1448_v1 = vpop.permute.xlu1 %1447  ;;  %v4364_v23 = vpop.permute.xlu0 %1058 }
 0x22e   : > { %v1816_v42 = vsel %vm1793_vm9, %v1783_v45, %v1448_v1 }
 0x22f   : > { %v2611_v40 = vpop.f32.mrb[2].mxu0 }
 0x230   : > { %v2054_v62 = vadd.f32 %v2611_v40, %v4324_v14  ;;  %v2048_v56 = vpop.f32.mrb[3].mxu0  ;;  %v4967_v40 = vld [vmem:[#allocation91_spill] sm:$0xff] }
 0x231   : > { %v2049_v57 = vadd.f32 %v4324_v14, %v2048_v56  ;;  %v1159_v61 = vpop.permute.xlu1 %1158  ;;  %v1450_v30 = vpop.permute.xlu0 %1449  ;;  %v1653_v15 = vsel %vm1628_vm5, %v1620_v18, %v4967_v40 }
 0x232   : > { %2200 = vst.msk [vmem:[%s4336_s26 + $0x18] sm:$0xff] %vm1595_vm3, %v2054_v62  ;;  %v2301_v8 = vmul.f32 %v2054_v62, %v2054_v62  ;;  %v2234_v35 = vsel %vm1595_vm3, %v2054_v62, 0.0  ;;  %v1817_v10 = vsel %vm1793_vm9, %v1784_v9, %v1450_v30  ;;  %v1686_v62 = vsel %vm1661_vm4, %v1653_v15, %v4362_v58 }
 0x233   : > { %2199 = vst.msk [vmem:[%s4336_s26 + $0x10] sm:$0xff] %vm1595_vm3, %v2049_v57  ;;  %v2232_v60 = vsel %vm1595_vm3, %v2049_v57, 0.0  ;;  %v2300_v43 = vmul.f32 %v2049_v57, %v2049_v57  ;;  %v1719_v7 = vsel %vm1694_vm6, %v1686_v62, %v1159_v61 }
 0x234   : > { %v2233_v31 = vadd.f32 %v2232_v60, %v2231_v37  ;;  %v2335_v6 = vsel %vm1595_vm3, %v2301_v8, 0.0 }
 0x235   : > { %v2333_v38 = vsel %vm1595_vm3, %v2300_v43, 0.0  ;;  %v1544_v63 = vpop.permute.xlu1 %1543  ;;  %v1161_v20 = vpop.permute.xlu0 %1160  ;;  %v4969_v43 = vld [vmem:[#allocation16_spill] sm:$0xff] }
 0x236   : > { %v2334_v48 = vadd.f32 %v2333_v38, %v2332_v12  ;;  %v1849_v4 = vsel %vm1826_vm10, %v1816_v42, %v1544_v63  ;;  %v2235_v0 = vadd.f32 %v2234_v35, %v2233_v31  ;;  %v1654_v58 = vsel %vm1628_vm5, %v1621_v46, %v4969_v43 }
 0x237   : > { %2639 = vmatprep.mubr.msk.f32.mxu1 %vm1875_vm11, %v1849_v4  ;;  %v1687_v45 = vsel %vm1661_vm4, %v1654_v58, %v4364_v23 }
 0x238   : > { %v2336_v59 = vadd.f32 %v2335_v6, %v2334_v48  ;;  %v1720_v42 = vsel %vm1694_vm6, %v1687_v45, %v1161_v20 }
 0x239   : > { %v1260_v44 = vpop.permute.xlu1 %1259  ;;  %v1546_v51 = vpop.permute.xlu0 %1545 }
 0x23a   : > { %v1850_v55 = vsel %vm1826_vm10, %v1817_v10, %v1546_v51  ;;  %v1752_v8 = vsel %vm1727_vm7, %v1719_v7, %v1260_v44 }
 0x23b   : > { %2640 = vmatmul.mubr.msk.f32.gmra.mrb[6].mxu1 %vm1875_vm11, %v1850_v55 }
 0x23d   : > { %v1262_v19 = vpop.permute.xlu1 %1261  ;;  %v1356_v41 = vpop.permute.xlu0 %1355 }
 0x23e   : > { %v1785_v34 = vsel %vm1760_vm8, %v1752_v8, %v1356_v41  ;;  %v1753_v35 = vsel %vm1727_vm7, %v1720_v42, %v1262_v19 }
 0x241   : > { %v4401_v37 = vpop.permute.xlu1 %1060  ;;  %v1358_v24 = vpop.permute.xlu0 %1357 }
 0x242   : > { %v1786_v38 = vsel %vm1760_vm8, %v1753_v35, %v1358_v24 }
 0x243   : > { %v2614_v50 = vpop.f32.mrb[4].mxu0 }
 0x244   : > { %v2064_v47 = vadd.f32 %v2614_v50, %v4324_v14  ;;  %v2058_v29 = vpop.f32.mrb[5].mxu0 }
 0x245   : > { %v2059_v12 = vadd.f32 %v4324_v14, %v2058_v29  ;;  %v1452_v36 = vpop.permute.xlu1 %1451  ;;  %v4405_v25 = vpop.permute.xlu0 %1062 }
 0x246   : > { %2202 = vst.msk [vmem:[%s4336_s26 + $0x28] sm:$0xff] %vm1595_vm3, %v2064_v47  ;;  %v2303_v1 = vmul.f32 %v2064_v47, %v2064_v47  ;;  %v2238_v56 = vsel %vm1595_vm3, %v2064_v47, 0.0  ;;  %v1818_v61 = vsel %vm1793_vm9, %v1785_v34, %v1452_v36  ;;  %v4970_v36 = vld [vmem:[#allocation76_spill] sm:$0xff] }
 0x247   : > { %2201 = vst.msk [vmem:[%s4336_s26 + $0x20] sm:$0xff] %vm1595_vm3, %v2059_v12  ;;  %v2236_v3 = vsel %vm1595_vm3, %v2059_v12, 0.0  ;;  %v2302_v22 = vmul.f32 %v2059_v12, %v2059_v12  ;;  %v1622_v27 = vsel %vm1595_vm3, %v4916_v26, %v4970_v36  ;;  %v4973_v26 = vld [vmem:[#allocation17_spill] sm:$0xff] }
 0x248   : > { %v2237_v16 = vadd.f32 %v2236_v3, %v2235_v0  ;;  %v2339_v60 = vsel %vm1595_vm3, %v2303_v1, 0.0  ;;  %v4971_v1 = vld [vmem:[#allocation92_spill] sm:$0xff] }
 0x249   : > { %v2337_v11 = vsel %vm1595_vm3, %v2302_v22, 0.0  ;;  %v1163_v57 = vpop.permute.xlu1 %1162  ;;  %v1454_v30 = vpop.permute.xlu0 %1453  ;;  %v1655_v3 = vsel %vm1628_vm5, %v1622_v27, %v4971_v1 }
 0x24a   : > { %v2338_v32 = vadd.f32 %v2337_v11, %v2336_v59  ;;  %v2239_v21 = vadd.f32 %v2238_v56, %v2237_v16  ;;  %v1819_v63 = vsel %vm1793_vm9, %v1786_v38, %v1454_v30  ;;  %v1688_v40 = vsel %vm1661_vm4, %v1655_v3, %v4401_v37  ;;  %v4972_v56 = vld [vmem:[#allocation77_spill] sm:$0xff] }
 0x24b   : > { %v1721_v62 = vsel %vm1694_vm6, %v1688_v40, %v1163_v57  ;;  %v1623_v11 = vsel %vm1595_vm3, %v4919_v28, %v4972_v56 }
 0x24c   : > { %v2340_v49 = vadd.f32 %v2339_v60, %v2338_v32  ;;  %v1656_v7 = vsel %vm1628_vm5, %v1623_v11, %v4973_v26 }
 0x24d   : > { %v1548_v31 = vpop.permute.xlu1 %1547  ;;  %v1165_v52 = vpop.permute.xlu0 %1164 }
 0x24e   : > { %v1851_v5 = vsel %vm1826_vm10, %v1818_v61, %v1548_v31 }
 0x24f   : > { %2642 = vmatprep.mubr.msk.f32.mxu1 %vm1875_vm11, %v1851_v5 }
 0x251   : > { %v1264_v13 = vpop.permute.xlu1 %1263  ;;  %v1550_v23 = vpop.permute.xlu0 %1549 }
 0x252   : > { %v1852_v48 = vsel %vm1826_vm10, %v1819_v63, %v1550_v23  ;;  %v1754_v30 = vsel %vm1727_vm7, %v1721_v62, %v1264_v13 }
 0x253   : > { %2643 = vmatmul.mubr.msk.f32.gmra.mrb[8].mxu1 %vm1875_vm11, %v1852_v48 }
 0x255   : > { %v1266_v4 = vpop.permute.xlu1 %1265  ;;  %v1360_v20 = vpop.permute.xlu0 %1359 }
 0x256   : > { %v1787_v32 = vsel %vm1760_vm8, %v1754_v30, %v1360_v20 }
 0x257   : > { %v2617_v0 = vpop.f32.mrb[6].mxu0 }
 0x258   : > { %v2074_v2 = vadd.f32 %v2617_v0, %v4324_v14  ;;  %v2068_v6 = vpop.f32.mrb[7].mxu0 }
 0x259   : > { %v2069_v9 = vadd.f32 %v4324_v14, %v2068_v6  ;;  %v4443_v59 = vpop.permute.xlu1 %1064  ;;  %v1362_v10 = vpop.permute.xlu0 %1361 }
 0x25a   : > { %2204 = vst.msk [vmem:[%s4336_s26 + $0x38] sm:$0xff] %vm1595_vm3, %v2074_v2  ;;  %v2305_v44 = vmul.f32 %v2074_v2, %v2074_v2  ;;  %v2242_v41 = vsel %vm1595_vm3, %v2074_v2, 0.0 }
 0x25b   : > { %2203 = vst.msk [vmem:[%s4336_s26 + $0x30] sm:$0xff] %vm1595_vm3, %v2069_v9  ;;  %v2240_v51 = vsel %vm1595_vm3, %v2069_v9, 0.0  ;;  %v2304_v55 = vmul.f32 %v2069_v9, %v2069_v9 }
 0x25c   : > { %v2241_v19 = vadd.f32 %v2240_v51, %v2239_v21  ;;  %v2343_v18 = vsel %vm1595_vm3, %v2305_v44, 0.0  ;;  %v1689_v21 = vsel %vm1661_vm4, %v1656_v7, %v4405_v25  ;;  %v4974_v44 = vld [vmem:[#allocation5_spill] sm:$0xff] }
 0x25d   : > { %v2341_v24 = vsel %vm1595_vm3, %v2304_v55, 0.0  ;;  %v1456_v50 = vpop.permute.xlu1 %1455  ;;  %v1067_v47 = vpop.permute.xlu0 %1066  ;;  %v1722_v57 = vsel %vm1694_vm6, %v1689_v21, %v1165_v52  ;;  %v1624_v51 = vsel %vm1595_vm3, %v4929_v39, %v4974_v44  ;;  %v4975_v55 = vld [vmem:[#allocation93_spill] sm:$0xff] }
 0x25e   : > { %v2342_v29 = vadd.f32 %v2341_v24, %v2340_v49  ;;  %v2243_v12 = vadd.f32 %v2242_v41, %v2241_v19  ;;  %v1820_v37 = vsel %vm1793_vm9, %v1787_v32, %v1456_v50  ;;  %v1755_v28 = vsel %vm1727_vm7, %v1722_v57, %v1266_v4 }
 0x25f   : > { %v1788_v60 = vsel %vm1760_vm8, %v1755_v28, %v1362_v10  ;;  %v1657_v19 = vsel %vm1628_vm5, %v1624_v51, %v4975_v55  ;;  %v4979_v28 = vld [vmem:[#allocation79_spill] sm:$0xff] }
 0x260   : > { %v2344_v22 = vadd.f32 %v2343_v18, %v2342_v29  ;;  %v1690_v41 = vsel %vm1661_vm4, %v1657_v19, %v4443_v59  ;;  %v4977_v18 = vld [vmem:[#allocation94_spill] sm:$0xff] }
 0x261   : > { %v1167_v15 = vpop.permute.xlu1 %1166  ;;  %v1458_v16 = vpop.permute.xlu0 %1457 }
 0x262   : > { %v1821_v43 = vsel %vm1793_vm9, %v1788_v60, %v1458_v16  ;;  %v1723_v29 = vsel %vm1694_vm6, %v1690_v41, %v1167_v15  ;;  %v1626_v60 = vsel %vm1595_vm3, %v4941_v33, %v4979_v28 }
 0x265   : > { %v1552_v54 = vpop.permute.xlu1 %1551  ;;  %v1169_v46 = vpop.permute.xlu0 %1168 }
 0x266   : > { %v1853_v8 = vsel %vm1826_vm10, %v1820_v37, %v1552_v54  ;;  %v4978_v37 = vld [vmem:[#allocation80_spill] sm:$0xff] }
 0x267   : > { %2645 = vmatprep.mubr.msk.f32.mxu1 %vm1875_vm11, %v1853_v8  ;;  %v1627_v54 = vsel %vm1595_vm3, %v4943_v17, %v4978_v37 }
 0x269   : > { %v1268_v58 = vpop.permute.xlu1 %1267  ;;  %v1554_v25 = vpop.permute.xlu0 %1553 }
 0x26a   : > { %v1854_v34 = vsel %vm1826_vm10, %v1821_v43, %v1554_v25  ;;  %v1756_v27 = vsel %vm1727_vm7, %v1723_v29, %v1268_v58  ;;  %v4980_v43 = vld [vmem:[#allocation96_spill] sm:$0xff] }
 0x26b   : > { %v2620_v49 = vpop.f32.mrb[8].mxu0  ;;  %2646 = vmatmul.mubr.msk.f32.gmra.mrb[10].mxu1 %vm1875_vm11, %v1854_v34  ;;  %v1660_v58 = vsel %vm1628_vm5, %v1627_v54, %v4980_v43  ;;  %v4981_v34 = vld [vmem:[#allocation95_spill] sm:$0xff] }
 0x26c   : > { %v2084_v45 = vadd.f32 %v2620_v49, %v4324_v14  ;;  %v2078_v61 = vpop.f32.mrb[9].mxu0  ;;  %v1659_v49 = vsel %vm1628_vm5, %v1626_v60, %v4981_v34 }
 0x26d   : > { %v2079_v31 = vadd.f32 %v4324_v14, %v2078_v61  ;;  %v1270_v52 = vpop.permute.xlu1 %1269  ;;  %v1364_v42 = vpop.permute.xlu0 %1363 }
 0x26e   : > { %2206 = vst.msk [vmem:[%s4336_s26 + $0x48] sm:$0xff] %vm1595_vm3, %v2084_v45  ;;  %v2307_v5 = vmul.f32 %v2084_v45, %v2084_v45  ;;  %v2246_v13 = vsel %vm1595_vm3, %v2084_v45, 0.0  ;;  %v1789_v39 = vsel %vm1760_vm8, %v1756_v27, %v1364_v42 }
 0x26f   : > { %2205 = vst.msk [vmem:[%s4336_s26 + $0x40] sm:$0xff] %vm1595_vm3, %v2079_v31  ;;  %v2244_v35 = vsel %vm1595_vm3, %v2079_v31, 0.0  ;;  %v2306_v38 = vmul.f32 %v2079_v31, %v2079_v31 }
 0x270   : > { %v2245_v63 = vadd.f32 %v2244_v35, %v2243_v12  ;;  %v2347_v2 = vsel %vm1595_vm3, %v2307_v5, 0.0  ;;  %v4976_v12 = vld [vmem:[#allocation78_spill] sm:$0xff] }
 0x271   : > { %v2345_v23 = vsel %vm1595_vm3, %v2306_v38, 0.0  ;;  %v1069_v48 = vpop.permute.xlu1 %1068  ;;  %v1366_v4 = vpop.permute.xlu0 %1365  ;;  %v1625_v36 = vsel %vm1595_vm3, %v4932_v53, %v4976_v12 }
 0x272   : > { %v2346_v20 = vadd.f32 %v2345_v23, %v2344_v22  ;;  %v2247_v0 = vadd.f32 %v2246_v13, %v2245_v63  ;;  %v1658_v1 = vsel %vm1628_vm5, %v1625_v36, %v4977_v18 }
 0x273   : > { %v1691_v3 = vsel %vm1661_vm4, %v1658_v1, %v1067_v47 }
 0x274   : > { %v2348_v6 = vadd.f32 %v2347_v2, %v2346_v20  ;;  %v1724_v15 = vsel %vm1694_vm6, %v1691_v3, %v1169_v46 }
 0x275   : > { %v1460_v9 = vpop.permute.xlu1 %1459  ;;  %v1071_v10 = vpop.permute.xlu0 %1070  ;;  %v1757_v53 = vsel %vm1727_vm7, %v1724_v15, %v1270_v52  ;;  %v1692_v52 = vsel %vm1661_vm4, %v1659_v49, %v1069_v48 }
 0x276   : > { %v1822_v59 = vsel %vm1793_vm9, %v1789_v39, %v1460_v9  ;;  %v1790_v56 = vsel %vm1760_vm8, %v1757_v53, %v1366_v4  ;;  %v1693_v17 = vsel %vm1661_vm4, %v1660_v58, %v1071_v10 }
 0x279   : > { %v1171_v24 = vpop.permute.xlu1 %1170  ;;  %v1462_v50 = vpop.permute.xlu0 %1461 }
 0x27a   : > { %v1823_v30 = vsel %vm1793_vm9, %v1790_v56, %v1462_v50  ;;  %v1725_v23 = vsel %vm1694_vm6, %v1692_v52, %v1171_v24 }
 0x27d   : > { %v1556_v22 = vpop.permute.xlu1 %1555  ;;  %v1173_v40 = vpop.permute.xlu0 %1172 }
 0x27e   : > { %v1855_v16 = vsel %vm1826_vm10, %v1822_v59, %v1556_v22  ;;  %v1726_v42 = vsel %vm1694_vm6, %v1693_v17, %v1173_v40 }
 0x27f   : > { %v2623_v62 = vpop.f32.mrb[10].mxu0  ;;  %2648 = vmatprep.mubr.msk.f32.mxu1 %vm1875_vm11, %v1855_v16 }
 0x280   : > { %v2094_v11 = vadd.f32 %v2623_v62, %v4324_v14  ;;  %v2088_v47 = vpop.f32.mrb[11].mxu0 }
 0x281   : > { %v2089_v26 = vadd.f32 %v4324_v14, %v2088_v47  ;;  %v1272_v7 = vpop.permute.xlu1 %1271  ;;  %v1558_v32 = vpop.permute.xlu0 %1557 }
 0x282   : > { %2208 = vst.msk [vmem:[%s4336_s26 + $0x58] sm:$0xff] %vm1595_vm3, %v2094_v11  ;;  %v1856_v21 = vsel %vm1826_vm10, %v1823_v30, %v1558_v32  ;;  %v2309_v46 = vmul.f32 %v2094_v11, %v2094_v11  ;;  %v2250_v5 = vsel %vm1595_vm3, %v2094_v11, 0.0 }
 0x283   : > { %2207 = vst.msk [vmem:[%s4336_s26 + $0x50] sm:$0xff] %vm1595_vm3, %v2089_v26  ;;  %v2248_v57 = vsel %vm1595_vm3, %v2089_v26, 0.0  ;;  %v2308_v8 = vmul.f32 %v2089_v26, %v2089_v26  ;;  %2649 = vmatmul.mubr.msk.f32.gmra.mrb[12].mxu1 %vm1875_vm11, %v1856_v21 }
 0x284   : > { %v2249_v25 = vadd.f32 %v2248_v57, %v2247_v0  ;;  %v2351_v35 = vsel %vm1595_vm3, %v2309_v46, 0.0  ;;  %v1758_v0 = vsel %vm1727_vm7, %v1725_v23, %v1272_v7 }
 0x285   : > { %v2349_v45 = vsel %vm1595_vm3, %v2308_v8, 0.0  ;;  %v1274_v61 = vpop.permute.xlu1 %1273  ;;  %v2709_v31 = vpop.permute.xlu0 %2708 }
 0x286   : > { %v2350_v33 = vadd.f32 %v2349_v45, %v2348_v6  ;;  %v2711_v38 = vunpack.i.h.bf16 %v2709_v31  ;;  %v2710_v63 = vunpack.i.l.bf16 %v2709_v31  ;;  %v2251_v13 = vadd.f32 %v2250_v5, %v2249_v25 }
 0x287   : > { %v1759_v4 = vsel %vm1727_vm7, %v1726_v42, %v1274_v61 }
 0x288   : > { %v2352_v20 = vadd.f32 %v2351_v35, %v2350_v33  ;;  %v1792_v51 = vsel %vm1760_vm8, %v1759_v4, %v2711_v38  ;;  %v1791_v55 = vsel %vm1760_vm8, %v1758_v0, %v2710_v63 }
 0x289   : > { %v2714_v2 = vpop.permute.xlu1 %2713  ;;  %v2719_v9 = vpop.permute.xlu0 %2718 }
 0x28a   : > { %v2716_v48 = vunpack.i.h.bf16 %v2714_v2  ;;  %v2715_v10 = vunpack.i.l.bf16 %v2714_v2  ;;  %v2721_v44 = vunpack.i.h.bf16 %v2719_v9  ;;  %v2720_v6 = vunpack.i.l.bf16 %v2719_v9 }
 0x28c   : > { %v1824_v19 = vsel %vm1793_vm9, %v1791_v55, %v2715_v10  ;;  %v1825_v41 = vsel %vm1793_vm9, %v1792_v51, %v2716_v48 }
 0x28d   : > { %v1857_v24 = vsel %vm1826_vm10, %v1824_v19, %v2720_v6  ;;  %v1858_v50 = vsel %vm1826_vm10, %v1825_v41, %v2721_v44 }
 0x28e   : > { %2651 = vmatprep.mubr.msk.f32.mxu1 %vm1875_vm11, %v1857_v24 }
 0x28f   : > { %2652 = vmatmul.mubr.msk.f32.gmra.mrb[14].mxu1 %vm1875_vm11, %v1858_v50 }
 0x297   : > { %v2626_v29 = vpop.f32.mrb[12].mxu0 }
 0x298   : > { %v2104_v12 = vadd.f32 %v2626_v29, %v4324_v14  ;;  %v2098_v36 = vpop.f32.mrb[13].mxu0 }
 0x299   : > { %v2099_v27 = vadd.f32 %v4324_v14, %v2098_v36 }
 0x29a   : > { %2210 = vst.msk [vmem:[%s4336_s26 + $0x68] sm:$0xff] %vm1595_vm3, %v2104_v12  ;;  %v2311_v18 = vmul.f32 %v2104_v12, %v2104_v12  ;;  %v2254_v59 = vsel %vm1595_vm3, %v2104_v12, 0.0 }
 0x29b   : > { %2209 = vst.msk [vmem:[%s4336_s26 + $0x60] sm:$0xff] %vm1595_vm3, %v2099_v27  ;;  %v2252_v1 = vsel %vm1595_vm3, %v2099_v27, 0.0  ;;  %v2310_v39 = vmul.f32 %v2099_v27, %v2099_v27 }
 0x29c   : > { %v2253_v3 = vadd.f32 %v2252_v1, %v2251_v13  ;;  %v2355_v16 = vsel %vm1595_vm3, %v2311_v18, 0.0 }
 0x29d   : > { %v2353_v22 = vsel %vm1595_vm3, %v2310_v39, 0.0 }
 0x29e   : > { %v2354_v40 = vadd.f32 %v2353_v22, %v2352_v20  ;;  %v2255_v15 = vadd.f32 %v2254_v59, %v2253_v3 }
 0x2a0   : > { %v2356_v53 = vadd.f32 %v2355_v16, %v2354_v40 }
 0x2af   : > { %v2629_v62 = vpop.f32.mrb[14].mxu0 }
 0x2b0   : > { %v2114_v56 = vadd.f32 %v2629_v62, %v4324_v14  ;;  %v2108_v11 = vpop.f32.mrb[15].mxu0 }
 0x2b1   : > { %v2109_v47 = vadd.f32 %v4324_v14, %v2108_v11 }
 0x2b2   : > { %2212 = vst.msk [vmem:[%s4336_s26 + $0x78] sm:$0xff] %vm1595_vm3, %v2114_v56  ;;  %v2313_v30 = vmul.f32 %v2114_v56, %v2114_v56  ;;  %v2258_v21 = vsel %vm1595_vm3, %v2114_v56, 0.0 }
 0x2b3   : > { %2211 = vst.msk [vmem:[%s4336_s26 + $0x70] sm:$0xff] %vm1595_vm3, %v2109_v47  ;;  %v2256_v26 = vsel %vm1595_vm3, %v2109_v47, 0.0  ;;  %v2312_v7 = vmul.f32 %v2109_v47, %v2109_v47 }
 0x2b4   : > { %v2257_v32 = vadd.f32 %v2256_v26, %v2255_v15  ;;  %v2359_v57 = vsel %vm1595_vm3, %v2313_v30, 0.0 }
 0x2b5   : > { %v2357_v37 = vsel %vm1595_vm3, %v2312_v7, 0.0 }
 0x2b6   : > { %v2358_v54 = vadd.f32 %v2357_v37, %v2356_v53  ;;  %v2259_v46 = vadd.f32 %v2258_v21, %v2257_v32 }
 0x2b8   : > { %v2360_v8 = vadd.f32 %v2359_v57, %v2358_v54 }
 0x2c7   : > { %v2632_v28 = vpop.f32.mrb[0].mxu1 }
 0x2c8   : > { %v2124_v60 = vadd.f32 %v2632_v28, %v4324_v14  ;;  %v2118_v43 = vpop.f32.mrb[1].mxu1 }
 0x2c9   : > { %v2119_v58 = vadd.f32 %v4324_v14, %v2118_v43 }
 0x2ca   : > { %2214 = vst.msk [vmem:[%s4336_s26 + $0x88] sm:$0xff] %vm1595_vm3, %v2124_v60  ;;  %v2315_v25 = vmul.f32 %v2124_v60, %v2124_v60  ;;  %v2262_v45 = vsel %vm1595_vm3, %v2124_v60, 0.0 }
 0x2cb   : > { %2213 = vst.msk [vmem:[%s4336_s26 + $0x80] sm:$0xff] %vm1595_vm3, %v2119_v58  ;;  %v2260_v34 = vsel %vm1595_vm3, %v2119_v58, 0.0  ;;  %v2314_v49 = vmul.f32 %v2119_v58, %v2119_v58 }
 0x2cc   : > { %v2261_v17 = vadd.f32 %v2260_v34, %v2259_v46  ;;  %v2363_v42 = vsel %vm1595_vm3, %v2315_v25, 0.0 }
 0x2cd   : > { %v2361_v61 = vsel %vm1595_vm3, %v2314_v49, 0.0 }
 0x2ce   : > { %v2362_v31 = vadd.f32 %v2361_v61, %v2360_v8  ;;  %v2263_v52 = vadd.f32 %v2262_v45, %v2261_v17 }
 0x2d0   : > { %v2364_v5 = vadd.f32 %v2363_v42, %v2362_v31 }
 0x2df   : > { %v2635_v33 = vpop.f32.mrb[2].mxu1 }
 0x2e0   : > { %v2134_v35 = vadd.f32 %v2635_v33, %v4324_v14  ;;  %v2128_v38 = vpop.f32.mrb[3].mxu1 }
 0x2e1   : > { %v2129_v63 = vadd.f32 %v4324_v14, %v2128_v38 }
 0x2e2   : > { %2216 = vst.msk [vmem:[%s4336_s26 + $0x98] sm:$0xff] %vm1595_vm3, %v2134_v35  ;;  %v2317_v13 = vmul.f32 %v2134_v35, %v2134_v35  ;;  %v2266_v0 = vsel %vm1595_vm3, %v2134_v35, 0.0 }
 0x2e3   : > { %2215 = vst.msk [vmem:[%s4336_s26 + $0x90] sm:$0xff] %vm1595_vm3, %v2129_v63  ;;  %v2264_v23 = vsel %vm1595_vm3, %v2129_v63, 0.0  ;;  %v2316_v4 = vmul.f32 %v2129_v63, %v2129_v63 }
 0x2e4   : > { %v2265_v20 = vadd.f32 %v2264_v23, %v2263_v52  ;;  %v2367_v10 = vsel %vm1595_vm3, %v2317_v13, 0.0 }
 0x2e5   : > { %v2365_v2 = vsel %vm1595_vm3, %v2316_v4, 0.0 }
 0x2e6   : > { %v2366_v9 = vadd.f32 %v2365_v2, %v2364_v5  ;;  %v2267_v48 = vadd.f32 %v2266_v0, %v2265_v20 }
 0x2e8   : > { %v2368_v44 = vadd.f32 %v2367_v10, %v2366_v9 }
 0x2f6   : > { %v2638_v6 = vpop.f32.mrb[4].mxu1 }
 0x2f7   : > { %v2144_v51 = vadd.f32 %v2638_v6, %v4324_v14  ;;  %v2138_v55 = vpop.f32.mrb[5].mxu1 }
 0x2f8   : > { %v2139_v19 = vadd.f32 %v4324_v14, %v2138_v55 }
 0x2f9   : > { %2218 = vst.msk [vmem:[%s4336_s26 + $0xa8] sm:$0xff] %vm1595_vm3, %v2144_v51  ;;  %v2319_v41 = vmul.f32 %v2144_v51, %v2144_v51  ;;  %v2270_v12 = vsel %vm1595_vm3, %v2144_v51, 0.0 }
 0x2fa   : > { %2217 = vst.msk [vmem:[%s4336_s26 + $0xa0] sm:$0xff] %vm1595_vm3, %v2139_v19  ;;  %v2268_v24 = vsel %vm1595_vm3, %v2139_v19, 0.0  ;;  %v2318_v50 = vmul.f32 %v2139_v19, %v2139_v19 }
 0x2fb   : > { %v2269_v29 = vadd.f32 %v2268_v24, %v2267_v48  ;;  %v2371_v1 = vsel %vm1595_vm3, %v2319_v41, 0.0 }
 0x2fc   : > { %v2369_v36 = vsel %vm1595_vm3, %v2318_v50, 0.0 }
 0x2fd   : > { %v2370_v27 = vadd.f32 %v2369_v36, %v2368_v44  ;;  %v2271_v18 = vadd.f32 %v2270_v12, %v2269_v29 }
 0x2ff   : > { %v2372_v39 = vadd.f32 %v2371_v1, %v2370_v27 }
 0x30e   : > { %v2641_v3 = vpop.f32.mrb[6].mxu1 }
 0x30f   : > { %v2154_v59 = vadd.f32 %v2641_v3, %v4324_v14  ;;  %v2148_v22 = vpop.f32.mrb[7].mxu1 }
 0x310   : > { %v2149_v40 = vadd.f32 %v4324_v14, %v2148_v22 }
 0x311   : > { %2220 = vst.msk [vmem:[%s4336_s26 + $0xb8] sm:$0xff] %vm1595_vm3, %v2154_v59  ;;  %v2321_v15 = vmul.f32 %v2154_v59, %v2154_v59  ;;  %v2274_v56 = vsel %vm1595_vm3, %v2154_v59, 0.0 }
 0x312   : > { %2219 = vst.msk [vmem:[%s4336_s26 + $0xb0] sm:$0xff] %vm1595_vm3, %v2149_v40  ;;  %v2272_v16 = vsel %vm1595_vm3, %v2149_v40, 0.0  ;;  %v2320_v53 = vmul.f32 %v2149_v40, %v2149_v40 }
 0x313   : > { %v2273_v62 = vadd.f32 %v2272_v16, %v2271_v18  ;;  %v2375_v26 = vsel %vm1595_vm3, %v2321_v15, 0.0 }
 0x314   : > { %v2373_v11 = vsel %vm1595_vm3, %v2320_v53, 0.0 }
 0x315   : > { %v2374_v47 = vadd.f32 %v2373_v11, %v2372_v39  ;;  %v2275_v30 = vadd.f32 %v2274_v56, %v2273_v62 }
 0x317   : > { %v2376_v7 = vadd.f32 %v2375_v26, %v2374_v47 }
 0x326   : > { %v2644_v32 = vpop.f32.mrb[8].mxu1 }
 0x327   : > { %v2164_v21 = vadd.f32 %v2644_v32, %v4324_v14  ;;  %v2158_v37 = vpop.f32.mrb[9].mxu1 }
 0x328   : > { %v2159_v54 = vadd.f32 %v4324_v14, %v2158_v37 }
 0x329   : > { %2222 = vst.msk [vmem:[%s4336_s26 + $0xc8] sm:$0xff] %vm1595_vm3, %v2164_v21  ;;  %v2323_v46 = vmul.f32 %v2164_v21, %v2164_v21  ;;  %v2278_v60 = vsel %vm1595_vm3, %v2164_v21, 0.0 }
 0x32a   : > { %2221 = vst.msk [vmem:[%s4336_s26 + $0xc0] sm:$0xff] %vm1595_vm3, %v2159_v54  ;;  %v2276_v57 = vsel %vm1595_vm3, %v2159_v54, 0.0  ;;  %v2322_v8 = vmul.f32 %v2159_v54, %v2159_v54 }
 0x32b   : > { %v2277_v28 = vadd.f32 %v2276_v57, %v2275_v30  ;;  %v2379_v34 = vsel %vm1595_vm3, %v2323_v46, 0.0 }
 0x32c   : > { %v2377_v43 = vsel %vm1595_vm3, %v2322_v8, 0.0 }
 0x32d   : > { %v2378_v58 = vadd.f32 %v2377_v43, %v2376_v7  ;;  %v2279_v25 = vadd.f32 %v2278_v60, %v2277_v28 }
 0x32f   : > { %v2380_v49 = vadd.f32 %v2379_v34, %v2378_v58 }
 0x33e   : > { %v2647_v17 = vpop.f32.mrb[10].mxu1 }
 0x33f   : > { %v2174_v45 = vadd.f32 %v2647_v17, %v4324_v14  ;;  %v2168_v61 = vpop.f32.mrb[11].mxu1 }
 0x340   : > { %v2169_v31 = vadd.f32 %v4324_v14, %v2168_v61 }
 0x341   : > { %2224 = vst.msk [vmem:[%s4336_s26 + $0xd8] sm:$0xff] %vm1595_vm3, %v2174_v45  ;;  %v2325_v52 = vmul.f32 %v2174_v45, %v2174_v45  ;;  %v2282_v35 = vsel %vm1595_vm3, %v2174_v45, 0.0 }
 0x342   : > { %2223 = vst.msk [vmem:[%s4336_s26 + $0xd0] sm:$0xff] %vm1595_vm3, %v2169_v31  ;;  %v2280_v42 = vsel %vm1595_vm3, %v2169_v31, 0.0  ;;  %v2324_v5 = vmul.f32 %v2169_v31, %v2169_v31 }
 0x343   : > { %v2281_v33 = vadd.f32 %v2280_v42, %v2279_v25  ;;  %v2383_v23 = vsel %vm1595_vm3, %v2325_v52, 0.0 }
 0x344   : > { %v2381_v38 = vsel %vm1595_vm3, %v2324_v5, 0.0 }
 0x345   : > { %v2382_v63 = vadd.f32 %v2381_v38, %v2380_v49  ;;  %v2283_v13 = vadd.f32 %v2282_v35, %v2281_v33 }
 0x347   : > { %v2384_v4 = vadd.f32 %v2383_v23, %v2382_v63 }
 0x356   : > { %v2650_v20 = vpop.f32.mrb[12].mxu1 }
 0x357   : > { %v2184_v0 = vadd.f32 %v2650_v20, %v4324_v14  ;;  %v2178_v2 = vpop.f32.mrb[13].mxu1 }
 0x358   : > { %v2179_v9 = vadd.f32 %v4324_v14, %v2178_v2 }
 0x359   : > { %2226 = vst.msk [vmem:[%s4336_s26 + $0xe8] sm:$0xff] %vm1595_vm3, %v2184_v0  ;;  %v2327_v48 = vmul.f32 %v2184_v0, %v2184_v0  ;;  %v2286_v51 = vsel %vm1595_vm3, %v2184_v0, 0.0 }
 0x35a   : > { %2225 = vst.msk [vmem:[%s4336_s26 + $0xe0] sm:$0xff] %vm1595_vm3, %v2179_v9  ;;  %v2284_v10 = vsel %vm1595_vm3, %v2179_v9, 0.0  ;;  %v2326_v44 = vmul.f32 %v2179_v9, %v2179_v9 }
 0x35b   : > { %v2285_v6 = vadd.f32 %v2284_v10, %v2283_v13  ;;  %v2387_v24 = vsel %vm1595_vm3, %v2327_v48, 0.0 }
 0x35c   : > { %v2385_v55 = vsel %vm1595_vm3, %v2326_v44, 0.0 }
 0x35d   : > { %v2386_v19 = vadd.f32 %v2385_v55, %v2384_v4  ;;  %v2287_v41 = vadd.f32 %v2286_v51, %v2285_v6 }
 0x35f   : > { %v2388_v50 = vadd.f32 %v2387_v24, %v2386_v19 }
 0x362   : > { %v2653_v29 = vpop.f32.mrb[14].mxu1 }
 0x363   : > { %v2194_v12 = vadd.f32 %v2653_v29, %v4324_v14  ;;  %v2188_v36 = vpop.f32.mrb[15].mxu1 }
 0x364   : > { %v2189_v27 = vadd.f32 %v4324_v14, %v2188_v36 }
 0x365   : > { %2228 = vst.msk [vmem:[%s4336_s26 + $0xf8] sm:$0xff] %vm1595_vm3, %v2194_v12  ;;  %v2329_v18 = vmul.f32 %v2194_v12, %v2194_v12  ;;  %v2290_v59 = vsel %vm1595_vm3, %v2194_v12, 0.0 }
 0x366   : > { %2227 = vst.msk [vmem:[%s4336_s26 + $0xf0] sm:$0xff] %vm1595_vm3, %v2189_v27  ;;  %v2288_v1 = vsel %vm1595_vm3, %v2189_v27, 0.0  ;;  %v2328_v39 = vmul.f32 %v2189_v27, %v2189_v27 }
 0x367   : > { %v2289_v3 = vadd.f32 %v2288_v1, %v2287_v41  ;;  %v2391_v16 = vsel %vm1595_vm3, %v2329_v18, 0.0 }
 0x368   : > { %v2389_v22 = vsel %vm1595_vm3, %v2328_v39, 0.0 }
 0x369   : > { %v2291_v40 = vadd.f32 %v2290_v59, %v2289_v3  ;;  %v2390_v15 = vadd.f32 %v2389_v22, %v2388_v50 }
 0x36b   : > { %v2292_v53 = vrot.slane %v2291_v40, 4  ;;  %v2392_v14 = vadd.f32 %v2391_v16, %v2390_v15 }
 0x36d   : > { %v2293_v62 = vadd.f32 %v2292_v53, %v2291_v40  ;;  %v2393_v56 = vrot.slane %v2392_v14, 4 }
 0x36f   : > { %v2294_v11 = vrot.slane %v2293_v62, 2  ;;  %v2394_v47 = vadd.f32 %v2393_v56, %v2392_v14 }
 0x371   : > { %v2295_v30 = vadd.f32 %v2294_v11, %v2293_v62  ;;  %v2395_v26 = vrot.slane %v2394_v47, 2 }
 0x373   : > { %v2296_v7 = vrot.slane %v2295_v30, 1  ;;  %v2396_v32 = vadd.f32 %v2395_v26, %v2394_v47 }
 0x375   : > { %v2397_v21 = vrot.slane %v2396_v32, 1  ;;  %v2297_v37 = vadd.f32 %v2296_v7, %v2295_v30 }
 0x377   : > { %v2398_v54 = vadd.f32 %v2397_v21, %v2396_v32 }
 0x379   : > { %v2399_v46 = vsel %vm487_vm0, %v2297_v37, %v2398_v54 }
 0x37a   : > { %2401 = vst.msk [vmem:[%s276_s30] sm:$0x3] %vm2400_vm12, %v2399_v46 }
 0x37b PF: > { %s17_s21 = sadd.s32 1, %s2731_s21  }
 0x37c   : > { %p14_p4 = scmp.ge.s32.totalorder %s17_s21, 4  }
 0x37e   :  { %16 = sbr.rel (!%p14_p4) target bundleno = 1 (0x1), region = 85 }

</bundles_post_ra>
